<compile_context>
chip_gen: v6e
topology: v6e:2x2x1
jax: 0.10.0
libtpu: 0.0.40
codegen_flags: <defaults>
</compile_context>

<pallas_src>
import math
import jax
import jax.numpy as jnp
from jax.experimental import pallas as pl
from jax.experimental.pallas import tpu as pltpu

N_LAYER = 4
N_HEAD = 2
LN_EPS = 1e-5
OUT_PAD = 128      # lane-dense output width; real action lanes are [:act_dim]


def actor_kernel(x_ref,
                 wte_w, wte_b, wpe,
                 ln1_w, ln1_b,
                 qkv_w, qkv_b,
                 attnp_w, attnp_b,
                 ln2_w, ln2_b, fc_w, fc_b, mlpp_w, mlpp_b,
                 lnf_w, lnf_b, lm_w,
                 h1_w, h1_b, h2_w, h2_b, h3_w, h3_b,
                 out_ref):
    """One grid step = one batch element's (T, .) sequence, fully resident in VMEM.

    Matmul weights are pre-cast to bf16 at pack time; activations are cast to bf16
    right before each MXU dot and accumulated in f32. LayerNorm / softmax / bias math
    stays in f32 (v5e has no bf16 VPU/EUP)."""
    E = wte_b.shape[1]
    hd = E // N_HEAD
    T = x_ref.shape[0]

    def layernorm(z, w, b):
        mu = jnp.mean(z, axis=-1, keepdims=True)
        var = jnp.mean((z - mu) ** 2, axis=-1, keepdims=True)
        return (z - mu) * jax.lax.rsqrt(var + LN_EPS) * w + b

    def mm(a, w):     # bf16 operands, f32 accumulation on the MXU
        return jnp.dot(a.astype(jnp.bfloat16), w, preferred_element_type=jnp.float32)

    # causal mask built in-kernel (no quadratic HBM mask array)
    row = jax.lax.broadcasted_iota(jnp.int32, (T, T), 0)
    col = jax.lax.broadcasted_iota(jnp.int32, (T, T), 1)
    causal = col <= row

    # token embedding (Linear) + positional embedding. dropout = identity (eval).
    x = mm(x_ref[...], wte_w[...]) + wte_b[...] + wpe[...]          # (T, E) f32

    for l in range(N_LAYER):                                        # static unroll, n_layer=4
        # --- causal self-attention block: one fused QKV matmul, one fused out-proj ---
        xn = layernorm(x, ln1_w[l:l + 1, :], ln1_b[l:l + 1, :])
        qkv = mm(xn, qkv_w[l]) + qkv_b[l:l + 1, :]                  # (T, 3E); Q pre-scaled
        heads = []
        for h in range(N_HEAD):                                     # static unroll, n_head=2
            qh = qkv[:, h * hd:(h + 1) * hd]
            kh = qkv[:, E + h * hd:E + (h + 1) * hd]
            vh = qkv[:, 2 * E + h * hd:2 * E + (h + 1) * hd]
            att = jax.lax.dot_general(                              # q @ k^T (scale folded in)
                qh.astype(jnp.bfloat16), kh.astype(jnp.bfloat16),
                (((1,), (1,)), ((), ())),
                preferred_element_type=jnp.float32)
            att = jnp.where(causal, att, -1e30)                     # mask BEFORE row-max
            att = att - jnp.max(att, axis=-1, keepdims=True)
            p = jnp.exp(att)
            p = p * pl.reciprocal(jnp.sum(p, axis=-1, keepdims=True), approx=True)
            heads.append(jnp.dot(p.astype(jnp.bfloat16), vh.astype(jnp.bfloat16),
                                 preferred_element_type=jnp.float32))
        y = jnp.concatenate(heads, axis=-1)                         # (T, E) lane concat (XLU)
        x = x + mm(y, attnp_w[l]) + attnp_b[l:l + 1, :]

        # --- MLP block ---
        xn = layernorm(x, ln2_w[l:l + 1, :], ln2_b[l:l + 1, :])
        hmid = jax.nn.gelu(mm(xn, fc_w[l]) + fc_b[l:l + 1, :], approximate=True)   # tanh GELU -> EUP
        x = x + mm(hmid, mlpp_w[l]) + mlpp_b[l:l + 1, :]

    # final LN + lm_head (no bias) -> GPT features
    x = layernorm(x, lnf_w[...], lnf_b[...])
    feats = mm(x, lm_w[...])                                        # (T, E)

    # DeterministicHead MLP: Linear+ReLU, Linear+ReLU, Linear(pad to 128 lanes), Tanh
    a = jax.nn.relu(mm(feats, h1_w[...]) + h1_b[...])
    a = jax.nn.relu(mm(a, h2_w[...]) + h2_b[...])
    out_ref[...] = jnp.tanh(mm(a, h3_w[...]) + h3_b[...])           # (T, 128) lane-dense store


def pack_actor_params(params):
    """One-time re-packing of PyTorch-layout params into kernel-friendly layouts.

    Call ONCE (e.g. at agent construction / weight load) and reuse the result for
    every actor_forward call — this is the per-call wrapper overhead the review
    flagged, now hoisted out of the hot path."""
    E = params["wte_w"].shape[1]
    hd = E // N_HEAD
    A = params["h3_w"].shape[1]
    assert A <= OUT_PAD
    scale = jnp.float32(1.0 / math.sqrt(hd))
    bf16 = lambda a: a.astype(jnp.bfloat16)

    # fold the 1/sqrt(hd) attention-score scale into the Q columns of the QKV projection
    qkv_w = params["qkv_w"].at[:, :, :E].multiply(scale)
    qkv_b = params["qkv_b"].at[:, :E].multiply(scale)

    # lane-pad the action head to a dense 128-lane output (unmasked vst)
    h3_w = jnp.zeros((E, OUT_PAD), jnp.float32).at[:, :A].set(params["h3_w"])
    h3_b = jnp.zeros((1, OUT_PAD), jnp.float32).at[:, :A].set(params["h3_b"])

    args = [
        bf16(params["wte_w"]), params["wte_b"], params["wpe"],
        params["ln1_w"], params["ln1_b"],
        bf16(qkv_w), qkv_b,
        bf16(params["attnp_w"]), params["attnp_b"],
        params["ln2_w"], params["ln2_b"],
        bf16(params["fc_w"]), params["fc_b"],
        bf16(params["mlpp_w"]), params["mlpp_b"],
        params["lnf_w"], params["lnf_b"], bf16(params["lm_w"]),
        bf16(params["h1_w"]), params["h1_b"],
        bf16(params["h2_w"]), params["h2_b"],
        bf16(h3_w), h3_b,
    ]
    args = jax.block_until_ready(args)        # materialize packing cost now, not per call
    return {"act_dim": A, "args": args}


def actor_forward(past_tracks, packed, stddev):
    """Returns (mu, std) — the parameters of the TruncatedNormal(mu, stddev) the
    PyTorch module returns as `pred_action` when action is None."""
    B, T, D = past_tracks.shape
    args = packed["args"]
    E = args[0].shape[1]
    A = packed["act_dim"]
    BT = B * T

    x_flat = past_tracks.reshape(BT, D)
    inputs = [x_flat] + args

    def resident_spec(a):                     # weights: same block for every grid step
        nd = a.ndim
        return pl.BlockSpec(a.shape, lambda b, _nd=nd: (0,) * _nd)

    in_specs = ([pl.BlockSpec((T, D), lambda b: (b, 0))]
                + [resident_spec(a) for a in args])
    out_spec = pl.BlockSpec((T, OUT_PAD), lambda b: (b, 0))

    # advisory cost hint for the XLA scheduler (whole call)
    flops = 2 * BT * D * E
    flops += N_LAYER * (24 * BT * E * E + 4 * B * T * T * E)
    flops += 6 * BT * E * E + 2 * BT * E * OUT_PAD
    transcendentals = N_LAYER * (N_HEAD * B * T * T + BT * 4 * E) + BT * OUT_PAD
    bytes_accessed = (sum(int(a.size) * a.dtype.itemsize for a in inputs)
                      + BT * OUT_PAD * 4)

    mu_pad = pl.pallas_call(
        actor_kernel,
        out_shape=jax.ShapeDtypeStruct((BT, OUT_PAD), jnp.float32),
        grid_spec=pltpu.PrefetchScalarGridSpec(
            num_scalar_prefetch=0,
            grid=(B,),                        # per-batch step: v7x gets both TensorCores
            in_specs=in_specs,
            out_specs=out_spec,
        ),
        compiler_params=pltpu.CompilerParams(dimension_semantics=("parallel",)),
        cost_estimate=pl.CostEstimate(
            flops=int(flops),
            transcendentals=int(transcendentals),
            bytes_accessed=int(bytes_accessed)),
    )(*inputs)

    mu = mu_pad[:, :A].reshape(B, T, A)
    # TODO(synk): TruncatedNormal is a distribution object; we return its (loc, scale)
    # tensors. `stddev` only sets the scale (pure glue, no kernel compute needed).
    std = jnp.full_like(mu, jnp.float32(stddev))
    return mu, std


# -------------------- deterministic parameter init (synthetic) --------------------
class _KeyGen:
    def __init__(self, key):
        self.key = key

    def __call__(self, shape, scale=0.02):
        self.key, sub = jax.random.split(self.key)
        return (jax.random.normal(sub, shape, jnp.float32) * scale).astype(jnp.float32)


def init_params(key, repr_dim, n_embd, act_dim, seq_len):
    ks = _KeyGen(key)
    L, E, D, A, T = N_LAYER, n_embd, repr_dim, act_dim, seq_len
    p = {}
    p["wte_w"] = ks((D, E));           p["wte_b"] = ks((1, E))
    p["wpe"] = ks((T, E))              # first T rows of the (block_size=20, E) table
    p["ln1_w"] = 1.0 + ks((L, E));     p["ln1_b"] = ks((L, E))
    p["qkv_w"] = ks((L, E, 3 * E));    p["qkv_b"] = ks((L, 3 * E))
    p["attnp_w"] = ks((L, E, E));      p["attnp_b"] = ks((L, E))
    p["ln2_w"] = 1.0 + ks((L, E));     p["ln2_b"] = ks((L, E))
    p["fc_w"] = ks((L, E, 4 * E));     p["fc_b"] = ks((L, 4 * E))
    p["mlpp_w"] = ks((L, 4 * E, E));   p["mlpp_b"] = ks((L, E))
    p["lnf_w"] = 1.0 + ks((1, E));     p["lnf_b"] = ks((1, E))
    p["lm_w"] = ks((E, E))                                   # output_dim == hidden_dim
    p["h1_w"] = ks((E, E));            p["h1_b"] = ks((1, E))
    p["h2_w"] = ks((E, E));            p["h2_b"] = ks((1, E))
    p["h3_w"] = ks((E, A));            p["h3_b"] = ks((1, A))
    return p


# -------------------- pure-JAX reference (for correctness check) --------------------
def actor_reference(x, p):
    E = p["wte_w"].shape[1]
    hd = E // N_HEAD
    T = x.shape[1]

    def ln(z, w, b):
        m = z.mean(-1, keepdims=True)
        v = ((z - m) ** 2).mean(-1, keepdims=True)
        return (z - m) / jnp.sqrt(v + LN_EPS) * w + b

    h = x @ p["wte_w"] + p["wte_b"] + p["wpe"][None]
    mask = jnp.tril(jnp.ones((T, T), bool))
    for l in range(N_LAYER):
        z = ln(h, p["ln1_w"][l], p["ln1_b"][l])
        qkv = z @ p["qkv_w"][l] + p["qkv_b"][l]
        q, k, v = jnp.split(qkv, 3, axis=-1)
        outs = []
        for hh in range(N_HEAD):
            qh = q[..., hh * hd:(hh + 1) * hd]
            kh = k[..., hh * hd:(hh + 1) * hd]
            vh = v[..., hh * hd:(hh + 1) * hd]
            att = jnp.einsum("btd,bsd->bts", qh, kh) / math.sqrt(hd)
            att = jnp.where(mask, att, -1e30)
            att = jax.nn.softmax(att, axis=-1)
            outs.append(jnp.einsum("bts,bsd->btd", att, vh))
        h = h + jnp.concatenate(outs, -1) @ p["attnp_w"][l] + p["attnp_b"][l]
        z = ln(h, p["ln2_w"][l], p["ln2_b"][l])
        z = jax.nn.gelu(z @ p["fc_w"][l] + p["fc_b"][l], approximate=False)
        h = h + z @ p["mlpp_w"][l] + p["mlpp_b"][l]
    h = ln(h, p["lnf_w"][0], p["lnf_b"][0])
    feats = h @ p["lm_w"]
    a = jax.nn.relu(feats @ p["h1_w"] + p["h1_b"][0])
    a = jax.nn.relu(a @ p["h2_w"] + p["h2_b"][0])
    return jnp.tanh(a @ p["h3_w"] + p["h3_b"][0])


if __name__ == "__main__":
    B, T, REPR_DIM, HIDDEN_DIM, ACT_DIM = 2, 8, 16, 32, 6
    STDDEV = 0.1

    key = jax.random.PRNGKey(0)
    k_param, k_in = jax.random.split(key)
    params = init_params(k_param, REPR_DIM, HIDDEN_DIM, ACT_DIM, T)
    past_tracks = jax.random.normal(k_in, (B, T, REPR_DIM), jnp.float32)

    packed = pack_actor_params(params)        # one-time packing, hoisted out of the hot path

    mu, std = actor_forward(past_tracks, packed, STDDEV)
    jax.block_until_ready(mu)

    ref = actor_reference(past_tracks, params)
    assert mu.shape == (B, T, ACT_DIM) and std.shape == (B, T, ACT_DIM)
    assert jnp.allclose(mu, ref, atol=1e-2, rtol=1e-2), "Pallas kernel mismatch vs JAX reference"

    print("KERNEL_OK")
</pallas_src>

<mosaic_0001>
module attributes {stable_mosaic.version = 11 : i64} {
  func.func @actor_kernel(%arg0: i32, %arg1: memref<8x16xf32, #tpu.memory_space<vmem>>, %arg2: memref<16x32xbf16, #tpu.memory_space<vmem>>, %arg3: memref<1x32xf32, #tpu.memory_space<vmem>>, %arg4: memref<8x32xf32, #tpu.memory_space<vmem>>, %arg5: memref<4x32xf32, #tpu.memory_space<vmem>>, %arg6: memref<4x32xf32, #tpu.memory_space<vmem>>, %arg7: memref<4x32x96xbf16, #tpu.memory_space<vmem>>, %arg8: memref<4x96xf32, #tpu.memory_space<vmem>>, %arg9: memref<4x32x32xbf16, #tpu.memory_space<vmem>>, %arg10: memref<4x32xf32, #tpu.memory_space<vmem>>, %arg11: memref<4x32xf32, #tpu.memory_space<vmem>>, %arg12: memref<4x32xf32, #tpu.memory_space<vmem>>, %arg13: memref<4x32x128xbf16, #tpu.memory_space<vmem>>, %arg14: memref<4x128xf32, #tpu.memory_space<vmem>>, %arg15: memref<4x128x32xbf16, #tpu.memory_space<vmem>>, %arg16: memref<4x32xf32, #tpu.memory_space<vmem>>, %arg17: memref<1x32xf32, #tpu.memory_space<vmem>>, %arg18: memref<1x32xf32, #tpu.memory_space<vmem>>, %arg19: memref<32x32xbf16, #tpu.memory_space<vmem>>, %arg20: memref<32x32xbf16, #tpu.memory_space<vmem>>, %arg21: memref<1x32xf32, #tpu.memory_space<vmem>>, %arg22: memref<32x32xbf16, #tpu.memory_space<vmem>>, %arg23: memref<1x32xf32, #tpu.memory_space<vmem>>, %arg24: memref<32x128xbf16, #tpu.memory_space<vmem>>, %arg25: memref<1x128xf32, #tpu.memory_space<vmem>>, %arg26: memref<8x128xf32, #tpu.memory_space<vmem>>) attributes {dimension_semantics = [#tpu.dimension_semantics<parallel>], iteration_bounds = array<i64: 2>, scalar_prefetch = 0 : i64, scratch_operands = 0 : i64, tpu.core_type = #tpu.core_type<tc>, window_params = [{transform_indices = @transform_0, window_bounds = array<i64: 8, 16>}, {pipeline_mode = #tpu.pipeline_mode<synchronous>, transform_indices = @transform_1, window_bounds = array<i64: 16, 32>}, {pipeline_mode = #tpu.pipeline_mode<synchronous>, transform_indices = @transform_2, window_bounds = array<i64: 1, 32>}, {pipeline_mode = #tpu.pipeline_mode<synchronous>, transform_indices = @transform_3, window_bounds = array<i64: 8, 32>}, {pipeline_mode = #tpu.pipeline_mode<synchronous>, transform_indices = @transform_4, window_bounds = array<i64: 4, 32>}, {pipeline_mode = #tpu.pipeline_mode<synchronous>, transform_indices = @transform_5, window_bounds = array<i64: 4, 32>}, {pipeline_mode = #tpu.pipeline_mode<synchronous>, transform_indices = @transform_6, window_bounds = array<i64: 4, 32, 96>}, {pipeline_mode = #tpu.pipeline_mode<synchronous>, transform_indices = @transform_7, window_bounds = array<i64: 4, 96>}, {pipeline_mode = #tpu.pipeline_mode<synchronous>, transform_indices = @transform_8, window_bounds = array<i64: 4, 32, 32>}, {pipeline_mode = #tpu.pipeline_mode<synchronous>, transform_indices = @transform_9, window_bounds = array<i64: 4, 32>}, {pipeline_mode = #tpu.pipeline_mode<synchronous>, transform_indices = @transform_10, window_bounds = array<i64: 4, 32>}, {pipeline_mode = #tpu.pipeline_mode<synchronous>, transform_indices = @transform_11, window_bounds = array<i64: 4, 32>}, {pipeline_mode = #tpu.pipeline_mode<synchronous>, transform_indices = @transform_12, window_bounds = array<i64: 4, 32, 128>}, {pipeline_mode = #tpu.pipeline_mode<synchronous>, transform_indices = @transform_13, window_bounds = array<i64: 4, 128>}, {pipeline_mode = #tpu.pipeline_mode<synchronous>, transform_indices = @transform_14, window_bounds = array<i64: 4, 128, 32>}, {pipeline_mode = #tpu.pipeline_mode<synchronous>, transform_indices = @transform_15, window_bounds = array<i64: 4, 32>}, {pipeline_mode = #tpu.pipeline_mode<synchronous>, transform_indices = @transform_16, window_bounds = array<i64: 1, 32>}, {pipeline_mode = #tpu.pipeline_mode<synchronous>, transform_indices = @transform_17, window_bounds = array<i64: 1, 32>}, {pipeline_mode = #tpu.pipeline_mode<synchronous>, transform_indices = @transform_18, window_bounds = array<i64: 32, 32>}, {pipeline_mode = #tpu.pipeline_mode<synchronous>, transform_indices = @transform_19, window_bounds = array<i64: 32, 32>}, {pipeline_mode = #tpu.pipeline_mode<synchronous>, transform_indices = @transform_20, window_bounds = array<i64: 1, 32>}, {pipeline_mode = #tpu.pipeline_mode<synchronous>, transform_indices = @transform_21, window_bounds = array<i64: 32, 32>}, {pipeline_mode = #tpu.pipeline_mode<synchronous>, transform_indices = @transform_22, window_bounds = array<i64: 1, 32>}, {pipeline_mode = #tpu.pipeline_mode<synchronous>, transform_indices = @transform_23, window_bounds = array<i64: 32, 128>}, {pipeline_mode = #tpu.pipeline_mode<synchronous>, transform_indices = @transform_24, window_bounds = array<i64: 1, 128>}, {transform_indices = @transform_25, window_bounds = array<i64: 8, 128>}]} {
    %0 = tpu.iota {dimensions = array<i32: 0>} : vector<8x8xi32>
    %1 = tpu.iota {dimensions = array<i32: 1>} : vector<8x8xi32>
    %2 = arith.cmpi sle, %1, %0 : vector<8x8xi32>
    %c0 = arith.constant 0 : index
    %c0_0 = arith.constant 0 : index
    %3 = vector.load %arg1[%c0, %c0_0] : memref<8x16xf32, #tpu.memory_space<vmem>>, vector<8x16xf32>
    %c0_1 = arith.constant 0 : index
    %c0_2 = arith.constant 0 : index
    %4 = vector.load %arg2[%c0_1, %c0_2] : memref<16x32xbf16, #tpu.memory_space<vmem>>, vector<16x32xbf16>
    %5 = arith.truncf %3 : vector<8x16xf32> to vector<8x16xbf16>
    %cst = arith.constant dense<0.000000e+00> : vector<8x32xf32>
    %6 = tpu.matmul %5, %4, %cst {dimension_numbers = #tpu.dot_dimension_numbers<[1], [0], [0], [1], [0, 0, 1, 1], [], []>} : vector<8x16xbf16>, vector<16x32xbf16>, vector<8x32xf32> -> vector<8x32xf32>
    %c0_3 = arith.constant 0 : index
    %c0_4 = arith.constant 0 : index
    %7 = vector.load %arg3[%c0_3, %c0_4] : memref<1x32xf32, #tpu.memory_space<vmem>>, vector<1x32xf32>
    %8 = vector.broadcast %7 : vector<1x32xf32> to vector<8x32xf32>
    %9 = arith.addf %6, %8 : vector<8x32xf32>
    %c0_5 = arith.constant 0 : index
    %c0_6 = arith.constant 0 : index
    %10 = vector.load %arg4[%c0_5, %c0_6] : memref<8x32xf32, #tpu.memory_space<vmem>>, vector<8x32xf32>
    %11 = arith.addf %9, %10 : vector<8x32xf32>
    %c0_7 = arith.constant 0 : index
    %c0_8 = arith.constant 0 : index
    %12 = vector.load %arg5[%c0_7, %c0_8] : memref<4x32xf32, #tpu.memory_space<vmem>>, vector<1x32xf32>
    %c0_9 = arith.constant 0 : index
    %c0_10 = arith.constant 0 : index
    %13 = vector.load %arg6[%c0_9, %c0_10] : memref<4x32xf32, #tpu.memory_space<vmem>>, vector<1x32xf32>
    %cst_11 = arith.constant dense<0.000000e+00> : vector<8xf32>
    %14 = vector.multi_reduction <add>, %11, %cst_11 [1] : vector<8x32xf32> to vector<8xf32>
    %15 = vector.shape_cast %14 : vector<8xf32> to vector<8x1xf32>
    %cst_12 = arith.constant 3.200000e+01 : f32
    %16 = vector.broadcast %cst_12 : f32 to vector<8x1xf32>
    %17 = arith.divf %15, %16 : vector<8x1xf32>
    %18 = vector.broadcast %17 : vector<8x1xf32> to vector<8x32xf32>
    %19 = arith.subf %11, %18 : vector<8x32xf32>
    %20 = arith.mulf %19, %19 : vector<8x32xf32>
    %cst_13 = arith.constant dense<0.000000e+00> : vector<8xf32>
    %21 = vector.multi_reduction <add>, %20, %cst_13 [1] : vector<8x32xf32> to vector<8xf32>
    %22 = vector.shape_cast %21 : vector<8xf32> to vector<8x1xf32>
    %cst_14 = arith.constant 3.200000e+01 : f32
    %23 = vector.broadcast %cst_14 : f32 to vector<8x1xf32>
    %24 = arith.divf %22, %23 : vector<8x1xf32>
    %25 = vector.broadcast %17 : vector<8x1xf32> to vector<8x32xf32>
    %26 = arith.subf %11, %25 : vector<8x32xf32>
    %cst_15 = arith.constant 9.99999974E-6 : f32
    %27 = vector.broadcast %cst_15 : f32 to vector<8x1xf32>
    %28 = arith.addf %24, %27 : vector<8x1xf32>
    %29 = math.rsqrt %28 : vector<8x1xf32>
    %30 = vector.broadcast %29 : vector<8x1xf32> to vector<8x32xf32>
    %31 = arith.mulf %26, %30 : vector<8x32xf32>
    %32 = vector.broadcast %12 : vector<1x32xf32> to vector<8x32xf32>
    %33 = arith.mulf %31, %32 : vector<8x32xf32>
    %34 = vector.broadcast %13 : vector<1x32xf32> to vector<8x32xf32>
    %35 = arith.addf %33, %34 : vector<8x32xf32>
    %c0_16 = arith.constant 0 : index
    %c0_17 = arith.constant 0 : index
    %c0_18 = arith.constant 0 : index
    %36 = vector.load %arg7[%c0_16, %c0_17, %c0_18] : memref<4x32x96xbf16, #tpu.memory_space<vmem>>, vector<1x32x96xbf16>
    %37 = vector.shape_cast %36 : vector<1x32x96xbf16> to vector<32x96xbf16>
    %38 = arith.truncf %35 : vector<8x32xf32> to vector<8x32xbf16>
    %cst_19 = arith.constant dense<0.000000e+00> : vector<8x96xf32>
    %39 = tpu.matmul %38, %37, %cst_19 {dimension_numbers = #tpu.dot_dimension_numbers<[1], [0], [0], [1], [0, 0, 1, 1], [], []>} : vector<8x32xbf16>, vector<32x96xbf16>, vector<8x96xf32> -> vector<8x96xf32>
    %c0_20 = arith.constant 0 : index
    %c0_21 = arith.constant 0 : index
    %40 = vector.load %arg8[%c0_20, %c0_21] : memref<4x96xf32, #tpu.memory_space<vmem>>, vector<1x96xf32>
    %41 = vector.broadcast %40 : vector<1x96xf32> to vector<8x96xf32>
    %42 = arith.addf %39, %41 : vector<8x96xf32>
    %43 = vector.extract_strided_slice %42 {offsets = [0, 0], sizes = [8, 16], strides = [1, 1]} : vector<8x96xf32> to vector<8x16xf32>
    %44 = vector.extract_strided_slice %42 {offsets = [0, 32], sizes = [8, 16], strides = [1, 1]} : vector<8x96xf32> to vector<8x16xf32>
    %45 = vector.extract_strided_slice %42 {offsets = [0, 64], sizes = [8, 16], strides = [1, 1]} : vector<8x96xf32> to vector<8x16xf32>
    %46 = arith.truncf %43 : vector<8x16xf32> to vector<8x16xbf16>
    %47 = arith.truncf %44 : vector<8x16xf32> to vector<8x16xbf16>
    %cst_22 = arith.constant dense<0.000000e+00> : vector<8x8xf32>
    %48 = tpu.matmul %46, %47, %cst_22 {dimension_numbers = #tpu.dot_dimension_numbers<[1], [1], [0], [0], [0, 0, 1, 0], [], []>} : vector<8x16xbf16>, vector<8x16xbf16>, vector<8x8xf32> -> vector<8x8xf32>
    %cst_23 = arith.constant -1.000000e+30 : f32
    %49 = vector.broadcast %cst_23 : f32 to vector<8x8xf32>
    %50 = arith.select %2, %48, %49 : vector<8x8xi1>, vector<8x8xf32>
    %cst_24 = arith.constant dense<0xFF800000> : vector<8xf32>
    %51 = vector.multi_reduction <maximumf>, %50, %cst_24 [1] : vector<8x8xf32> to vector<8xf32>
    %52 = vector.shape_cast %51 : vector<8xf32> to vector<8x1xf32>
    %53 = vector.broadcast %52 : vector<8x1xf32> to vector<8x8xf32>
    %54 = arith.subf %50, %53 : vector<8x8xf32>
    %55 = math.exp %54 : vector<8x8xf32>
    %cst_25 = arith.constant dense<0.000000e+00> : vector<8xf32>
    %56 = vector.multi_reduction <add>, %55, %cst_25 [1] : vector<8x8xf32> to vector<8xf32>
    %57 = vector.shape_cast %56 : vector<8xf32> to vector<8x1xf32>
    %58 = tpu.reciprocal %57 {approx = true} : vector<8x1xf32> -> vector<8x1xf32>
    %59 = vector.broadcast %58 : vector<8x1xf32> to vector<8x8xf32>
    %60 = arith.mulf %55, %59 : vector<8x8xf32>
    %61 = arith.truncf %60 : vector<8x8xf32> to vector<8x8xbf16>
    %62 = arith.truncf %45 : vector<8x16xf32> to vector<8x16xbf16>
    %cst_26 = arith.constant dense<0.000000e+00> : vector<8x16xf32>
    %63 = tpu.matmul %61, %62, %cst_26 {dimension_numbers = #tpu.dot_dimension_numbers<[1], [0], [0], [1], [0, 0, 1, 1], [], []>} : vector<8x8xbf16>, vector<8x16xbf16>, vector<8x16xf32> -> vector<8x16xf32>
    %64 = vector.extract_strided_slice %42 {offsets = [0, 16], sizes = [8, 16], strides = [1, 1]} : vector<8x96xf32> to vector<8x16xf32>
    %65 = vector.extract_strided_slice %42 {offsets = [0, 48], sizes = [8, 16], strides = [1, 1]} : vector<8x96xf32> to vector<8x16xf32>
    %66 = vector.extract_strided_slice %42 {offsets = [0, 80], sizes = [8, 16], strides = [1, 1]} : vector<8x96xf32> to vector<8x16xf32>
    %67 = arith.truncf %64 : vector<8x16xf32> to vector<8x16xbf16>
    %68 = arith.truncf %65 : vector<8x16xf32> to vector<8x16xbf16>
    %cst_27 = arith.constant dense<0.000000e+00> : vector<8x8xf32>
    %69 = tpu.matmul %67, %68, %cst_27 {dimension_numbers = #tpu.dot_dimension_numbers<[1], [1], [0], [0], [0, 0, 1, 0], [], []>} : vector<8x16xbf16>, vector<8x16xbf16>, vector<8x8xf32> -> vector<8x8xf32>
    %cst_28 = arith.constant -1.000000e+30 : f32
    %70 = vector.broadcast %cst_28 : f32 to vector<8x8xf32>
    %71 = arith.select %2, %69, %70 : vector<8x8xi1>, vector<8x8xf32>
    %cst_29 = arith.constant dense<0xFF800000> : vector<8xf32>
    %72 = vector.multi_reduction <maximumf>, %71, %cst_29 [1] : vector<8x8xf32> to vector<8xf32>
    %73 = vector.shape_cast %72 : vector<8xf32> to vector<8x1xf32>
    %74 = vector.broadcast %73 : vector<8x1xf32> to vector<8x8xf32>
    %75 = arith.subf %71, %74 : vector<8x8xf32>
    %76 = math.exp %75 : vector<8x8xf32>
    %cst_30 = arith.constant dense<0.000000e+00> : vector<8xf32>
    %77 = vector.multi_reduction <add>, %76, %cst_30 [1] : vector<8x8xf32> to vector<8xf32>
    %78 = vector.shape_cast %77 : vector<8xf32> to vector<8x1xf32>
    %79 = tpu.reciprocal %78 {approx = true} : vector<8x1xf32> -> vector<8x1xf32>
    %80 = vector.broadcast %79 : vector<8x1xf32> to vector<8x8xf32>
    %81 = arith.mulf %76, %80 : vector<8x8xf32>
    %82 = arith.truncf %81 : vector<8x8xf32> to vector<8x8xbf16>
    %83 = arith.truncf %66 : vector<8x16xf32> to vector<8x16xbf16>
    %cst_31 = arith.constant dense<0.000000e+00> : vector<8x16xf32>
    %84 = tpu.matmul %82, %83, %cst_31 {dimension_numbers = #tpu.dot_dimension_numbers<[1], [0], [0], [1], [0, 0, 1, 1], [], []>} : vector<8x8xbf16>, vector<8x16xbf16>, vector<8x16xf32> -> vector<8x16xf32>
    %85 = tpu.concatenate %63, %84 in 1 : vector<8x16xf32>, vector<8x16xf32> -> vector<8x32xf32>
    %c0_32 = arith.constant 0 : index
    %c0_33 = arith.constant 0 : index
    %c0_34 = arith.constant 0 : index
    %86 = vector.load %arg9[%c0_32, %c0_33, %c0_34] : memref<4x32x32xbf16, #tpu.memory_space<vmem>>, vector<1x32x32xbf16>
    %87 = vector.shape_cast %86 : vector<1x32x32xbf16> to vector<32x32xbf16>
    %88 = arith.truncf %85 : vector<8x32xf32> to vector<8x32xbf16>
    %cst_35 = arith.constant dense<0.000000e+00> : vector<8x32xf32>
    %89 = tpu.matmul %88, %87, %cst_35 {dimension_numbers = #tpu.dot_dimension_numbers<[1], [0], [0], [1], [0, 0, 1, 1], [], []>} : vector<8x32xbf16>, vector<32x32xbf16>, vector<8x32xf32> -> vector<8x32xf32>
    %90 = arith.addf %11, %89 : vector<8x32xf32>
    %c0_36 = arith.constant 0 : index
    %c0_37 = arith.constant 0 : index
    %91 = vector.load %arg10[%c0_36, %c0_37] : memref<4x32xf32, #tpu.memory_space<vmem>>, vector<1x32xf32>
    %92 = vector.broadcast %91 : vector<1x32xf32> to vector<8x32xf32>
    %93 = arith.addf %90, %92 : vector<8x32xf32>
    %c0_38 = arith.constant 0 : index
    %c0_39 = arith.constant 0 : index
    %94 = vector.load %arg11[%c0_38, %c0_39] : memref<4x32xf32, #tpu.memory_space<vmem>>, vector<1x32xf32>
    %c0_40 = arith.constant 0 : index
    %c0_41 = arith.constant 0 : index
    %95 = vector.load %arg12[%c0_40, %c0_41] : memref<4x32xf32, #tpu.memory_space<vmem>>, vector<1x32xf32>
    %cst_42 = arith.constant dense<0.000000e+00> : vector<8xf32>
    %96 = vector.multi_reduction <add>, %93, %cst_42 [1] : vector<8x32xf32> to vector<8xf32>
    %97 = vector.shape_cast %96 : vector<8xf32> to vector<8x1xf32>
    %cst_43 = arith.constant 3.200000e+01 : f32
    %98 = vector.broadcast %cst_43 : f32 to vector<8x1xf32>
    %99 = arith.divf %97, %98 : vector<8x1xf32>
    %100 = vector.broadcast %99 : vector<8x1xf32> to vector<8x32xf32>
    %101 = arith.subf %93, %100 : vector<8x32xf32>
    %102 = arith.mulf %101, %101 : vector<8x32xf32>
    %cst_44 = arith.constant dense<0.000000e+00> : vector<8xf32>
    %103 = vector.multi_reduction <add>, %102, %cst_44 [1] : vector<8x32xf32> to vector<8xf32>
    %104 = vector.shape_cast %103 : vector<8xf32> to vector<8x1xf32>
    %cst_45 = arith.constant 3.200000e+01 : f32
    %105 = vector.broadcast %cst_45 : f32 to vector<8x1xf32>
    %106 = arith.divf %104, %105 : vector<8x1xf32>
    %107 = vector.broadcast %99 : vector<8x1xf32> to vector<8x32xf32>
    %108 = arith.subf %93, %107 : vector<8x32xf32>
    %cst_46 = arith.constant 9.99999974E-6 : f32
    %109 = vector.broadcast %cst_46 : f32 to vector<8x1xf32>
    %110 = arith.addf %106, %109 : vector<8x1xf32>
    %111 = math.rsqrt %110 : vector<8x1xf32>
    %112 = vector.broadcast %111 : vector<8x1xf32> to vector<8x32xf32>
    %113 = arith.mulf %108, %112 : vector<8x32xf32>
    %114 = vector.broadcast %94 : vector<1x32xf32> to vector<8x32xf32>
    %115 = arith.mulf %113, %114 : vector<8x32xf32>
    %116 = vector.broadcast %95 : vector<1x32xf32> to vector<8x32xf32>
    %117 = arith.addf %115, %116 : vector<8x32xf32>
    %c0_47 = arith.constant 0 : index
    %c0_48 = arith.constant 0 : index
    %c0_49 = arith.constant 0 : index
    %118 = vector.load %arg13[%c0_47, %c0_48, %c0_49] : memref<4x32x128xbf16, #tpu.memory_space<vmem>>, vector<1x32x128xbf16>
    %119 = vector.shape_cast %118 : vector<1x32x128xbf16> to vector<32x128xbf16>
    %120 = arith.truncf %117 : vector<8x32xf32> to vector<8x32xbf16>
    %cst_50 = arith.constant dense<0.000000e+00> : vector<8x128xf32>
    %121 = tpu.matmul %120, %119, %cst_50 {dimension_numbers = #tpu.dot_dimension_numbers<[1], [0], [0], [1], [0, 0, 1, 1], [], []>} : vector<8x32xbf16>, vector<32x128xbf16>, vector<8x128xf32> -> vector<8x128xf32>
    %c0_51 = arith.constant 0 : index
    %c0_52 = arith.constant 0 : index
    %122 = vector.load %arg14[%c0_51, %c0_52] : memref<4x128xf32, #tpu.memory_space<vmem>>, vector<1x128xf32>
    %123 = vector.broadcast %122 : vector<1x128xf32> to vector<8x128xf32>
    %124 = arith.addf %121, %123 : vector<8x128xf32>
    %125 = arith.mulf %124, %124 : vector<8x128xf32>
    %126 = arith.mulf %124, %125 : vector<8x128xf32>
    %cst_53 = arith.constant 4.471500e-02 : f32
    %127 = vector.broadcast %cst_53 : f32 to vector<8x128xf32>
    %128 = arith.mulf %127, %126 : vector<8x128xf32>
    %129 = arith.addf %124, %128 : vector<8x128xf32>
    %cst_54 = arith.constant 0.797884583 : f32
    %130 = vector.broadcast %cst_54 : f32 to vector<8x128xf32>
    %131 = arith.mulf %130, %129 : vector<8x128xf32>
    %132 = math.tanh %131 : vector<8x128xf32>
    %cst_55 = arith.constant 1.000000e+00 : f32
    %133 = vector.broadcast %cst_55 : f32 to vector<8x128xf32>
    %134 = arith.addf %133, %132 : vector<8x128xf32>
    %cst_56 = arith.constant 5.000000e-01 : f32
    %135 = vector.broadcast %cst_56 : f32 to vector<8x128xf32>
    %136 = arith.mulf %135, %134 : vector<8x128xf32>
    %137 = arith.mulf %124, %136 : vector<8x128xf32>
    %c0_57 = arith.constant 0 : index
    %c0_58 = arith.constant 0 : index
    %c0_59 = arith.constant 0 : index
    %138 = vector.load %arg15[%c0_57, %c0_58, %c0_59] : memref<4x128x32xbf16, #tpu.memory_space<vmem>>, vector<1x128x32xbf16>
    %139 = vector.shape_cast %138 : vector<1x128x32xbf16> to vector<128x32xbf16>
    %140 = arith.truncf %137 : vector<8x128xf32> to vector<8x128xbf16>
    %cst_60 = arith.constant dense<0.000000e+00> : vector<8x32xf32>
    %141 = tpu.matmul %140, %139, %cst_60 {dimension_numbers = #tpu.dot_dimension_numbers<[1], [0], [0], [1], [0, 0, 1, 1], [], []>} : vector<8x128xbf16>, vector<128x32xbf16>, vector<8x32xf32> -> vector<8x32xf32>
    %142 = arith.addf %93, %141 : vector<8x32xf32>
    %c0_61 = arith.constant 0 : index
    %c0_62 = arith.constant 0 : index
    %143 = vector.load %arg16[%c0_61, %c0_62] : memref<4x32xf32, #tpu.memory_space<vmem>>, vector<1x32xf32>
    %144 = vector.broadcast %143 : vector<1x32xf32> to vector<8x32xf32>
    %145 = arith.addf %142, %144 : vector<8x32xf32>
    %c1 = arith.constant 1 : index
    %c0_63 = arith.constant 0 : index
    %146 = vector.load %arg5[%c1, %c0_63] : memref<4x32xf32, #tpu.memory_space<vmem>>, vector<1x32xf32>
    %c1_64 = arith.constant 1 : index
    %c0_65 = arith.constant 0 : index
    %147 = vector.load %arg6[%c1_64, %c0_65] : memref<4x32xf32, #tpu.memory_space<vmem>>, vector<1x32xf32>
    %cst_66 = arith.constant dense<0.000000e+00> : vector<8xf32>
    %148 = vector.multi_reduction <add>, %145, %cst_66 [1] : vector<8x32xf32> to vector<8xf32>
    %149 = vector.shape_cast %148 : vector<8xf32> to vector<8x1xf32>
    %cst_67 = arith.constant 3.200000e+01 : f32
    %150 = vector.broadcast %cst_67 : f32 to vector<8x1xf32>
    %151 = arith.divf %149, %150 : vector<8x1xf32>
    %152 = vector.broadcast %151 : vector<8x1xf32> to vector<8x32xf32>
    %153 = arith.subf %145, %152 : vector<8x32xf32>
    %154 = arith.mulf %153, %153 : vector<8x32xf32>
    %cst_68 = arith.constant dense<0.000000e+00> : vector<8xf32>
    %155 = vector.multi_reduction <add>, %154, %cst_68 [1] : vector<8x32xf32> to vector<8xf32>
    %156 = vector.shape_cast %155 : vector<8xf32> to vector<8x1xf32>
    %cst_69 = arith.constant 3.200000e+01 : f32
    %157 = vector.broadcast %cst_69 : f32 to vector<8x1xf32>
    %158 = arith.divf %156, %157 : vector<8x1xf32>
    %159 = vector.broadcast %151 : vector<8x1xf32> to vector<8x32xf32>
    %160 = arith.subf %145, %159 : vector<8x32xf32>
    %cst_70 = arith.constant 9.99999974E-6 : f32
    %161 = vector.broadcast %cst_70 : f32 to vector<8x1xf32>
    %162 = arith.addf %158, %161 : vector<8x1xf32>
    %163 = math.rsqrt %162 : vector<8x1xf32>
    %164 = vector.broadcast %163 : vector<8x1xf32> to vector<8x32xf32>
    %165 = arith.mulf %160, %164 : vector<8x32xf32>
    %166 = vector.broadcast %146 : vector<1x32xf32> to vector<8x32xf32>
    %167 = arith.mulf %165, %166 : vector<8x32xf32>
    %168 = vector.broadcast %147 : vector<1x32xf32> to vector<8x32xf32>
    %169 = arith.addf %167, %168 : vector<8x32xf32>
    %c1_71 = arith.constant 1 : index
    %c0_72 = arith.constant 0 : index
    %c0_73 = arith.constant 0 : index
    %170 = vector.load %arg7[%c1_71, %c0_72, %c0_73] : memref<4x32x96xbf16, #tpu.memory_space<vmem>>, vector<1x32x96xbf16>
    %171 = vector.shape_cast %170 : vector<1x32x96xbf16> to vector<32x96xbf16>
    %172 = arith.truncf %169 : vector<8x32xf32> to vector<8x32xbf16>
    %cst_74 = arith.constant dense<0.000000e+00> : vector<8x96xf32>
    %173 = tpu.matmul %172, %171, %cst_74 {dimension_numbers = #tpu.dot_dimension_numbers<[1], [0], [0], [1], [0, 0, 1, 1], [], []>} : vector<8x32xbf16>, vector<32x96xbf16>, vector<8x96xf32> -> vector<8x96xf32>
    %c1_75 = arith.constant 1 : index
    %c0_76 = arith.constant 0 : index
    %174 = vector.load %arg8[%c1_75, %c0_76] : memref<4x96xf32, #tpu.memory_space<vmem>>, vector<1x96xf32>
    %175 = vector.broadcast %174 : vector<1x96xf32> to vector<8x96xf32>
    %176 = arith.addf %173, %175 : vector<8x96xf32>
    %177 = vector.extract_strided_slice %176 {offsets = [0, 0], sizes = [8, 16], strides = [1, 1]} : vector<8x96xf32> to vector<8x16xf32>
    %178 = vector.extract_strided_slice %176 {offsets = [0, 32], sizes = [8, 16], strides = [1, 1]} : vector<8x96xf32> to vector<8x16xf32>
    %179 = vector.extract_strided_slice %176 {offsets = [0, 64], sizes = [8, 16], strides = [1, 1]} : vector<8x96xf32> to vector<8x16xf32>
    %180 = arith.truncf %177 : vector<8x16xf32> to vector<8x16xbf16>
    %181 = arith.truncf %178 : vector<8x16xf32> to vector<8x16xbf16>
    %cst_77 = arith.constant dense<0.000000e+00> : vector<8x8xf32>
    %182 = tpu.matmul %180, %181, %cst_77 {dimension_numbers = #tpu.dot_dimension_numbers<[1], [1], [0], [0], [0, 0, 1, 0], [], []>} : vector<8x16xbf16>, vector<8x16xbf16>, vector<8x8xf32> -> vector<8x8xf32>
    %cst_78 = arith.constant -1.000000e+30 : f32
    %183 = vector.broadcast %cst_78 : f32 to vector<8x8xf32>
    %184 = arith.select %2, %182, %183 : vector<8x8xi1>, vector<8x8xf32>
    %cst_79 = arith.constant dense<0xFF800000> : vector<8xf32>
    %185 = vector.multi_reduction <maximumf>, %184, %cst_79 [1] : vector<8x8xf32> to vector<8xf32>
    %186 = vector.shape_cast %185 : vector<8xf32> to vector<8x1xf32>
    %187 = vector.broadcast %186 : vector<8x1xf32> to vector<8x8xf32>
    %188 = arith.subf %184, %187 : vector<8x8xf32>
    %189 = math.exp %188 : vector<8x8xf32>
    %cst_80 = arith.constant dense<0.000000e+00> : vector<8xf32>
    %190 = vector.multi_reduction <add>, %189, %cst_80 [1] : vector<8x8xf32> to vector<8xf32>
    %191 = vector.shape_cast %190 : vector<8xf32> to vector<8x1xf32>
    %192 = tpu.reciprocal %191 {approx = true} : vector<8x1xf32> -> vector<8x1xf32>
    %193 = vector.broadcast %192 : vector<8x1xf32> to vector<8x8xf32>
    %194 = arith.mulf %189, %193 : vector<8x8xf32>
    %195 = arith.truncf %194 : vector<8x8xf32> to vector<8x8xbf16>
    %196 = arith.truncf %179 : vector<8x16xf32> to vector<8x16xbf16>
    %cst_81 = arith.constant dense<0.000000e+00> : vector<8x16xf32>
    %197 = tpu.matmul %195, %196, %cst_81 {dimension_numbers = #tpu.dot_dimension_numbers<[1], [0], [0], [1], [0, 0, 1, 1], [], []>} : vector<8x8xbf16>, vector<8x16xbf16>, vector<8x16xf32> -> vector<8x16xf32>
    %198 = vector.extract_strided_slice %176 {offsets = [0, 16], sizes = [8, 16], strides = [1, 1]} : vector<8x96xf32> to vector<8x16xf32>
    %199 = vector.extract_strided_slice %176 {offsets = [0, 48], sizes = [8, 16], strides = [1, 1]} : vector<8x96xf32> to vector<8x16xf32>
    %200 = vector.extract_strided_slice %176 {offsets = [0, 80], sizes = [8, 16], strides = [1, 1]} : vector<8x96xf32> to vector<8x16xf32>
    %201 = arith.truncf %198 : vector<8x16xf32> to vector<8x16xbf16>
    %202 = arith.truncf %199 : vector<8x16xf32> to vector<8x16xbf16>
    %cst_82 = arith.constant dense<0.000000e+00> : vector<8x8xf32>
    %203 = tpu.matmul %201, %202, %cst_82 {dimension_numbers = #tpu.dot_dimension_numbers<[1], [1], [0], [0], [0, 0, 1, 0], [], []>} : vector<8x16xbf16>, vector<8x16xbf16>, vector<8x8xf32> -> vector<8x8xf32>
    %cst_83 = arith.constant -1.000000e+30 : f32
    %204 = vector.broadcast %cst_83 : f32 to vector<8x8xf32>
    %205 = arith.select %2, %203, %204 : vector<8x8xi1>, vector<8x8xf32>
    %cst_84 = arith.constant dense<0xFF800000> : vector<8xf32>
    %206 = vector.multi_reduction <maximumf>, %205, %cst_84 [1] : vector<8x8xf32> to vector<8xf32>
    %207 = vector.shape_cast %206 : vector<8xf32> to vector<8x1xf32>
    %208 = vector.broadcast %207 : vector<8x1xf32> to vector<8x8xf32>
    %209 = arith.subf %205, %208 : vector<8x8xf32>
    %210 = math.exp %209 : vector<8x8xf32>
    %cst_85 = arith.constant dense<0.000000e+00> : vector<8xf32>
    %211 = vector.multi_reduction <add>, %210, %cst_85 [1] : vector<8x8xf32> to vector<8xf32>
    %212 = vector.shape_cast %211 : vector<8xf32> to vector<8x1xf32>
    %213 = tpu.reciprocal %212 {approx = true} : vector<8x1xf32> -> vector<8x1xf32>
    %214 = vector.broadcast %213 : vector<8x1xf32> to vector<8x8xf32>
    %215 = arith.mulf %210, %214 : vector<8x8xf32>
    %216 = arith.truncf %215 : vector<8x8xf32> to vector<8x8xbf16>
    %217 = arith.truncf %200 : vector<8x16xf32> to vector<8x16xbf16>
    %cst_86 = arith.constant dense<0.000000e+00> : vector<8x16xf32>
    %218 = tpu.matmul %216, %217, %cst_86 {dimension_numbers = #tpu.dot_dimension_numbers<[1], [0], [0], [1], [0, 0, 1, 1], [], []>} : vector<8x8xbf16>, vector<8x16xbf16>, vector<8x16xf32> -> vector<8x16xf32>
    %219 = tpu.concatenate %197, %218 in 1 : vector<8x16xf32>, vector<8x16xf32> -> vector<8x32xf32>
    %c1_87 = arith.constant 1 : index
    %c0_88 = arith.constant 0 : index
    %c0_89 = arith.constant 0 : index
    %220 = vector.load %arg9[%c1_87, %c0_88, %c0_89] : memref<4x32x32xbf16, #tpu.memory_space<vmem>>, vector<1x32x32xbf16>
    %221 = vector.shape_cast %220 : vector<1x32x32xbf16> to vector<32x32xbf16>
    %222 = arith.truncf %219 : vector<8x32xf32> to vector<8x32xbf16>
    %cst_90 = arith.constant dense<0.000000e+00> : vector<8x32xf32>
    %223 = tpu.matmul %222, %221, %cst_90 {dimension_numbers = #tpu.dot_dimension_numbers<[1], [0], [0], [1], [0, 0, 1, 1], [], []>} : vector<8x32xbf16>, vector<32x32xbf16>, vector<8x32xf32> -> vector<8x32xf32>
    %224 = arith.addf %145, %223 : vector<8x32xf32>
    %c1_91 = arith.constant 1 : index
    %c0_92 = arith.constant 0 : index
    %225 = vector.load %arg10[%c1_91, %c0_92] : memref<4x32xf32, #tpu.memory_space<vmem>>, vector<1x32xf32>
    %226 = vector.broadcast %225 : vector<1x32xf32> to vector<8x32xf32>
    %227 = arith.addf %224, %226 : vector<8x32xf32>
    %c1_93 = arith.constant 1 : index
    %c0_94 = arith.constant 0 : index
    %228 = vector.load %arg11[%c1_93, %c0_94] : memref<4x32xf32, #tpu.memory_space<vmem>>, vector<1x32xf32>
    %c1_95 = arith.constant 1 : index
    %c0_96 = arith.constant 0 : index
    %229 = vector.load %arg12[%c1_95, %c0_96] : memref<4x32xf32, #tpu.memory_space<vmem>>, vector<1x32xf32>
    %cst_97 = arith.constant dense<0.000000e+00> : vector<8xf32>
    %230 = vector.multi_reduction <add>, %227, %cst_97 [1] : vector<8x32xf32> to vector<8xf32>
    %231 = vector.shape_cast %230 : vector<8xf32> to vector<8x1xf32>
    %cst_98 = arith.constant 3.200000e+01 : f32
    %232 = vector.broadcast %cst_98 : f32 to vector<8x1xf32>
    %233 = arith.divf %231, %232 : vector<8x1xf32>
    %234 = vector.broadcast %233 : vector<8x1xf32> to vector<8x32xf32>
    %235 = arith.subf %227, %234 : vector<8x32xf32>
    %236 = arith.mulf %235, %235 : vector<8x32xf32>
    %cst_99 = arith.constant dense<0.000000e+00> : vector<8xf32>
    %237 = vector.multi_reduction <add>, %236, %cst_99 [1] : vector<8x32xf32> to vector<8xf32>
    %238 = vector.shape_cast %237 : vector<8xf32> to vector<8x1xf32>
    %cst_100 = arith.constant 3.200000e+01 : f32
    %239 = vector.broadcast %cst_100 : f32 to vector<8x1xf32>
    %240 = arith.divf %238, %239 : vector<8x1xf32>
    %241 = vector.broadcast %233 : vector<8x1xf32> to vector<8x32xf32>
    %242 = arith.subf %227, %241 : vector<8x32xf32>
    %cst_101 = arith.constant 9.99999974E-6 : f32
    %243 = vector.broadcast %cst_101 : f32 to vector<8x1xf32>
    %244 = arith.addf %240, %243 : vector<8x1xf32>
    %245 = math.rsqrt %244 : vector<8x1xf32>
    %246 = vector.broadcast %245 : vector<8x1xf32> to vector<8x32xf32>
    %247 = arith.mulf %242, %246 : vector<8x32xf32>
    %248 = vector.broadcast %228 : vector<1x32xf32> to vector<8x32xf32>
    %249 = arith.mulf %247, %248 : vector<8x32xf32>
    %250 = vector.broadcast %229 : vector<1x32xf32> to vector<8x32xf32>
    %251 = arith.addf %249, %250 : vector<8x32xf32>
    %c1_102 = arith.constant 1 : index
    %c0_103 = arith.constant 0 : index
    %c0_104 = arith.constant 0 : index
    %252 = vector.load %arg13[%c1_102, %c0_103, %c0_104] : memref<4x32x128xbf16, #tpu.memory_space<vmem>>, vector<1x32x128xbf16>
    %253 = vector.shape_cast %252 : vector<1x32x128xbf16> to vector<32x128xbf16>
    %254 = arith.truncf %251 : vector<8x32xf32> to vector<8x32xbf16>
    %cst_105 = arith.constant dense<0.000000e+00> : vector<8x128xf32>
    %255 = tpu.matmul %254, %253, %cst_105 {dimension_numbers = #tpu.dot_dimension_numbers<[1], [0], [0], [1], [0, 0, 1, 1], [], []>} : vector<8x32xbf16>, vector<32x128xbf16>, vector<8x128xf32> -> vector<8x128xf32>
    %c1_106 = arith.constant 1 : index
    %c0_107 = arith.constant 0 : index
    %256 = vector.load %arg14[%c1_106, %c0_107] : memref<4x128xf32, #tpu.memory_space<vmem>>, vector<1x128xf32>
    %257 = vector.broadcast %256 : vector<1x128xf32> to vector<8x128xf32>
    %258 = arith.addf %255, %257 : vector<8x128xf32>
    %259 = arith.mulf %258, %258 : vector<8x128xf32>
    %260 = arith.mulf %258, %259 : vector<8x128xf32>
    %cst_108 = arith.constant 4.471500e-02 : f32
    %261 = vector.broadcast %cst_108 : f32 to vector<8x128xf32>
    %262 = arith.mulf %261, %260 : vector<8x128xf32>
    %263 = arith.addf %258, %262 : vector<8x128xf32>
    %cst_109 = arith.constant 0.797884583 : f32
    %264 = vector.broadcast %cst_109 : f32 to vector<8x128xf32>
    %265 = arith.mulf %264, %263 : vector<8x128xf32>
    %266 = math.tanh %265 : vector<8x128xf32>
    %cst_110 = arith.constant 1.000000e+00 : f32
    %267 = vector.broadcast %cst_110 : f32 to vector<8x128xf32>
    %268 = arith.addf %267, %266 : vector<8x128xf32>
    %cst_111 = arith.constant 5.000000e-01 : f32
    %269 = vector.broadcast %cst_111 : f32 to vector<8x128xf32>
    %270 = arith.mulf %269, %268 : vector<8x128xf32>
    %271 = arith.mulf %258, %270 : vector<8x128xf32>
    %c1_112 = arith.constant 1 : index
    %c0_113 = arith.constant 0 : index
    %c0_114 = arith.constant 0 : index
    %272 = vector.load %arg15[%c1_112, %c0_113, %c0_114] : memref<4x128x32xbf16, #tpu.memory_space<vmem>>, vector<1x128x32xbf16>
    %273 = vector.shape_cast %272 : vector<1x128x32xbf16> to vector<128x32xbf16>
    %274 = arith.truncf %271 : vector<8x128xf32> to vector<8x128xbf16>
    %cst_115 = arith.constant dense<0.000000e+00> : vector<8x32xf32>
    %275 = tpu.matmul %274, %273, %cst_115 {dimension_numbers = #tpu.dot_dimension_numbers<[1], [0], [0], [1], [0, 0, 1, 1], [], []>} : vector<8x128xbf16>, vector<128x32xbf16>, vector<8x32xf32> -> vector<8x32xf32>
    %276 = arith.addf %227, %275 : vector<8x32xf32>
    %c1_116 = arith.constant 1 : index
    %c0_117 = arith.constant 0 : index
    %277 = vector.load %arg16[%c1_116, %c0_117] : memref<4x32xf32, #tpu.memory_space<vmem>>, vector<1x32xf32>
    %278 = vector.broadcast %277 : vector<1x32xf32> to vector<8x32xf32>
    %279 = arith.addf %276, %278 : vector<8x32xf32>
    %c2 = arith.constant 2 : index
    %c0_118 = arith.constant 0 : index
    %280 = vector.load %arg5[%c2, %c0_118] : memref<4x32xf32, #tpu.memory_space<vmem>>, vector<1x32xf32>
    %c2_119 = arith.constant 2 : index
    %c0_120 = arith.constant 0 : index
    %281 = vector.load %arg6[%c2_119, %c0_120] : memref<4x32xf32, #tpu.memory_space<vmem>>, vector<1x32xf32>
    %cst_121 = arith.constant dense<0.000000e+00> : vector<8xf32>
    %282 = vector.multi_reduction <add>, %279, %cst_121 [1] : vector<8x32xf32> to vector<8xf32>
    %283 = vector.shape_cast %282 : vector<8xf32> to vector<8x1xf32>
    %cst_122 = arith.constant 3.200000e+01 : f32
    %284 = vector.broadcast %cst_122 : f32 to vector<8x1xf32>
    %285 = arith.divf %283, %284 : vector<8x1xf32>
    %286 = vector.broadcast %285 : vector<8x1xf32> to vector<8x32xf32>
    %287 = arith.subf %279, %286 : vector<8x32xf32>
    %288 = arith.mulf %287, %287 : vector<8x32xf32>
    %cst_123 = arith.constant dense<0.000000e+00> : vector<8xf32>
    %289 = vector.multi_reduction <add>, %288, %cst_123 [1] : vector<8x32xf32> to vector<8xf32>
    %290 = vector.shape_cast %289 : vector<8xf32> to vector<8x1xf32>
    %cst_124 = arith.constant 3.200000e+01 : f32
    %291 = vector.broadcast %cst_124 : f32 to vector<8x1xf32>
    %292 = arith.divf %290, %291 : vector<8x1xf32>
    %293 = vector.broadcast %285 : vector<8x1xf32> to vector<8x32xf32>
    %294 = arith.subf %279, %293 : vector<8x32xf32>
    %cst_125 = arith.constant 9.99999974E-6 : f32
    %295 = vector.broadcast %cst_125 : f32 to vector<8x1xf32>
    %296 = arith.addf %292, %295 : vector<8x1xf32>
    %297 = math.rsqrt %296 : vector<8x1xf32>
    %298 = vector.broadcast %297 : vector<8x1xf32> to vector<8x32xf32>
    %299 = arith.mulf %294, %298 : vector<8x32xf32>
    %300 = vector.broadcast %280 : vector<1x32xf32> to vector<8x32xf32>
    %301 = arith.mulf %299, %300 : vector<8x32xf32>
    %302 = vector.broadcast %281 : vector<1x32xf32> to vector<8x32xf32>
    %303 = arith.addf %301, %302 : vector<8x32xf32>
    %c2_126 = arith.constant 2 : index
    %c0_127 = arith.constant 0 : index
    %c0_128 = arith.constant 0 : index
    %304 = vector.load %arg7[%c2_126, %c0_127, %c0_128] : memref<4x32x96xbf16, #tpu.memory_space<vmem>>, vector<1x32x96xbf16>
    %305 = vector.shape_cast %304 : vector<1x32x96xbf16> to vector<32x96xbf16>
    %306 = arith.truncf %303 : vector<8x32xf32> to vector<8x32xbf16>
    %cst_129 = arith.constant dense<0.000000e+00> : vector<8x96xf32>
    %307 = tpu.matmul %306, %305, %cst_129 {dimension_numbers = #tpu.dot_dimension_numbers<[1], [0], [0], [1], [0, 0, 1, 1], [], []>} : vector<8x32xbf16>, vector<32x96xbf16>, vector<8x96xf32> -> vector<8x96xf32>
    %c2_130 = arith.constant 2 : index
    %c0_131 = arith.constant 0 : index
    %308 = vector.load %arg8[%c2_130, %c0_131] : memref<4x96xf32, #tpu.memory_space<vmem>>, vector<1x96xf32>
    %309 = vector.broadcast %308 : vector<1x96xf32> to vector<8x96xf32>
    %310 = arith.addf %307, %309 : vector<8x96xf32>
    %311 = vector.extract_strided_slice %310 {offsets = [0, 0], sizes = [8, 16], strides = [1, 1]} : vector<8x96xf32> to vector<8x16xf32>
    %312 = vector.extract_strided_slice %310 {offsets = [0, 32], sizes = [8, 16], strides = [1, 1]} : vector<8x96xf32> to vector<8x16xf32>
    %313 = vector.extract_strided_slice %310 {offsets = [0, 64], sizes = [8, 16], strides = [1, 1]} : vector<8x96xf32> to vector<8x16xf32>
    %314 = arith.truncf %311 : vector<8x16xf32> to vector<8x16xbf16>
    %315 = arith.truncf %312 : vector<8x16xf32> to vector<8x16xbf16>
    %cst_132 = arith.constant dense<0.000000e+00> : vector<8x8xf32>
    %316 = tpu.matmul %314, %315, %cst_132 {dimension_numbers = #tpu.dot_dimension_numbers<[1], [1], [0], [0], [0, 0, 1, 0], [], []>} : vector<8x16xbf16>, vector<8x16xbf16>, vector<8x8xf32> -> vector<8x8xf32>
    %cst_133 = arith.constant -1.000000e+30 : f32
    %317 = vector.broadcast %cst_133 : f32 to vector<8x8xf32>
    %318 = arith.select %2, %316, %317 : vector<8x8xi1>, vector<8x8xf32>
    %cst_134 = arith.constant dense<0xFF800000> : vector<8xf32>
    %319 = vector.multi_reduction <maximumf>, %318, %cst_134 [1] : vector<8x8xf32> to vector<8xf32>
    %320 = vector.shape_cast %319 : vector<8xf32> to vector<8x1xf32>
    %321 = vector.broadcast %320 : vector<8x1xf32> to vector<8x8xf32>
    %322 = arith.subf %318, %321 : vector<8x8xf32>
    %323 = math.exp %322 : vector<8x8xf32>
    %cst_135 = arith.constant dense<0.000000e+00> : vector<8xf32>
    %324 = vector.multi_reduction <add>, %323, %cst_135 [1] : vector<8x8xf32> to vector<8xf32>
    %325 = vector.shape_cast %324 : vector<8xf32> to vector<8x1xf32>
    %326 = tpu.reciprocal %325 {approx = true} : vector<8x1xf32> -> vector<8x1xf32>
    %327 = vector.broadcast %326 : vector<8x1xf32> to vector<8x8xf32>
    %328 = arith.mulf %323, %327 : vector<8x8xf32>
    %329 = arith.truncf %328 : vector<8x8xf32> to vector<8x8xbf16>
    %330 = arith.truncf %313 : vector<8x16xf32> to vector<8x16xbf16>
    %cst_136 = arith.constant dense<0.000000e+00> : vector<8x16xf32>
    %331 = tpu.matmul %329, %330, %cst_136 {dimension_numbers = #tpu.dot_dimension_numbers<[1], [0], [0], [1], [0, 0, 1, 1], [], []>} : vector<8x8xbf16>, vector<8x16xbf16>, vector<8x16xf32> -> vector<8x16xf32>
    %332 = vector.extract_strided_slice %310 {offsets = [0, 16], sizes = [8, 16], strides = [1, 1]} : vector<8x96xf32> to vector<8x16xf32>
    %333 = vector.extract_strided_slice %310 {offsets = [0, 48], sizes = [8, 16], strides = [1, 1]} : vector<8x96xf32> to vector<8x16xf32>
    %334 = vector.extract_strided_slice %310 {offsets = [0, 80], sizes = [8, 16], strides = [1, 1]} : vector<8x96xf32> to vector<8x16xf32>
    %335 = arith.truncf %332 : vector<8x16xf32> to vector<8x16xbf16>
    %336 = arith.truncf %333 : vector<8x16xf32> to vector<8x16xbf16>
    %cst_137 = arith.constant dense<0.000000e+00> : vector<8x8xf32>
    %337 = tpu.matmul %335, %336, %cst_137 {dimension_numbers = #tpu.dot_dimension_numbers<[1], [1], [0], [0], [0, 0, 1, 0], [], []>} : vector<8x16xbf16>, vector<8x16xbf16>, vector<8x8xf32> -> vector<8x8xf32>
    %cst_138 = arith.constant -1.000000e+30 : f32
    %338 = vector.broadcast %cst_138 : f32 to vector<8x8xf32>
    %339 = arith.select %2, %337, %338 : vector<8x8xi1>, vector<8x8xf32>
    %cst_139 = arith.constant dense<0xFF800000> : vector<8xf32>
    %340 = vector.multi_reduction <maximumf>, %339, %cst_139 [1] : vector<8x8xf32> to vector<8xf32>
    %341 = vector.shape_cast %340 : vector<8xf32> to vector<8x1xf32>
    %342 = vector.broadcast %341 : vector<8x1xf32> to vector<8x8xf32>
    %343 = arith.subf %339, %342 : vector<8x8xf32>
    %344 = math.exp %343 : vector<8x8xf32>
    %cst_140 = arith.constant dense<0.000000e+00> : vector<8xf32>
    %345 = vector.multi_reduction <add>, %344, %cst_140 [1] : vector<8x8xf32> to vector<8xf32>
    %346 = vector.shape_cast %345 : vector<8xf32> to vector<8x1xf32>
    %347 = tpu.reciprocal %346 {approx = true} : vector<8x1xf32> -> vector<8x1xf32>
    %348 = vector.broadcast %347 : vector<8x1xf32> to vector<8x8xf32>
    %349 = arith.mulf %344, %348 : vector<8x8xf32>
    %350 = arith.truncf %349 : vector<8x8xf32> to vector<8x8xbf16>
    %351 = arith.truncf %334 : vector<8x16xf32> to vector<8x16xbf16>
    %cst_141 = arith.constant dense<0.000000e+00> : vector<8x16xf32>
    %352 = tpu.matmul %350, %351, %cst_141 {dimension_numbers = #tpu.dot_dimension_numbers<[1], [0], [0], [1], [0, 0, 1, 1], [], []>} : vector<8x8xbf16>, vector<8x16xbf16>, vector<8x16xf32> -> vector<8x16xf32>
    %353 = tpu.concatenate %331, %352 in 1 : vector<8x16xf32>, vector<8x16xf32> -> vector<8x32xf32>
    %c2_142 = arith.constant 2 : index
    %c0_143 = arith.constant 0 : index
    %c0_144 = arith.constant 0 : index
    %354 = vector.load %arg9[%c2_142, %c0_143, %c0_144] : memref<4x32x32xbf16, #tpu.memory_space<vmem>>, vector<1x32x32xbf16>
    %355 = vector.shape_cast %354 : vector<1x32x32xbf16> to vector<32x32xbf16>
    %356 = arith.truncf %353 : vector<8x32xf32> to vector<8x32xbf16>
    %cst_145 = arith.constant dense<0.000000e+00> : vector<8x32xf32>
    %357 = tpu.matmul %356, %355, %cst_145 {dimension_numbers = #tpu.dot_dimension_numbers<[1], [0], [0], [1], [0, 0, 1, 1], [], []>} : vector<8x32xbf16>, vector<32x32xbf16>, vector<8x32xf32> -> vector<8x32xf32>
    %358 = arith.addf %279, %357 : vector<8x32xf32>
    %c2_146 = arith.constant 2 : index
    %c0_147 = arith.constant 0 : index
    %359 = vector.load %arg10[%c2_146, %c0_147] : memref<4x32xf32, #tpu.memory_space<vmem>>, vector<1x32xf32>
    %360 = vector.broadcast %359 : vector<1x32xf32> to vector<8x32xf32>
    %361 = arith.addf %358, %360 : vector<8x32xf32>
    %c2_148 = arith.constant 2 : index
    %c0_149 = arith.constant 0 : index
    %362 = vector.load %arg11[%c2_148, %c0_149] : memref<4x32xf32, #tpu.memory_space<vmem>>, vector<1x32xf32>
    %c2_150 = arith.constant 2 : index
    %c0_151 = arith.constant 0 : index
    %363 = vector.load %arg12[%c2_150, %c0_151] : memref<4x32xf32, #tpu.memory_space<vmem>>, vector<1x32xf32>
    %cst_152 = arith.constant dense<0.000000e+00> : vector<8xf32>
    %364 = vector.multi_reduction <add>, %361, %cst_152 [1] : vector<8x32xf32> to vector<8xf32>
    %365 = vector.shape_cast %364 : vector<8xf32> to vector<8x1xf32>
    %cst_153 = arith.constant 3.200000e+01 : f32
    %366 = vector.broadcast %cst_153 : f32 to vector<8x1xf32>
    %367 = arith.divf %365, %366 : vector<8x1xf32>
    %368 = vector.broadcast %367 : vector<8x1xf32> to vector<8x32xf32>
    %369 = arith.subf %361, %368 : vector<8x32xf32>
    %370 = arith.mulf %369, %369 : vector<8x32xf32>
    %cst_154 = arith.constant dense<0.000000e+00> : vector<8xf32>
    %371 = vector.multi_reduction <add>, %370, %cst_154 [1] : vector<8x32xf32> to vector<8xf32>
    %372 = vector.shape_cast %371 : vector<8xf32> to vector<8x1xf32>
    %cst_155 = arith.constant 3.200000e+01 : f32
    %373 = vector.broadcast %cst_155 : f32 to vector<8x1xf32>
    %374 = arith.divf %372, %373 : vector<8x1xf32>
    %375 = vector.broadcast %367 : vector<8x1xf32> to vector<8x32xf32>
    %376 = arith.subf %361, %375 : vector<8x32xf32>
    %cst_156 = arith.constant 9.99999974E-6 : f32
    %377 = vector.broadcast %cst_156 : f32 to vector<8x1xf32>
    %378 = arith.addf %374, %377 : vector<8x1xf32>
    %379 = math.rsqrt %378 : vector<8x1xf32>
    %380 = vector.broadcast %379 : vector<8x1xf32> to vector<8x32xf32>
    %381 = arith.mulf %376, %380 : vector<8x32xf32>
    %382 = vector.broadcast %362 : vector<1x32xf32> to vector<8x32xf32>
    %383 = arith.mulf %381, %382 : vector<8x32xf32>
    %384 = vector.broadcast %363 : vector<1x32xf32> to vector<8x32xf32>
    %385 = arith.addf %383, %384 : vector<8x32xf32>
    %c2_157 = arith.constant 2 : index
    %c0_158 = arith.constant 0 : index
    %c0_159 = arith.constant 0 : index
    %386 = vector.load %arg13[%c2_157, %c0_158, %c0_159] : memref<4x32x128xbf16, #tpu.memory_space<vmem>>, vector<1x32x128xbf16>
    %387 = vector.shape_cast %386 : vector<1x32x128xbf16> to vector<32x128xbf16>
    %388 = arith.truncf %385 : vector<8x32xf32> to vector<8x32xbf16>
    %cst_160 = arith.constant dense<0.000000e+00> : vector<8x128xf32>
    %389 = tpu.matmul %388, %387, %cst_160 {dimension_numbers = #tpu.dot_dimension_numbers<[1], [0], [0], [1], [0, 0, 1, 1], [], []>} : vector<8x32xbf16>, vector<32x128xbf16>, vector<8x128xf32> -> vector<8x128xf32>
    %c2_161 = arith.constant 2 : index
    %c0_162 = arith.constant 0 : index
    %390 = vector.load %arg14[%c2_161, %c0_162] : memref<4x128xf32, #tpu.memory_space<vmem>>, vector<1x128xf32>
    %391 = vector.broadcast %390 : vector<1x128xf32> to vector<8x128xf32>
    %392 = arith.addf %389, %391 : vector<8x128xf32>
    %393 = arith.mulf %392, %392 : vector<8x128xf32>
    %394 = arith.mulf %392, %393 : vector<8x128xf32>
    %cst_163 = arith.constant 4.471500e-02 : f32
    %395 = vector.broadcast %cst_163 : f32 to vector<8x128xf32>
    %396 = arith.mulf %395, %394 : vector<8x128xf32>
    %397 = arith.addf %392, %396 : vector<8x128xf32>
    %cst_164 = arith.constant 0.797884583 : f32
    %398 = vector.broadcast %cst_164 : f32 to vector<8x128xf32>
    %399 = arith.mulf %398, %397 : vector<8x128xf32>
    %400 = math.tanh %399 : vector<8x128xf32>
    %cst_165 = arith.constant 1.000000e+00 : f32
    %401 = vector.broadcast %cst_165 : f32 to vector<8x128xf32>
    %402 = arith.addf %401, %400 : vector<8x128xf32>
    %cst_166 = arith.constant 5.000000e-01 : f32
    %403 = vector.broadcast %cst_166 : f32 to vector<8x128xf32>
    %404 = arith.mulf %403, %402 : vector<8x128xf32>
    %405 = arith.mulf %392, %404 : vector<8x128xf32>
    %c2_167 = arith.constant 2 : index
    %c0_168 = arith.constant 0 : index
    %c0_169 = arith.constant 0 : index
    %406 = vector.load %arg15[%c2_167, %c0_168, %c0_169] : memref<4x128x32xbf16, #tpu.memory_space<vmem>>, vector<1x128x32xbf16>
    %407 = vector.shape_cast %406 : vector<1x128x32xbf16> to vector<128x32xbf16>
    %408 = arith.truncf %405 : vector<8x128xf32> to vector<8x128xbf16>
    %cst_170 = arith.constant dense<0.000000e+00> : vector<8x32xf32>
    %409 = tpu.matmul %408, %407, %cst_170 {dimension_numbers = #tpu.dot_dimension_numbers<[1], [0], [0], [1], [0, 0, 1, 1], [], []>} : vector<8x128xbf16>, vector<128x32xbf16>, vector<8x32xf32> -> vector<8x32xf32>
    %410 = arith.addf %361, %409 : vector<8x32xf32>
    %c2_171 = arith.constant 2 : index
    %c0_172 = arith.constant 0 : index
    %411 = vector.load %arg16[%c2_171, %c0_172] : memref<4x32xf32, #tpu.memory_space<vmem>>, vector<1x32xf32>
    %412 = vector.broadcast %411 : vector<1x32xf32> to vector<8x32xf32>
    %413 = arith.addf %410, %412 : vector<8x32xf32>
    %c3 = arith.constant 3 : index
    %c0_173 = arith.constant 0 : index
    %414 = vector.load %arg5[%c3, %c0_173] : memref<4x32xf32, #tpu.memory_space<vmem>>, vector<1x32xf32>
    %c3_174 = arith.constant 3 : index
    %c0_175 = arith.constant 0 : index
    %415 = vector.load %arg6[%c3_174, %c0_175] : memref<4x32xf32, #tpu.memory_space<vmem>>, vector<1x32xf32>
    %cst_176 = arith.constant dense<0.000000e+00> : vector<8xf32>
    %416 = vector.multi_reduction <add>, %413, %cst_176 [1] : vector<8x32xf32> to vector<8xf32>
    %417 = vector.shape_cast %416 : vector<8xf32> to vector<8x1xf32>
    %cst_177 = arith.constant 3.200000e+01 : f32
    %418 = vector.broadcast %cst_177 : f32 to vector<8x1xf32>
    %419 = arith.divf %417, %418 : vector<8x1xf32>
    %420 = vector.broadcast %419 : vector<8x1xf32> to vector<8x32xf32>
    %421 = arith.subf %413, %420 : vector<8x32xf32>
    %422 = arith.mulf %421, %421 : vector<8x32xf32>
    %cst_178 = arith.constant dense<0.000000e+00> : vector<8xf32>
    %423 = vector.multi_reduction <add>, %422, %cst_178 [1] : vector<8x32xf32> to vector<8xf32>
    %424 = vector.shape_cast %423 : vector<8xf32> to vector<8x1xf32>
    %cst_179 = arith.constant 3.200000e+01 : f32
    %425 = vector.broadcast %cst_179 : f32 to vector<8x1xf32>
    %426 = arith.divf %424, %425 : vector<8x1xf32>
    %427 = vector.broadcast %419 : vector<8x1xf32> to vector<8x32xf32>
    %428 = arith.subf %413, %427 : vector<8x32xf32>
    %cst_180 = arith.constant 9.99999974E-6 : f32
    %429 = vector.broadcast %cst_180 : f32 to vector<8x1xf32>
    %430 = arith.addf %426, %429 : vector<8x1xf32>
    %431 = math.rsqrt %430 : vector<8x1xf32>
    %432 = vector.broadcast %431 : vector<8x1xf32> to vector<8x32xf32>
    %433 = arith.mulf %428, %432 : vector<8x32xf32>
    %434 = vector.broadcast %414 : vector<1x32xf32> to vector<8x32xf32>
    %435 = arith.mulf %433, %434 : vector<8x32xf32>
    %436 = vector.broadcast %415 : vector<1x32xf32> to vector<8x32xf32>
    %437 = arith.addf %435, %436 : vector<8x32xf32>
    %c3_181 = arith.constant 3 : index
    %c0_182 = arith.constant 0 : index
    %c0_183 = arith.constant 0 : index
    %438 = vector.load %arg7[%c3_181, %c0_182, %c0_183] : memref<4x32x96xbf16, #tpu.memory_space<vmem>>, vector<1x32x96xbf16>
    %439 = vector.shape_cast %438 : vector<1x32x96xbf16> to vector<32x96xbf16>
    %440 = arith.truncf %437 : vector<8x32xf32> to vector<8x32xbf16>
    %cst_184 = arith.constant dense<0.000000e+00> : vector<8x96xf32>
    %441 = tpu.matmul %440, %439, %cst_184 {dimension_numbers = #tpu.dot_dimension_numbers<[1], [0], [0], [1], [0, 0, 1, 1], [], []>} : vector<8x32xbf16>, vector<32x96xbf16>, vector<8x96xf32> -> vector<8x96xf32>
    %c3_185 = arith.constant 3 : index
    %c0_186 = arith.constant 0 : index
    %442 = vector.load %arg8[%c3_185, %c0_186] : memref<4x96xf32, #tpu.memory_space<vmem>>, vector<1x96xf32>
    %443 = vector.broadcast %442 : vector<1x96xf32> to vector<8x96xf32>
    %444 = arith.addf %441, %443 : vector<8x96xf32>
    %445 = vector.extract_strided_slice %444 {offsets = [0, 0], sizes = [8, 16], strides = [1, 1]} : vector<8x96xf32> to vector<8x16xf32>
    %446 = vector.extract_strided_slice %444 {offsets = [0, 32], sizes = [8, 16], strides = [1, 1]} : vector<8x96xf32> to vector<8x16xf32>
    %447 = vector.extract_strided_slice %444 {offsets = [0, 64], sizes = [8, 16], strides = [1, 1]} : vector<8x96xf32> to vector<8x16xf32>
    %448 = arith.truncf %445 : vector<8x16xf32> to vector<8x16xbf16>
    %449 = arith.truncf %446 : vector<8x16xf32> to vector<8x16xbf16>
    %cst_187 = arith.constant dense<0.000000e+00> : vector<8x8xf32>
    %450 = tpu.matmul %448, %449, %cst_187 {dimension_numbers = #tpu.dot_dimension_numbers<[1], [1], [0], [0], [0, 0, 1, 0], [], []>} : vector<8x16xbf16>, vector<8x16xbf16>, vector<8x8xf32> -> vector<8x8xf32>
    %cst_188 = arith.constant -1.000000e+30 : f32
    %451 = vector.broadcast %cst_188 : f32 to vector<8x8xf32>
    %452 = arith.select %2, %450, %451 : vector<8x8xi1>, vector<8x8xf32>
    %cst_189 = arith.constant dense<0xFF800000> : vector<8xf32>
    %453 = vector.multi_reduction <maximumf>, %452, %cst_189 [1] : vector<8x8xf32> to vector<8xf32>
    %454 = vector.shape_cast %453 : vector<8xf32> to vector<8x1xf32>
    %455 = vector.broadcast %454 : vector<8x1xf32> to vector<8x8xf32>
    %456 = arith.subf %452, %455 : vector<8x8xf32>
    %457 = math.exp %456 : vector<8x8xf32>
    %cst_190 = arith.constant dense<0.000000e+00> : vector<8xf32>
    %458 = vector.multi_reduction <add>, %457, %cst_190 [1] : vector<8x8xf32> to vector<8xf32>
    %459 = vector.shape_cast %458 : vector<8xf32> to vector<8x1xf32>
    %460 = tpu.reciprocal %459 {approx = true} : vector<8x1xf32> -> vector<8x1xf32>
    %461 = vector.broadcast %460 : vector<8x1xf32> to vector<8x8xf32>
    %462 = arith.mulf %457, %461 : vector<8x8xf32>
    %463 = arith.truncf %462 : vector<8x8xf32> to vector<8x8xbf16>
    %464 = arith.truncf %447 : vector<8x16xf32> to vector<8x16xbf16>
    %cst_191 = arith.constant dense<0.000000e+00> : vector<8x16xf32>
    %465 = tpu.matmul %463, %464, %cst_191 {dimension_numbers = #tpu.dot_dimension_numbers<[1], [0], [0], [1], [0, 0, 1, 1], [], []>} : vector<8x8xbf16>, vector<8x16xbf16>, vector<8x16xf32> -> vector<8x16xf32>
    %466 = vector.extract_strided_slice %444 {offsets = [0, 16], sizes = [8, 16], strides = [1, 1]} : vector<8x96xf32> to vector<8x16xf32>
    %467 = vector.extract_strided_slice %444 {offsets = [0, 48], sizes = [8, 16], strides = [1, 1]} : vector<8x96xf32> to vector<8x16xf32>
    %468 = vector.extract_strided_slice %444 {offsets = [0, 80], sizes = [8, 16], strides = [1, 1]} : vector<8x96xf32> to vector<8x16xf32>
    %469 = arith.truncf %466 : vector<8x16xf32> to vector<8x16xbf16>
    %470 = arith.truncf %467 : vector<8x16xf32> to vector<8x16xbf16>
    %cst_192 = arith.constant dense<0.000000e+00> : vector<8x8xf32>
    %471 = tpu.matmul %469, %470, %cst_192 {dimension_numbers = #tpu.dot_dimension_numbers<[1], [1], [0], [0], [0, 0, 1, 0], [], []>} : vector<8x16xbf16>, vector<8x16xbf16>, vector<8x8xf32> -> vector<8x8xf32>
    %cst_193 = arith.constant -1.000000e+30 : f32
    %472 = vector.broadcast %cst_193 : f32 to vector<8x8xf32>
    %473 = arith.select %2, %471, %472 : vector<8x8xi1>, vector<8x8xf32>
    %cst_194 = arith.constant dense<0xFF800000> : vector<8xf32>
    %474 = vector.multi_reduction <maximumf>, %473, %cst_194 [1] : vector<8x8xf32> to vector<8xf32>
    %475 = vector.shape_cast %474 : vector<8xf32> to vector<8x1xf32>
    %476 = vector.broadcast %475 : vector<8x1xf32> to vector<8x8xf32>
    %477 = arith.subf %473, %476 : vector<8x8xf32>
    %478 = math.exp %477 : vector<8x8xf32>
    %cst_195 = arith.constant dense<0.000000e+00> : vector<8xf32>
    %479 = vector.multi_reduction <add>, %478, %cst_195 [1] : vector<8x8xf32> to vector<8xf32>
    %480 = vector.shape_cast %479 : vector<8xf32> to vector<8x1xf32>
    %481 = tpu.reciprocal %480 {approx = true} : vector<8x1xf32> -> vector<8x1xf32>
    %482 = vector.broadcast %481 : vector<8x1xf32> to vector<8x8xf32>
    %483 = arith.mulf %478, %482 : vector<8x8xf32>
    %484 = arith.truncf %483 : vector<8x8xf32> to vector<8x8xbf16>
    %485 = arith.truncf %468 : vector<8x16xf32> to vector<8x16xbf16>
    %cst_196 = arith.constant dense<0.000000e+00> : vector<8x16xf32>
    %486 = tpu.matmul %484, %485, %cst_196 {dimension_numbers = #tpu.dot_dimension_numbers<[1], [0], [0], [1], [0, 0, 1, 1], [], []>} : vector<8x8xbf16>, vector<8x16xbf16>, vector<8x16xf32> -> vector<8x16xf32>
    %487 = tpu.concatenate %465, %486 in 1 : vector<8x16xf32>, vector<8x16xf32> -> vector<8x32xf32>
    %c3_197 = arith.constant 3 : index
    %c0_198 = arith.constant 0 : index
    %c0_199 = arith.constant 0 : index
    %488 = vector.load %arg9[%c3_197, %c0_198, %c0_199] : memref<4x32x32xbf16, #tpu.memory_space<vmem>>, vector<1x32x32xbf16>
    %489 = vector.shape_cast %488 : vector<1x32x32xbf16> to vector<32x32xbf16>
    %490 = arith.truncf %487 : vector<8x32xf32> to vector<8x32xbf16>
    %cst_200 = arith.constant dense<0.000000e+00> : vector<8x32xf32>
    %491 = tpu.matmul %490, %489, %cst_200 {dimension_numbers = #tpu.dot_dimension_numbers<[1], [0], [0], [1], [0, 0, 1, 1], [], []>} : vector<8x32xbf16>, vector<32x32xbf16>, vector<8x32xf32> -> vector<8x32xf32>
    %492 = arith.addf %413, %491 : vector<8x32xf32>
    %c3_201 = arith.constant 3 : index
    %c0_202 = arith.constant 0 : index
    %493 = vector.load %arg10[%c3_201, %c0_202] : memref<4x32xf32, #tpu.memory_space<vmem>>, vector<1x32xf32>
    %494 = vector.broadcast %493 : vector<1x32xf32> to vector<8x32xf32>
    %495 = arith.addf %492, %494 : vector<8x32xf32>
    %c3_203 = arith.constant 3 : index
    %c0_204 = arith.constant 0 : index
    %496 = vector.load %arg11[%c3_203, %c0_204] : memref<4x32xf32, #tpu.memory_space<vmem>>, vector<1x32xf32>
    %c3_205 = arith.constant 3 : index
    %c0_206 = arith.constant 0 : index
    %497 = vector.load %arg12[%c3_205, %c0_206] : memref<4x32xf32, #tpu.memory_space<vmem>>, vector<1x32xf32>
    %cst_207 = arith.constant dense<0.000000e+00> : vector<8xf32>
    %498 = vector.multi_reduction <add>, %495, %cst_207 [1] : vector<8x32xf32> to vector<8xf32>
    %499 = vector.shape_cast %498 : vector<8xf32> to vector<8x1xf32>
    %cst_208 = arith.constant 3.200000e+01 : f32
    %500 = vector.broadcast %cst_208 : f32 to vector<8x1xf32>
    %501 = arith.divf %499, %500 : vector<8x1xf32>
    %502 = vector.broadcast %501 : vector<8x1xf32> to vector<8x32xf32>
    %503 = arith.subf %495, %502 : vector<8x32xf32>
    %504 = arith.mulf %503, %503 : vector<8x32xf32>
    %cst_209 = arith.constant dense<0.000000e+00> : vector<8xf32>
    %505 = vector.multi_reduction <add>, %504, %cst_209 [1] : vector<8x32xf32> to vector<8xf32>
    %506 = vector.shape_cast %505 : vector<8xf32> to vector<8x1xf32>
    %cst_210 = arith.constant 3.200000e+01 : f32
    %507 = vector.broadcast %cst_210 : f32 to vector<8x1xf32>
    %508 = arith.divf %506, %507 : vector<8x1xf32>
    %509 = vector.broadcast %501 : vector<8x1xf32> to vector<8x32xf32>
    %510 = arith.subf %495, %509 : vector<8x32xf32>
    %cst_211 = arith.constant 9.99999974E-6 : f32
    %511 = vector.broadcast %cst_211 : f32 to vector<8x1xf32>
    %512 = arith.addf %508, %511 : vector<8x1xf32>
    %513 = math.rsqrt %512 : vector<8x1xf32>
    %514 = vector.broadcast %513 : vector<8x1xf32> to vector<8x32xf32>
    %515 = arith.mulf %510, %514 : vector<8x32xf32>
    %516 = vector.broadcast %496 : vector<1x32xf32> to vector<8x32xf32>
    %517 = arith.mulf %515, %516 : vector<8x32xf32>
    %518 = vector.broadcast %497 : vector<1x32xf32> to vector<8x32xf32>
    %519 = arith.addf %517, %518 : vector<8x32xf32>
    %c3_212 = arith.constant 3 : index
    %c0_213 = arith.constant 0 : index
    %c0_214 = arith.constant 0 : index
    %520 = vector.load %arg13[%c3_212, %c0_213, %c0_214] : memref<4x32x128xbf16, #tpu.memory_space<vmem>>, vector<1x32x128xbf16>
    %521 = vector.shape_cast %520 : vector<1x32x128xbf16> to vector<32x128xbf16>
    %522 = arith.truncf %519 : vector<8x32xf32> to vector<8x32xbf16>
    %cst_215 = arith.constant dense<0.000000e+00> : vector<8x128xf32>
    %523 = tpu.matmul %522, %521, %cst_215 {dimension_numbers = #tpu.dot_dimension_numbers<[1], [0], [0], [1], [0, 0, 1, 1], [], []>} : vector<8x32xbf16>, vector<32x128xbf16>, vector<8x128xf32> -> vector<8x128xf32>
    %c3_216 = arith.constant 3 : index
    %c0_217 = arith.constant 0 : index
    %524 = vector.load %arg14[%c3_216, %c0_217] : memref<4x128xf32, #tpu.memory_space<vmem>>, vector<1x128xf32>
    %525 = vector.broadcast %524 : vector<1x128xf32> to vector<8x128xf32>
    %526 = arith.addf %523, %525 : vector<8x128xf32>
    %527 = arith.mulf %526, %526 : vector<8x128xf32>
    %528 = arith.mulf %526, %527 : vector<8x128xf32>
    %cst_218 = arith.constant 4.471500e-02 : f32
    %529 = vector.broadcast %cst_218 : f32 to vector<8x128xf32>
    %530 = arith.mulf %529, %528 : vector<8x128xf32>
    %531 = arith.addf %526, %530 : vector<8x128xf32>
    %cst_219 = arith.constant 0.797884583 : f32
    %532 = vector.broadcast %cst_219 : f32 to vector<8x128xf32>
    %533 = arith.mulf %532, %531 : vector<8x128xf32>
    %534 = math.tanh %533 : vector<8x128xf32>
    %cst_220 = arith.constant 1.000000e+00 : f32
    %535 = vector.broadcast %cst_220 : f32 to vector<8x128xf32>
    %536 = arith.addf %535, %534 : vector<8x128xf32>
    %cst_221 = arith.constant 5.000000e-01 : f32
    %537 = vector.broadcast %cst_221 : f32 to vector<8x128xf32>
    %538 = arith.mulf %537, %536 : vector<8x128xf32>
    %539 = arith.mulf %526, %538 : vector<8x128xf32>
    %c3_222 = arith.constant 3 : index
    %c0_223 = arith.constant 0 : index
    %c0_224 = arith.constant 0 : index
    %540 = vector.load %arg15[%c3_222, %c0_223, %c0_224] : memref<4x128x32xbf16, #tpu.memory_space<vmem>>, vector<1x128x32xbf16>
    %541 = vector.shape_cast %540 : vector<1x128x32xbf16> to vector<128x32xbf16>
    %542 = arith.truncf %539 : vector<8x128xf32> to vector<8x128xbf16>
    %cst_225 = arith.constant dense<0.000000e+00> : vector<8x32xf32>
    %543 = tpu.matmul %542, %541, %cst_225 {dimension_numbers = #tpu.dot_dimension_numbers<[1], [0], [0], [1], [0, 0, 1, 1], [], []>} : vector<8x128xbf16>, vector<128x32xbf16>, vector<8x32xf32> -> vector<8x32xf32>
    %544 = arith.addf %495, %543 : vector<8x32xf32>
    %c3_226 = arith.constant 3 : index
    %c0_227 = arith.constant 0 : index
    %545 = vector.load %arg16[%c3_226, %c0_227] : memref<4x32xf32, #tpu.memory_space<vmem>>, vector<1x32xf32>
    %546 = vector.broadcast %545 : vector<1x32xf32> to vector<8x32xf32>
    %547 = arith.addf %544, %546 : vector<8x32xf32>
    %c0_228 = arith.constant 0 : index
    %c0_229 = arith.constant 0 : index
    %548 = vector.load %arg17[%c0_228, %c0_229] : memref<1x32xf32, #tpu.memory_space<vmem>>, vector<1x32xf32>
    %c0_230 = arith.constant 0 : index
    %c0_231 = arith.constant 0 : index
    %549 = vector.load %arg18[%c0_230, %c0_231] : memref<1x32xf32, #tpu.memory_space<vmem>>, vector<1x32xf32>
    %cst_232 = arith.constant dense<0.000000e+00> : vector<8xf32>
    %550 = vector.multi_reduction <add>, %547, %cst_232 [1] : vector<8x32xf32> to vector<8xf32>
    %551 = vector.shape_cast %550 : vector<8xf32> to vector<8x1xf32>
    %cst_233 = arith.constant 3.200000e+01 : f32
    %552 = vector.broadcast %cst_233 : f32 to vector<8x1xf32>
    %553 = arith.divf %551, %552 : vector<8x1xf32>
    %554 = vector.broadcast %553 : vector<8x1xf32> to vector<8x32xf32>
    %555 = arith.subf %547, %554 : vector<8x32xf32>
    %556 = arith.mulf %555, %555 : vector<8x32xf32>
    %cst_234 = arith.constant dense<0.000000e+00> : vector<8xf32>
    %557 = vector.multi_reduction <add>, %556, %cst_234 [1] : vector<8x32xf32> to vector<8xf32>
    %558 = vector.shape_cast %557 : vector<8xf32> to vector<8x1xf32>
    %cst_235 = arith.constant 3.200000e+01 : f32
    %559 = vector.broadcast %cst_235 : f32 to vector<8x1xf32>
    %560 = arith.divf %558, %559 : vector<8x1xf32>
    %561 = vector.broadcast %553 : vector<8x1xf32> to vector<8x32xf32>
    %562 = arith.subf %547, %561 : vector<8x32xf32>
    %cst_236 = arith.constant 9.99999974E-6 : f32
    %563 = vector.broadcast %cst_236 : f32 to vector<8x1xf32>
    %564 = arith.addf %560, %563 : vector<8x1xf32>
    %565 = math.rsqrt %564 : vector<8x1xf32>
    %566 = vector.broadcast %565 : vector<8x1xf32> to vector<8x32xf32>
    %567 = arith.mulf %562, %566 : vector<8x32xf32>
    %568 = vector.broadcast %548 : vector<1x32xf32> to vector<8x32xf32>
    %569 = arith.mulf %567, %568 : vector<8x32xf32>
    %570 = vector.broadcast %549 : vector<1x32xf32> to vector<8x32xf32>
    %571 = arith.addf %569, %570 : vector<8x32xf32>
    %c0_237 = arith.constant 0 : index
    %c0_238 = arith.constant 0 : index
    %572 = vector.load %arg19[%c0_237, %c0_238] : memref<32x32xbf16, #tpu.memory_space<vmem>>, vector<32x32xbf16>
    %573 = arith.truncf %571 : vector<8x32xf32> to vector<8x32xbf16>
    %cst_239 = arith.constant dense<0.000000e+00> : vector<8x32xf32>
    %574 = tpu.matmul %573, %572, %cst_239 {dimension_numbers = #tpu.dot_dimension_numbers<[1], [0], [0], [1], [0, 0, 1, 1], [], []>} : vector<8x32xbf16>, vector<32x32xbf16>, vector<8x32xf32> -> vector<8x32xf32>
    %c0_240 = arith.constant 0 : index
    %c0_241 = arith.constant 0 : index
    %575 = vector.load %arg20[%c0_240, %c0_241] : memref<32x32xbf16, #tpu.memory_space<vmem>>, vector<32x32xbf16>
    %576 = arith.truncf %574 : vector<8x32xf32> to vector<8x32xbf16>
    %cst_242 = arith.constant dense<0.000000e+00> : vector<8x32xf32>
    %577 = tpu.matmul %576, %575, %cst_242 {dimension_numbers = #tpu.dot_dimension_numbers<[1], [0], [0], [1], [0, 0, 1, 1], [], []>} : vector<8x32xbf16>, vector<32x32xbf16>, vector<8x32xf32> -> vector<8x32xf32>
    %c0_243 = arith.constant 0 : index
    %c0_244 = arith.constant 0 : index
    %578 = vector.load %arg21[%c0_243, %c0_244] : memref<1x32xf32, #tpu.memory_space<vmem>>, vector<1x32xf32>
    %579 = vector.broadcast %578 : vector<1x32xf32> to vector<8x32xf32>
    %580 = arith.addf %577, %579 : vector<8x32xf32>
    %cst_245 = arith.constant 0.000000e+00 : f32
    %581 = vector.broadcast %cst_245 : f32 to vector<8x32xf32>
    %582 = arith.maximumf %580, %581 : vector<8x32xf32>
    %c0_246 = arith.constant 0 : index
    %c0_247 = arith.constant 0 : index
    %583 = vector.load %arg22[%c0_246, %c0_247] : memref<32x32xbf16, #tpu.memory_space<vmem>>, vector<32x32xbf16>
    %584 = arith.truncf %582 : vector<8x32xf32> to vector<8x32xbf16>
    %cst_248 = arith.constant dense<0.000000e+00> : vector<8x32xf32>
    %585 = tpu.matmul %584, %583, %cst_248 {dimension_numbers = #tpu.dot_dimension_numbers<[1], [0], [0], [1], [0, 0, 1, 1], [], []>} : vector<8x32xbf16>, vector<32x32xbf16>, vector<8x32xf32> -> vector<8x32xf32>
    %c0_249 = arith.constant 0 : index
    %c0_250 = arith.constant 0 : index
    %586 = vector.load %arg23[%c0_249, %c0_250] : memref<1x32xf32, #tpu.memory_space<vmem>>, vector<1x32xf32>
    %587 = vector.broadcast %586 : vector<1x32xf32> to vector<8x32xf32>
    %588 = arith.addf %585, %587 : vector<8x32xf32>
    %cst_251 = arith.constant 0.000000e+00 : f32
    %589 = vector.broadcast %cst_251 : f32 to vector<8x32xf32>
    %590 = arith.maximumf %588, %589 : vector<8x32xf32>
    %c0_252 = arith.constant 0 : index
    %c0_253 = arith.constant 0 : index
    %591 = vector.load %arg24[%c0_252, %c0_253] : memref<32x128xbf16, #tpu.memory_space<vmem>>, vector<32x128xbf16>
    %592 = arith.truncf %590 : vector<8x32xf32> to vector<8x32xbf16>
    %cst_254 = arith.constant dense<0.000000e+00> : vector<8x128xf32>
    %593 = tpu.matmul %592, %591, %cst_254 {dimension_numbers = #tpu.dot_dimension_numbers<[1], [0], [0], [1], [0, 0, 1, 1], [], []>} : vector<8x32xbf16>, vector<32x128xbf16>, vector<8x128xf32> -> vector<8x128xf32>
    %c0_255 = arith.constant 0 : index
    %c0_256 = arith.constant 0 : index
    %594 = vector.load %arg25[%c0_255, %c0_256] : memref<1x128xf32, #tpu.memory_space<vmem>>, vector<1x128xf32>
    %595 = vector.broadcast %594 : vector<1x128xf32> to vector<8x128xf32>
    %596 = arith.addf %593, %595 : vector<8x128xf32>
    %597 = math.tanh %596 : vector<8x128xf32>
    %c0_257 = arith.constant 0 : index
    %c0_258 = arith.constant 0 : index
    %598 = vector.load %arg26[%c0_257, %c0_258] : memref<8x128xf32, #tpu.memory_space<vmem>>, vector<8x128xf32>
    tpu.vector_store %arg26[%c0_257, %c0_258], %597 {strides = array<i32>} : memref<8x128xf32, #tpu.memory_space<vmem>>, vector<8x128xf32>,
    return
  }
  func.func @transform_0(%arg0: i32) -> (i32, i32) {
    %c0_i32 = arith.constant 0 : i32
    %c0_i32_0 = arith.constant 0 : i32
    return %arg0, %c0_i32 : i32, i32
  }
  func.func @transform_1(%arg0: i32) -> (i32, i32) {
    %c0_i32 = arith.constant 0 : i32
    %c0_i32_0 = arith.constant 0 : i32
    %c0_i32_1 = arith.constant 0 : i32
    return %c0_i32, %c0_i32_0 : i32, i32
  }
  func.func @transform_2(%arg0: i32) -> (i32, i32) {
    %c0_i32 = arith.constant 0 : i32
    %c0_i32_0 = arith.constant 0 : i32
    %c0_i32_1 = arith.constant 0 : i32
    return %c0_i32, %c0_i32_0 : i32, i32
  }
  func.func @transform_3(%arg0: i32) -> (i32, i32) {
    %c0_i32 = arith.constant 0 : i32
    %c0_i32_0 = arith.constant 0 : i32
    %c0_i32_1 = arith.constant 0 : i32
    return %c0_i32, %c0_i32_0 : i32, i32
  }
  func.func @transform_4(%arg0: i32) -> (i32, i32) {
    %c0_i32 = arith.constant 0 : i32
    %c0_i32_0 = arith.constant 0 : i32
    %c0_i32_1 = arith.constant 0 : i32
    return %c0_i32, %c0_i32_0 : i32, i32
  }
  func.func @transform_5(%arg0: i32) -> (i32, i32) {
    %c0_i32 = arith.constant 0 : i32
    %c0_i32_0 = arith.constant 0 : i32
    %c0_i32_1 = arith.constant 0 : i32
    return %c0_i32, %c0_i32_0 : i32, i32
  }
  func.func @transform_6(%arg0: i32) -> (i32, i32, i32) {
    %c0_i32 = arith.constant 0 : i32
    %c0_i32_0 = arith.constant 0 : i32
    %c0_i32_1 = arith.constant 0 : i32
    %c0_i32_2 = arith.constant 0 : i32
    return %c0_i32, %c0_i32_0, %c0_i32_1 : i32, i32, i32
  }
  func.func @transform_7(%arg0: i32) -> (i32, i32) {
    %c0_i32 = arith.constant 0 : i32
    %c0_i32_0 = arith.constant 0 : i32
    %c0_i32_1 = arith.constant 0 : i32
    return %c0_i32, %c0_i32_0 : i32, i32
  }
  func.func @transform_8(%arg0: i32) -> (i32, i32, i32) {
    %c0_i32 = arith.constant 0 : i32
    %c0_i32_0 = arith.constant 0 : i32
    %c0_i32_1 = arith.constant 0 : i32
    %c0_i32_2 = arith.constant 0 : i32
    return %c0_i32, %c0_i32_0, %c0_i32_1 : i32, i32, i32
  }
  func.func @transform_9(%arg0: i32) -> (i32, i32) {
    %c0_i32 = arith.constant 0 : i32
    %c0_i32_0 = arith.constant 0 : i32
    %c0_i32_1 = arith.constant 0 : i32
    return %c0_i32, %c0_i32_0 : i32, i32
  }
  func.func @transform_10(%arg0: i32) -> (i32, i32) {
    %c0_i32 = arith.constant 0 : i32
    %c0_i32_0 = arith.constant 0 : i32
    %c0_i32_1 = arith.constant 0 : i32
    return %c0_i32, %c0_i32_0 : i32, i32
  }
  func.func @transform_11(%arg0: i32) -> (i32, i32) {
    %c0_i32 = arith.constant 0 : i32
    %c0_i32_0 = arith.constant 0 : i32
    %c0_i32_1 = arith.constant 0 : i32
    return %c0_i32, %c0_i32_0 : i32, i32
  }
  func.func @transform_12(%arg0: i32) -> (i32, i32, i32) {
    %c0_i32 = arith.constant 0 : i32
    %c0_i32_0 = arith.constant 0 : i32
    %c0_i32_1 = arith.constant 0 : i32
    %c0_i32_2 = arith.constant 0 : i32
    return %c0_i32, %c0_i32_0, %c0_i32_1 : i32, i32, i32
  }
  func.func @transform_13(%arg0: i32) -> (i32, i32) {
    %c0_i32 = arith.constant 0 : i32
    %c0_i32_0 = arith.constant 0 : i32
    %c0_i32_1 = arith.constant 0 : i32
    return %c0_i32, %c0_i32_0 : i32, i32
  }
  func.func @transform_14(%arg0: i32) -> (i32, i32, i32) {
    %c0_i32 = arith.constant 0 : i32
    %c0_i32_0 = arith.constant 0 : i32
    %c0_i32_1 = arith.constant 0 : i32
    %c0_i32_2 = arith.constant 0 : i32
    return %c0_i32, %c0_i32_0, %c0_i32_1 : i32, i32, i32
  }
  func.func @transform_15(%arg0: i32) -> (i32, i32) {
    %c0_i32 = arith.constant 0 : i32
    %c0_i32_0 = arith.constant 0 : i32
    %c0_i32_1 = arith.constant 0 : i32
    return %c0_i32, %c0_i32_0 : i32, i32
  }
  func.func @transform_16(%arg0: i32) -> (i32, i32) {
    %c0_i32 = arith.constant 0 : i32
    %c0_i32_0 = arith.constant 0 : i32
    %c0_i32_1 = arith.constant 0 : i32
    return %c0_i32, %c0_i32_0 : i32, i32
  }
  func.func @transform_17(%arg0: i32) -> (i32, i32) {
    %c0_i32 = arith.constant 0 : i32
    %c0_i32_0 = arith.constant 0 : i32
    %c0_i32_1 = arith.constant 0 : i32
    return %c0_i32, %c0_i32_0 : i32, i32
  }
  func.func @transform_18(%arg0: i32) -> (i32, i32) {
    %c0_i32 = arith.constant 0 : i32
    %c0_i32_0 = arith.constant 0 : i32
    %c0_i32_1 = arith.constant 0 : i32
    return %c0_i32, %c0_i32_0 : i32, i32
  }
  func.func @transform_19(%arg0: i32) -> (i32, i32) {
    %c0_i32 = arith.constant 0 : i32
    %c0_i32_0 = arith.constant 0 : i32
    %c0_i32_1 = arith.constant 0 : i32
    return %c0_i32, %c0_i32_0 : i32, i32
  }
  func.func @transform_20(%arg0: i32) -> (i32, i32) {
    %c0_i32 = arith.constant 0 : i32
    %c0_i32_0 = arith.constant 0 : i32
    %c0_i32_1 = arith.constant 0 : i32
    return %c0_i32, %c0_i32_0 : i32, i32
  }
  func.func @transform_21(%arg0: i32) -> (i32, i32) {
    %c0_i32 = arith.constant 0 : i32
    %c0_i32_0 = arith.constant 0 : i32
    %c0_i32_1 = arith.constant 0 : i32
    return %c0_i32, %c0_i32_0 : i32, i32
  }
  func.func @transform_22(%arg0: i32) -> (i32, i32) {
    %c0_i32 = arith.constant 0 : i32
    %c0_i32_0 = arith.constant 0 : i32
    %c0_i32_1 = arith.constant 0 : i32
    return %c0_i32, %c0_i32_0 : i32, i32
  }
  func.func @transform_23(%arg0: i32) -> (i32, i32) {
    %c0_i32 = arith.constant 0 : i32
    %c0_i32_0 = arith.constant 0 : i32
    %c0_i32_1 = arith.constant 0 : i32
    return %c0_i32, %c0_i32_0 : i32, i32
  }
  func.func @transform_24(%arg0: i32) -> (i32, i32) {
    %c0_i32 = arith.constant 0 : i32
    %c0_i32_0 = arith.constant 0 : i32
    %c0_i32_1 = arith.constant 0 : i32
    return %c0_i32, %c0_i32_0 : i32, i32
  }
  func.func @transform_25(%arg0: i32) -> (i32, i32) {
    %c0_i32 = arith.constant 0 : i32
    %c0_i32_0 = arith.constant 0 : i32
    return %arg0, %c0_i32 : i32, i32
  }
}

</mosaic_0001>

<bundles_post_ra>
// kernel: tpu_custom_call.1
= control target key start
LH: loop header
LB: loop body
LE: loop exit
PB: predicated region body
PF: predicated region fallthrough
CT: control target
= control target key end

     0   :  { %s5354_s0 = inlined_call_operand.vmem [shape: f32[16,16], index: 0, kind: input, shape index: {}]   ;;  %s5355_s1 = inlined_call_operand.vmem [shape: bf16[16,32], index: 1, kind: input, shape index: {}]   ;;  %s5356_s2 = inlined_call_operand.vmem [shape: f32[1,32], index: 2, kind: input, shape index: {}]   ;;  %s5357_s3 = inlined_call_operand.vmem [shape: f32[8,32], index: 3, kind: input, shape index: {}]   ;;  %s5358_s4 = inlined_call_operand.vmem [shape: f32[4,32], index: 4, kind: input, shape index: {}]   ;;  %s5359_s5 = inlined_call_operand.vmem [shape: f32[4,32], index: 5, kind: input, shape index: {}]   ;;  %s5360_s6 = inlined_call_operand.vmem [shape: bf16[4,32,96], index: 6, kind: input, shape index: {}]   ;;  %s5361_s7 = inlined_call_operand.vmem [shape: f32[4,96], index: 7, kind: input, shape index: {}]   ;;  %s5362_s8 = inlined_call_operand.vmem [shape: bf16[4,32,32], index: 8, kind: input, shape index: {}]   ;;  %s5363_s9 = inlined_call_operand.vmem [shape: f32[4,32], index: 9, kind: input, shape index: {}]   ;;  %s5364_s10 = inlined_call_operand.vmem [shape: f32[4,32], index: 10, kind: input, shape index: {}]   ;;  %s5365_s11 = inlined_call_operand.vmem [shape: f32[4,32], index: 11, kind: input, shape index: {}]   ;;  %s5366_s12 = inlined_call_operand.vmem [shape: bf16[4,32,128], index: 12, kind: input, shape index: {}]   ;;  %s5367_s13 = inlined_call_operand.vmem [shape: f32[4,128], index: 13, kind: input, shape index: {}]   ;;  %s5368_s14 = inlined_call_operand.vmem [shape: bf16[4,128,32], index: 14, kind: input, shape index: {}]   ;;  %s5369_s15 = inlined_call_operand.vmem [shape: f32[4,32], index: 15, kind: input, shape index: {}]   ;;  %s5370_s16 = inlined_call_operand.vmem [shape: f32[1,32], index: 16, kind: input, shape index: {}]   ;;  %s5371_s17 = inlined_call_operand.vmem [shape: f32[1,32], index: 17, kind: input, shape index: {}]   ;;  %s5372_s18 = inlined_call_operand.vmem [shape: bf16[32,32], index: 18, kind: input, shape index: {}]   ;;  %s5373_s19 = inlined_call_operand.vmem [shape: bf16[32,32], index: 19, kind: input, shape index: {}]   ;;  %s5374_s20 = inlined_call_operand.vmem [shape: f32[1,32], index: 20, kind: input, shape index: {}]   ;;  %s5375_s21 = inlined_call_operand.vmem [shape: bf16[32,32], index: 21, kind: input, shape index: {}]   ;;  %s5376_s22 = inlined_call_operand.vmem [shape: f32[1,32], index: 22, kind: input, shape index: {}]   ;;  %s5377_s23 = inlined_call_operand.vmem [shape: bf16[32,128], index: 23, kind: input, shape index: {}]   ;;  %s5378_s24 = inlined_call_operand.vmem [shape: f32[1,128], index: 24, kind: input, shape index: {}]   ;;  %s5379_s25 = inlined_call_operand.hbm [shape: f32[16,128], index: 25, kind: output, shape index: {}]  }
   0x1   :  { %5412 = sst [smem:[#allocation14_spill]] %s5354_s0 }
   0x2   :  { %5413 = sst [smem:[#allocation15_spill]] %s5355_s1 }
   0x3   :  { %5414 = sst [smem:[#allocation16_spill]] %s5356_s2 }
   0x4   :  { %5415 = sst [smem:[#allocation17_spill]] %s5357_s3 }
   0x5   :  { %5416 = sst [smem:[#allocation18_spill]] %s5358_s4 }
   0x6   :  { %5417 = sst [smem:[#allocation19_spill]] %s5359_s5 }
   0x7   :  { %5418 = sst [smem:[#allocation20_spill]] %s5360_s6 }
   0x8   :  { %5419 = sst [smem:[#allocation21_spill]] %s5361_s7 }
   0x9   :  { %5420 = sst [smem:[#allocation22_spill]] %s5362_s8 }
   0xa   :  { %5421 = sst [smem:[#allocation23_spill]] %s5363_s9 }
   0xb   :  { %5422 = sst [smem:[#allocation24_spill]] %s5374_s20 }
   0xc   :  { %5423 = sst [smem:[#allocation25_spill]] %s5376_s22 }
   0xd   :  { %5424 = sst [smem:[#allocation26_spill]] %s5377_s23 }
   0xe   :  { %5425 = sst [smem:[#allocation27_spill]] %s5378_s24 }
   0xf   :  { %5426 = sst [smem:[#allocation28_spill]] %s5379_s25 }
  0x10   :  { %30 = vsyncpa [#allocation3], 0 }
  0x11   :  { %32 = vsyncpa [#allocation3 + $0x1], 0  ;;  %s4623_s29 = smov 0   ;;  %s4625_s2 = smov 0  }
  0x12   :  { %s4627_s6 = smov 0   ;;  %s4629_s30 = smov 0  }
  0x13 LB: > { %5427 = sst [smem:[#allocation5_spill]] %s4470_s29  ;;  %s4644_s7 = sadd.s32 4294967295, %s4482_s30   ;;  %s4482_s30 = sphi %s4629_s30, %s5468_s30   ;;  %s4478_s6 = sphi %s4627_s6, %s5471_s6   ;;  %s4474_s2 = sphi %s4625_s2, %s5470_s2   ;;  %s4470_s29 = sphi %s4623_s29, %s5469_s29  }
  0x14   : > { %5428 = sst [smem:[#allocation6_spill]] %s4474_s2  ;;  %s3592_s3 = sadd.s32 4294967294, %s4482_s30  }
  0x15   : > { %5429 = sst [smem:[#allocation7_spill]] %s4478_s6  ;;  %s4648_s26 = sadd.s32 1, %s4482_s30  }
  0x16   : > { %5430 = sst [smem:[#allocation8_spill]] %s4482_s30  ;;  %s575_s1 = sadd.s32 1, %s4478_s6 }
  0x17   : > { %5431 = sst [smem:[#allocation9_spill]] %s4644_s7  ;;  %s572_s8 = ssub.s32 %s4482_s30, %s4648_s26 }
  0x18   : > { %5432 = sst [smem:[#allocation10_spill]] %s4648_s26  ;;  %p585_p0 = scmp.ne.s32.totalorder %s4478_s6, %s4474_s2 }
  0x19   : > { %p573_p1 = scmp.eq.s32.totalorder %s572_s8, 0  ;;  %p586_p2 = scmp.eq.s32.totalorder %s4644_s7, 1 }
  0x1a   : > { %p591_p3 = scmp.ne.s32.totalorder %s4474_s2, %s4470_s29  ;;  %p592_p4 = scmp.eq.s32.totalorder %s3592_s3, 1 }
  0x1b   : > { %s4659_s27 = scalar_select %p573_p1, %s4478_s6, %s575_s1  }
  0x1c   : > { %p4661_p5 = por %p586_p2, %p585_p0  ;;  %p4665_p6 = por %p592_p4, %p591_p3 }
  0x1d   : > { %5433 = sst [smem:[#allocation11_spill]] %s4659_s27  ;;  %p3595_p7 = scmp.ge.s32.totalorder %s4482_s30, 1 }
  0x1e   : > { %s5434_s4 = scalar_select %p4661_p5, 1, 0 }
  0x1f   : > { %s5436_s28 = scalar_select %p4665_p6, 1, 0 }
  0x20   : > { %5435 = sst [smem:[#allocation12_spill]] %s5434_s4  ;;  %p689_p8 = scmp.lt.s32.totalorder %s4482_s30, 3 }
  0x21   : > { %5437 = sst [smem:[#allocation13_spill]] %s5436_s28 }
  0x22   : > { %p690_p9 = pnand %p3595_p7, %p689_p8 }
  0x23   : > { %s5438_s0 = sld [smem:[#allocation15_spill]] (!%p690_p9)  ;;  %p756_p10 = scmp.lt.s32.totalorder (!%p690_p9), %s4644_s7, 1 }
  0x24   : > { %693 = sbr.rel (%p690_p9) target bundleno = 12446 (0x309e), region = 120  ;;  %s5439_s5 = sld [smem:[#allocation14_spill]] (!%p690_p9) }
  0x25   : > { %s5440_s26 = sld [smem:[#allocation16_spill]] (!%p690_p9)  ;;  %s5395_s28 = smov (!%p690_p9), 112  }
  0x26   : > { %s5443_s9 = sld [smem:[#allocation18_spill]] (!%p690_p9)  ;;  %s5397_s8 = smov (!%p690_p9), 80  }
  0x27   : > { %s5445_s27 = sld [smem:[#allocation21_spill]] (!%p690_p9)  ;;  %s5451_s4 = smov (!%p690_p9), 96  }
  0x28   : > { %s5449_s29 = sld [smem:[#allocation23_spill]] (!%p690_p9)  ;;  %s5455_s30 = smov (!%p690_p9), 48  }
  0x29   : > { %v4297_v0 = vld [vmem:[%s5438_s0] sm:$0xff]   ;;  %v4484_v1 = vmov 0.0   ;;  %vm4485_vm0 = vmmov 0   ;;  %s757_s3 = scalar_select %p756_p10, %s4644_s7, 1  ;;  %vm783_vm1 = vcmask 130048   ;;  %vm831_vm2 = vcmask 261120  }
  0x2a   : > { %3940 = vmatprep.subr.bf16.mxu0 %v4484_v1  ;;  %3946 = vmatprep.subr.bf16.mxu1 %v4484_v1  ;;  %v761_v42 = vlaneseq  ;;  %vm972_vm4 = vcmask 64512   ;;  %vm990_vm5 = vcmask 1043456   ;;  %s5456_s7 = smov 16   ;;  %s5457_s23 = sld [smem:[#allocation24_spill]] }
  0x2b   : > { %3941 = vmatpush3.bf16.msra.mxu0 %v4297_v0  ;;  %3942 = vmatprep.mubr.msk.bf16.mxu0 %vm4485_vm0, %v4484_v1  ;;  %s3597_s1 = sshll.u32 %s757_s3, 3  ;;  %v3598_v4 = vld [vmem:[%s5440_s26] ss:$0 sm:$0xff]  ;;  %s5441_s3 = sld [smem:[#allocation17_spill]] }
  0x2c   : > { %3950 = vmatprep.mubr.msk.bf16.mxu1 %vm4485_vm0, %v4484_v1  ;;  %3954 = vmatprep.subr.bf16.mxu0 %v4484_v1  ;;  %s759_s0 = scalar_lea.vmem %s5439_s5, %s3597_s1  ;;  %s5442_s26 = sld [smem:[#allocation20_spill]]  ;;  %v3601_v24 = vld [vmem:[%s5443_s9] ss:$0 sm:$0xff]  ;;  %v762_v43 = vshrl.u32 %v761_v42, 7  ;;  %v764_v44 = vand.u32 127, %v761_v42 }
  0x2d   : > { %v766_v2 = vld [vmem:[%s759_s0] sm:$0xff]  ;;  %s5399_s1 = smov 96   ;;  %s5391_s5 = smov 48  }
  0x2e   : > { %v769_v3 = vpack.c.bf16 %v766_v2, %v766_v2  ;;  %v3603_v30 = vld [vmem:[%s5445_s27] ss:$0 sm:$0xff]  ;;  %vm4734_vm3 = vcmp.le.s32.totalorder %v764_v44, %v762_v43  ;;  %s5393_s0 = smov 64   ;;  %s5460_s22 = sld [smem:[#allocation25_spill]] }
  0x2f   : > { %v4303_v44 = vld [vmem:[%s5366_s12] sm:$0xff]   ;;  %s5462_s20 = sld [smem:[#allocation27_spill]] }
  0x30   : > { %3943 = vmatmul.mubr.msk.bf16.vlgmr.msra.gmra.mxu0 %vm783_vm1, %v769_v3 }
  0x31   : > { %3956 = vmatprep.mubr.msk.bf16.mxu0 %vm4485_vm0, %v4484_v1  ;;  %v827_v6 = vld [vmem:[%s5441_s3] sm:$0xff]  ;;  %s5444_s3 = sld [smem:[#allocation19_spill]] }
  0x32   : > { %v4298_v18 = vld [vmem:[%s5442_s26 + $0x8] sm:$0xff]   ;;  %v4299_v19 = vld [vmem:[%s5442_s26] sm:$0xff]  }
  0x33   : > { %3947 = vmatpush3.bf16.msra.mxu1 %v4298_v18 }
  0x34   : > { %3948 = vmatprep.subr.bf16.mxu1 %v4484_v1 }
  0x37   : > { %3949 = vmatpush3.bf16.msra.mxu1 %v4299_v19  ;;  %v3602_v26 = vld [vmem:[%s5444_s3] ss:$0 sm:$0xff] }
  0x38   : > { %3960 = vmatprep.subr.bf16.mxu1 %v4484_v1 }
  0xf0   : > { %v821_v5 = vpop.f32.mrf.mxu0 }
  0xf1   : > { %v822_v7 = vadd.f32 %v3598_v4, %v821_v5 }
  0xf2   : > { %v3944_v8 = vpop.f32.mrf.mxu0 }
  0xf3   : > { %v4695_v9 = vadd.f32 %v827_v6, %v822_v7 }
  0xf4   : > { %v824_v10 = vpop.f32.mrf.mxu0 }
  0xf5   : > { %v832_v11 = vsel %vm831_vm2, %v4695_v9, 0.0 }
  0xf6   : > { %833 = vadd.xlane.f32.xlu0 %v832_v11  ;;  %v3945_v12 = vpop.f32.mrf.mxu0 }
 0x17f   : > { %v834_v13 = vpop.xlane.xlu0 %833 }
 0x180   : > { %v836_v14 = vmul.f32 0.03125, %v834_v13 }
 0x182   : > { %v837_v15 = vsub.f32 %v4695_v9, %v836_v14 }
 0x184   : > { %v838_v16 = vmul.f32 %v837_v15, %v837_v15 }
 0x186   : > { %v839_v17 = vsel %vm831_vm2, %v838_v16, 0.0 }
 0x187   : > { %840 = vadd.xlane.f32.xlu0 %v839_v17 }
 0x210   : > { %v841_v20 = vpop.xlane.xlu0 %840 }
 0x211   : > { %v842_v21 = vmul.f32 0.03125, %v841_v20 }
 0x213   : > { %v843_v22 = vadd.f32 1e-05, %v842_v21 }
 0x215   : > { %4362 = vrsqrt.f32 %v843_v22 }
 0x222   : > { %v4363_v23 = vpop.eup %4362 }
 0x223   : > { %v845_v25 = vmul.f32 %v4363_v23, %v837_v15 }
 0x225   : > { %v850_v27 = vmul.f32 %v3601_v24, %v845_v25 }
 0x227   : > { %v855_v28 = vadd.f32 %v3602_v26, %v850_v27 }
 0x229   : > { %v860_v29 = vpack.c.bf16 %v855_v28, %v855_v28 }
 0x22b   : > { %3951 = vmatmul.mubr.msk.bf16.vlgmr.msra.gmra.mxu1 %vm831_vm2, %v860_v29 }
 0x22c   : > { %3962 = vmatprep.mubr.msk.bf16.mxu1 %vm4485_vm0, %v4484_v1 }
 0x2eb   : > { %v915_v31 = vpop.f32.mrf.mxu1 }
 0x2ec   : > { %v916_v32 = vadd.f32 %v3603_v30, %v915_v31 }
 0x2ed   : > { %v3952_v33 = vpop.f32.mrf.mxu1 }
 0x2ee   : > { %v921_v34 = vpack.c.bf16 %v916_v32, %v916_v32  ;;  %v3614_v32 = vld [vmem:[%s5449_s29] ss:$0 sm:$0xff] }
 0x2ef   : > { %v918_v35 = vpop.f32.mrf.mxu1 }
 0x2f0   : > { %1034 = vrot.lane.b32.xlu0 %v921_v34, %s5395_s28  ;;  %923 = vrot.lane.b32.xlu1 %v921_v34, %s5399_s1  ;;  %s5450_s1 = smov %s5449_s29  ;;  %s5452_s28 = smov 80  }
 0x2f1   : > { %v3953_v36 = vpop.f32.mrf.mxu1  ;;  %s5454_s29 = smov 64  }
 0x2f4   : > { %1036 = vrot.lane.b32.xlu1 %v921_v34, %s5397_s8  ;;  %s5401_s8 = smov 16  }
 0x362   : > { %v924_v37 = vpop.permute.xlu1 %923  ;;  %v1035_v41 = vpop.permute.xlu0 %1034 }
 0x363   : > { %v929_v38 = vsel %vm783_vm1, %v924_v37, 0 }
 0x364   : > { %3955 = vmatpush3.bf16.xpose.msra.mxu0 %v929_v38 }
 0x365   : > { %3966 = vmatprep.subr.bf16.mxu0 %v4484_v1 }
 0x366   : > { %v1037_v39 = vpop.permute.xlu1 %1036 }
 0x367   : > { %v1042_v40 = vsel %vm783_vm1, %v1037_v39, 0 }
 0x36b   : > { %3957 = vmatmul.mubr.msk.bf16.vlgmr.msra.gmra.mxu0 %vm783_vm1, %v921_v34 }
 0x36c   : > { %3967 = vmatpush3.bf16.xpose.msra.mxu0 %v1042_v40  ;;  %3968 = vmatprep.mubr.msk.bf16.mxu0 %vm4485_vm0, %v4484_v1 }
 0x36d   : > { %3978 = vmatprep.subr.bf16.mxu0 %v4484_v1 }
 0x373   : > { %3969 = vmatmul.mubr.msk.bf16.vlgmr.msra.gmra.mxu0 %vm783_vm1, %v1035_v41 }
 0x374   : > { %3982 = vmatprep.mubr.msk.bf16.mxu0 %vm4485_vm0, %v4484_v1 }
 0x42b   : > { %v965_v46 = vpop.f32.mrf.mxu0 }
 0x42c   : > { %v971_v47 = vsel %vm4734_vm3, %v965_v46, -1e+30 }
 0x42d   : > { %v3958_v48 = vpop.f32.mrf.mxu0  ;;  %v973_v49 = vsel %vm972_vm4, %v971_v47, -inf }
 0x42e   : > { %974 = vmax.xlane.f32.xlu1 %v973_v49 }
 0x42f   : > { %v968_v50 = vpop.f32.mrf.mxu0 }
 0x430   : > { %v3615_v50 = vld [vmem:[%s5364_s10] ss:$0 sm:$0xff] }
 0x431   : > { %v3959_v51 = vpop.f32.mrf.mxu0 }
 0x433   : > { %v1078_v52 = vpop.f32.mrf.mxu0 }
 0x434   : > { %v1084_v53 = vsel %vm4734_vm3, %v1078_v52, -1e+30  ;;  %v3616_v52 = vld [vmem:[%s5365_s11] ss:$0 sm:$0xff] }
 0x435   : > { %v3970_v54 = vpop.f32.mrf.mxu0  ;;  %v1085_v55 = vsel %vm972_vm4, %v1084_v53, -inf }
 0x436   : > { %1086 = vmax.xlane.f32.xlu0 %v1085_v55 }
 0x437   : > { %v1081_v56 = vpop.f32.mrf.mxu0 }
 0x438   : > { %v4304_v56 = vld [vmem:[%s5368_s14 + $0x38] sm:$0xff]  }
 0x439   : > { %v3971_v57 = vpop.f32.mrf.mxu0 }
 0x43a   : > { %v4305_v57 = vld [vmem:[%s5368_s14 + $0x30] sm:$0xff]  }
 0x44c   : > { %1097 = vrot.lane.b32.xlu0 %v921_v34, %s5391_s5  ;;  %s5448_s5 = sld [smem:[#allocation22_spill]] }
 0x452   : > { %v4300_v18 = vld [vmem:[%s5448_s5 + $0x8] sm:$0xff]   ;;  %v4301_v19 = vld [vmem:[%s5448_s5] sm:$0xff]  }
 0x453   : > { %3979 = vmatpush3.bf16.msra.mxu0 %v4300_v18 }
 0x454   : > { %3980 = vmatprep.subr.bf16.mxu0 %v4484_v1 }
 0x457   : > { %3981 = vmatpush3.bf16.msra.mxu0 %v4301_v19  ;;  %v3629_v19 = vld [vmem:[%s5369_s15] ss:$0 sm:$0xff] }
 0x458   : > { %3994 = vmatprep.subr.bf16.mxu0 %v4484_v1 }
 0x4b7   : > { %v975_v58 = vpop.xlane.xlu1 %974 }
 0x4b8   : > { %v976_v59 = vsub.f32 %v971_v47, %v975_v58  ;;  %v4306_v58 = vld [vmem:[%s5368_s14 + $0x28] sm:$0xff]  }
 0x4ba   : > { %v977_v60 = vmul.f32 1.442695, %v976_v59  ;;  %v4307_v59 = vld [vmem:[%s5368_s14 + $0x20] sm:$0xff]  }
 0x4bc   : > { %4364 = vpow2.f32 %v977_v60  ;;  %v4308_v60 = vld [vmem:[%s5368_s14 + $0x18] sm:$0xff]  }
 0x4bf   : > { %v1087_v61 = vpop.xlane.xlu0 %1086 }
 0x4c0   : > { %v1088_v62 = vsub.f32 %v1084_v53, %v1087_v61  ;;  %v4309_v61 = vld [vmem:[%s5368_s14 + $0x10] sm:$0xff]  }
 0x4c2   : > { %v1089_v63 = vmul.f32 1.442695, %v1088_v62  ;;  %v4310_v62 = vld [vmem:[%s5368_s14 + $0x8] sm:$0xff]  }
 0x4c3   : > { %v1098_v12 = vpop.permute.xlu0 %1097 }
 0x4c4   : > { %4366 = vpow2.f32 %v1089_v63  ;;  %v1103_v14 = vsel %vm990_vm5, %v1098_v12, 0  ;;  %v4311_v63 = vld [vmem:[%s5368_s14] sm:$0xff]  }
 0x4c9   : > { %v4365_v0 = vpop.eup %4364 }
 0x4ca   : > { %v979_v2 = vsel %vm972_vm4, %v4365_v0, 0.0 }
 0x4cb   : > { %980 = vadd.xlane.f32.xlu1 %v979_v2 }
 0x4d1   : > { %v4367_v3 = vpop.eup %4366 }
 0x4d2   : > { %v1091_v4 = vsel %vm972_vm4, %v4367_v3, 0.0 }
 0x4d3   : > { %1092 = vadd.xlane.f32.xlu1 %v1091_v4 }
 0x4e4   : > { %985 = vrot.lane.b32.xlu1 %v921_v34, %s5393_s0  ;;  %s5453_s0 = smov 112  }
 0x554   : > { %v981_v5 = vpop.xlane.xlu1 %980 }
 0x555   : > { %4368 = vrcp.f32 %v981_v5 }
 0x55c   : > { %v1093_v6 = vpop.xlane.xlu1 %1092 }
 0x55d   : > { %4370 = vrcp.f32 %v1093_v6 }
 0x560   : > { %v986_v7 = vpop.permute.xlu1 %985 }
 0x561   : > { %v992_v8 = vsel %vm990_vm5, %v986_v7, 0 }
 0x562   : > { %v4369_v10 = vpop.eup %4368  ;;  %3961 = vmatpush3.bf16.msra.mxu1 %v992_v8 }
 0x563   : > { %3972 = vmatprep.subr.bf16.mxu1 %v4484_v1  ;;  %v983_v11 = vmul.f32 %v4369_v10, %v4365_v0  ;;  %v3617_v0 = vld [vmem:[%s5367_s13] ss:$0 sm:$0xff] }
 0x565   : > { %v984_v13 = vpack.c.bf16 %v983_v11, %v983_v11 }
 0x567   : > { %3963 = vmatmul.mubr.msk.bf16.vlgmr.msra.gmra.mxu1 %vm972_vm4, %v984_v13 }
 0x568   : > { %3973 = vmatpush3.bf16.msra.mxu1 %v1103_v14  ;;  %3974 = vmatprep.mubr.msk.bf16.mxu1 %vm4485_vm0, %v4484_v1 }
 0x569   : > { %3986 = vmatprep.subr.bf16.mxu1 %v4484_v1 }
 0x56a   : > { %v4371_v15 = vpop.eup %4370 }
 0x56b   : > { %v1095_v16 = vmul.f32 %v4371_v15, %v4367_v3 }
 0x56d   : > { %v1096_v17 = vpack.c.bf16 %v1095_v16, %v1095_v16 }
 0x56f   : > { %3975 = vmatmul.mubr.msk.bf16.vlgmr.msra.gmra.mxu1 %vm972_vm4, %v1096_v17 }
 0x570   : > { %3990 = vmatprep.mubr.msk.bf16.mxu1 %vm4485_vm0, %v4484_v1 }
 0x627   : > { %v1028_v20 = vpop.f32.mrf.mxu1 }
 0x629   : > { %v3964_v21 = vpop.f32.mrf.mxu1 }
 0x62b   : > { %v1031_v22 = vpop.f32.mrf.mxu1 }
 0x62d   : > { %v3965_v23 = vpop.f32.mrf.mxu1 }
 0x62f   : > { %v1139_v24 = vpop.f32.mrf.mxu1 }
 0x630   : > { %1146 = vrot.lane.b32.xlu1 %v1139_v24, %s5401_s8  ;;  %s5458_s8 = sld [smem:[#allocation26_spill]] }
 0x631   : > { %v3976_v25 = vpop.f32.mrf.mxu1 }
 0x633   : > { %v1142_v26 = vpop.f32.mrf.mxu1 }
 0x635   : > { %v3977_v27 = vpop.f32.mrf.mxu1 }
 0x6a2   : > { %v1147_v28 = vpop.permute.xlu1 %1146 }
 0x6a3   : > { %v1149_v29 = vsel %vm783_vm1, %v1028_v20, %v1147_v28 }
 0x6a4   : > { %v1154_v30 = vpack.c.bf16 %v1149_v29, %v1149_v29 }
 0x6a6   : > { %3983 = vmatmul.mubr.msk.bf16.vlgmr.msra.gmra.mxu0 %vm831_vm2, %v1154_v30 }
 0x6a7   : > { %4010 = vmatprep.mubr.msk.bf16.mxu0 %vm4485_vm0, %v4484_v1  ;;  %3995 = vmatpush3.bf16.msra.mxu0 %v4304_v56 }
 0x6a8   : > { %3996 = vmatprep.subr.bf16.mxu0 %v4484_v1 }
 0x6ab   : > { %3997 = vmatpush3.bf16.msra.mxu0 %v4305_v57 }
 0x6ac   : > { %3998 = vmatprep.subr.bf16.mxu0 %v4484_v1 }
 0x6af   : > { %3999 = vmatpush3.bf16.msra.mxu0 %v4306_v58 }
 0x6b0   : > { %4000 = vmatprep.subr.bf16.mxu0 %v4484_v1 }
 0x6b3   : > { %4001 = vmatpush3.bf16.msra.mxu0 %v4307_v59 }
 0x6b4   : > { %4002 = vmatprep.subr.bf16.mxu0 %v4484_v1 }
 0x6b7   : > { %4003 = vmatpush3.bf16.msra.mxu0 %v4308_v60 }
 0x6b8   : > { %4004 = vmatprep.subr.bf16.mxu0 %v4484_v1 }
 0x6bb   : > { %4005 = vmatpush3.bf16.msra.mxu0 %v4309_v61 }
 0x6bc   : > { %4006 = vmatprep.subr.bf16.mxu0 %v4484_v1 }
 0x6bf   : > { %4007 = vmatpush3.bf16.msra.mxu0 %v4310_v62 }
 0x6c0   : > { %4008 = vmatprep.subr.bf16.mxu0 %v4484_v1 }
 0x6c3   : > { %4009 = vmatpush3.bf16.msra.mxu0 %v4311_v63 }
 0x6c4   : > { %4040 = vmatprep.subr.bf16.mxu0 %v4484_v1 }
 0x766   : > { %v1204_v31 = vpop.f32.mrf.mxu0 }
 0x767   : > { %v1210_v33 = vadd.f32 %v1204_v31, %v4695_v9  ;;  %v4302_v9 = vld [vmem:[%s5366_s12 + $0x8] sm:$0xff]   ;;  %v4312_v31 = vld [vmem:[%s5442_s26 + $0x18] sm:$0xff]  }
 0x768   : > { %v3984_v34 = vpop.f32.mrf.mxu0  ;;  %3987 = vmatpush3.bf16.msra.mxu1 %v4302_v9 }
 0x769   : > { %v4775_v35 = vadd.f32 %v3614_v32, %v1210_v33  ;;  %3988 = vmatprep.subr.bf16.mxu1 %v4484_v1  ;;  %v4313_v32 = vld [vmem:[%s5442_s26 + $0x10] sm:$0xff]  }
 0x76a   : > { %v1207_v36 = vpop.f32.mrf.mxu0 }
 0x76b   : > { %v1219_v37 = vsel %vm831_vm2, %v4775_v35, 0.0 }
 0x76c   : > { %1220 = vadd.xlane.f32.xlu1 %v1219_v37  ;;  %v3985_v38 = vpop.f32.mrf.mxu0  ;;  %3989 = vmatpush3.bf16.msra.mxu1 %v4303_v44  ;;  %v3630_v37 = vld [vmem:[%s5443_s9 + $0x1] ss:$0 sm:$0xff] }
 0x76d   : > { %4014 = vmatprep.subr.bf16.mxu1 %v4484_v1 }
 0x7f5   : > { %v1221_v39 = vpop.xlane.xlu1 %1220 }
 0x7f6   : > { %v1222_v40 = vmul.f32 0.03125, %v1221_v39  ;;  %v3631_v39 = vld [vmem:[%s5444_s3 + $0x1] ss:$0 sm:$0xff] }
 0x7f8   : > { %v1223_v41 = vsub.f32 %v4775_v35, %v1222_v40 }
 0x7fa   : > { %v1224_v42 = vmul.f32 %v1223_v41, %v1223_v41 }
 0x7fc   : > { %v1225_v43 = vsel %vm831_vm2, %v1224_v42, 0.0 }
 0x7fd   : > { %1226 = vadd.xlane.f32.xlu0 %v1225_v43  ;;  %v3636_v43 = vld [vmem:[%s5445_s27 + $0x1] ss:$0 sm:$0xff] }
 0x886   : > { %v1227_v46 = vpop.xlane.xlu0 %1226 }
 0x887   : > { %v1228_v47 = vmul.f32 0.03125, %v1227_v46 }
 0x889   : > { %v1229_v48 = vadd.f32 1e-05, %v1228_v47 }
 0x88b   : > { %4372 = vrsqrt.f32 %v1229_v48 }
 0x898   : > { %v4373_v49 = vpop.eup %4372 }
 0x899   : > { %v1231_v51 = vmul.f32 %v4373_v49, %v1223_v41 }
 0x89b   : > { %v1236_v53 = vmul.f32 %v3615_v50, %v1231_v51 }
 0x89d   : > { %v1241_v54 = vadd.f32 %v3616_v52, %v1236_v53 }
 0x89f   : > { %v1246_v55 = vpack.c.bf16 %v1241_v54, %v1241_v54 }
 0x8a1   : > { %3991 = vmatmul.mubr.msk.bf16.vlgmr.msra.gmra.mxu1 %vm831_vm2, %v1246_v55 }
 0x8a2   : > { %4018 = vmatprep.mubr.msk.bf16.mxu1 %vm4485_vm0, %v4484_v1  ;;  %4015 = vmatpush3.bf16.msra.mxu1 %v4312_v31 }
 0x8a3   : > { %4016 = vmatprep.subr.bf16.mxu1 %v4484_v1 }
 0x8a6   : > { %4017 = vmatpush3.bf16.msra.mxu1 %v4313_v32  ;;  %v4314_v32 = vld [vmem:[%s5448_s5 + $0x18] sm:$0xff]  }
 0x8a7   : > { %4022 = vmatprep.subr.bf16.mxu1 %v4484_v1 }
 0x961   : > { %v1301_v2 = vpop.f32.mrf.mxu1 }
 0x962   : > { %v1302_v3 = vadd.f32 %v3617_v0, %v1301_v2 }
 0x963   : > { %v3992_v4 = vpop.f32.mrf.mxu1 }
 0x964   : > { %v1307_v5 = vmul.f32 %v1302_v3, %v1302_v3 }
 0x965   : > { %v1304_v6 = vpop.f32.mrf.mxu1 }
 0x966   : > { %v1308_v7 = vmul.f32 %v1307_v5, %v1302_v3 }
 0x967   : > { %v3993_v8 = vpop.f32.mrf.mxu1 }
 0x968   : > { %v1309_v10 = vmul.f32 0.044715, %v1308_v7 }
 0x96a   : > { %v1310_v11 = vadd.f32 %v1309_v10, %v1302_v3 }
 0x96c   : > { %v1311_v12 = vmul.f32 0.7978846, %v1310_v11 }
 0x96e   : > { %4374 = vtanh.f32 %v1311_v12 }
 0x97b   : > { %v4375_v13 = vpop.eup %4374 }
 0x97c   : > { %v1313_v14 = vadd.f32 1.0, %v4375_v13 }
 0x97e   : > { %v1314_v15 = vmul.f32 0.5, %v1313_v14 }
 0x980   : > { %v1315_v16 = vmul.f32 %v1314_v15, %v1302_v3 }
 0x982   : > { %v1332_v17 = vpack.c.bf16 %v1315_v16, %v1315_v16 }
 0x984   : > { %4011 = vmatmul.mubr.bf16.vlgmr.msra.gmra.mxu0 %v1332_v17 }
 0x985   : > { %4042 = vmatprep.mubr.msk.bf16.mxu0 %vm4485_vm0, %v4484_v1 }
 0xa44   : > { %v1415_v18 = vpop.f32.mrf.mxu0 }
 0xa45   : > { %v1421_v20 = vadd.f32 %v1415_v18, %v4775_v35 }
 0xa46   : > { %v4012_v21 = vpop.f32.mrf.mxu0 }
 0xa47   : > { %v4839_v22 = vadd.f32 %v3629_v19, %v1421_v20 }
 0xa48   : > { %v1418_v23 = vpop.f32.mrf.mxu0 }
 0xa49   : > { %v1430_v24 = vsel %vm831_vm2, %v4839_v22, 0.0 }
 0xa4a   : > { %1431 = vadd.xlane.f32.xlu1 %v1430_v24  ;;  %v4013_v25 = vpop.f32.mrf.mxu0 }
 0xad3   : > { %v1432_v26 = vpop.xlane.xlu1 %1431 }
 0xad4   : > { %v1433_v27 = vmul.f32 0.03125, %v1432_v26 }
 0xad6   : > { %v1434_v28 = vsub.f32 %v4839_v22, %v1433_v27 }
 0xad8   : > { %v1435_v29 = vmul.f32 %v1434_v28, %v1434_v28 }
 0xada   : > { %v1436_v30 = vsel %vm831_vm2, %v1435_v29, 0.0 }
 0xadb   : > { %1437 = vadd.xlane.f32.xlu1 %v1436_v30 }
 0xb64   : > { %v1438_v33 = vpop.xlane.xlu1 %1437 }
 0xb65   : > { %v1439_v34 = vmul.f32 0.03125, %v1438_v33  ;;  %v4315_v33 = vld [vmem:[%s5448_s5 + $0x10] sm:$0xff]  }
 0xb67   : > { %v1440_v35 = vadd.f32 1e-05, %v1439_v34 }
 0xb69   : > { %4376 = vrsqrt.f32 %v1440_v35 }
 0xb76   : > { %v4377_v36 = vpop.eup %4376 }
 0xb77   : > { %v1442_v38 = vmul.f32 %v4377_v36, %v1434_v28 }
 0xb79   : > { %v1447_v40 = vmul.f32 %v3630_v37, %v1442_v38 }
 0xb7b   : > { %v1452_v41 = vadd.f32 %v3631_v39, %v1447_v40 }
 0xb7d   : > { %v1458_v42 = vpack.c.bf16 %v1452_v41, %v1452_v41 }
 0xb7f   : > { %4019 = vmatmul.mubr.msk.bf16.vlgmr.msra.gmra.mxu1 %vm831_vm2, %v1458_v42  ;;  %v3651_v42 = vld [vmem:[%s5450_s1 + $0x1] ss:$0 sm:$0xff] }
 0xb80   : > { %4024 = vmatprep.mubr.msk.bf16.mxu1 %vm4485_vm0, %v4484_v1 }
 0xc3f   : > { %v1513_v9 = vpop.f32.mrf.mxu1 }
 0xc40   : > { %v1514_v44 = vadd.f32 %v3636_v43, %v1513_v9 }
 0xc41   : > { %v4020_v46 = vpop.f32.mrf.mxu1 }
 0xc42   : > { %v1519_v47 = vpack.c.bf16 %v1514_v44, %v1514_v44 }
 0xc43   : > { %v1516_v48 = vpop.f32.mrf.mxu1 }
 0xc44   : > { %1521 = vrot.lane.b32.xlu0 %v1519_v47, %s5451_s4 }
 0xc45   : > { %v4021_v49 = vpop.f32.mrf.mxu1 }
 0xc48   : > { %1632 = vrot.lane.b32.xlu0 %v1519_v47, %s5452_s28 }
 0xc4c   : > { %1630 = vrot.lane.b32.xlu0 %v1519_v47, %s5453_s0 }
 0xcb6   : > { %v1522_v50 = vpop.permute.xlu0 %1521 }
 0xcb7   : > { %v1527_v51 = vsel %vm783_vm1, %v1522_v50, 0 }
 0xcb8   : > { %4023 = vmatpush3.bf16.xpose.msra.mxu1 %v1527_v51 }
 0xcb9   : > { %4028 = vmatprep.subr.bf16.mxu1 %v4484_v1 }
 0xcba   : > { %v1633_v5 = vpop.permute.xlu0 %1632 }
 0xcbb   : > { %v1638_v7 = vsel %vm783_vm1, %v1633_v5, 0  ;;  %v4321_v5 = vld [vmem:[%s5368_s14 + $0x60] sm:$0xff]  }
 0xcbe   : > { %v1631_v8 = vpop.permute.xlu0 %1630 }
 0xcbf   : > { %4025 = vmatmul.mubr.msk.bf16.vlgmr.msra.gmra.mxu1 %vm783_vm1, %v1519_v47 }
 0xcc0   : > { %4030 = vmatprep.mubr.msk.bf16.mxu1 %vm4485_vm0, %v4484_v1 }
 0xd7f   : > { %v1563_v52 = vpop.f32.mrf.mxu1 }
 0xd80   : > { %v1569_v53 = vsel %vm4734_vm3, %v1563_v52, -1e+30 }
 0xd81   : > { %v4026_v54 = vpop.f32.mrf.mxu1  ;;  %v1570_v55 = vsel %vm972_vm4, %v1569_v53, -inf }
 0xd82   : > { %1571 = vmax.xlane.f32.xlu1 %v1570_v55  ;;  %v4317_v54 = vld [vmem:[%s5366_s12 + $0x10] sm:$0xff]  }
 0xd83   : > { %v1566_v56 = vpop.f32.mrf.mxu1 }
 0xd85   : > { %v4027_v57 = vpop.f32.mrf.mxu1 }
 0xe0b   : > { %v1572_v58 = vpop.xlane.xlu1 %1571 }
 0xe0c   : > { %v1573_v59 = vsub.f32 %v1569_v53, %v1572_v58 }
 0xe0e   : > { %v1574_v60 = vmul.f32 1.442695, %v1573_v59  ;;  %v3652_v59 = vld [vmem:[%s5364_s10 + $0x1] ss:$0 sm:$0xff] }
 0xe10   : > { %4378 = vpow2.f32 %v1574_v60 }
 0xe1d   : > { %v4379_v61 = vpop.eup %4378 }
 0xe1e   : > { %v1576_v62 = vsel %vm972_vm4, %v4379_v61, 0.0 }
 0xe1f   : > { %1577 = vadd.xlane.f32.xlu1 %v1576_v62 }
 0xe30   : > { %1582 = vrot.lane.b32.xlu1 %v1519_v47, %s5454_s29 }
 0xea8   : > { %v1578_v63 = vpop.xlane.xlu1 %1577 }
 0xea9   : > { %4380 = vrcp.f32 %v1578_v63 }
 0xeac   : > { %v1583_v0 = vpop.permute.xlu1 %1582 }
 0xead   : > { %v1588_v2 = vsel %vm990_vm5, %v1583_v0, 0 }
 0xeae   : > { %4029 = vmatpush3.bf16.msra.mxu1 %v1588_v2  ;;  %v4318_v2 = vld [vmem:[%s5368_s14 + $0x78] sm:$0xff]  }
 0xeaf   : > { %4034 = vmatprep.subr.bf16.mxu1 %v4484_v1 }
 0xeb6   : > { %v4381_v3 = vpop.eup %4380 }
 0xeb7   : > { %v1580_v4 = vmul.f32 %v4381_v3, %v4379_v61  ;;  %v3653_v61 = vld [vmem:[%s5365_s11 + $0x1] ss:$0 sm:$0xff]  ;;  %v4319_v3 = vld [vmem:[%s5368_s14 + $0x70] sm:$0xff]  }
 0xeb9   : > { %v1581_v6 = vpack.c.bf16 %v1580_v4, %v1580_v4  ;;  %v4320_v4 = vld [vmem:[%s5368_s14 + $0x68] sm:$0xff]  }
 0xebb   : > { %4031 = vmatmul.mubr.msk.bf16.vlgmr.msra.gmra.mxu1 %vm972_vm4, %v1581_v6  ;;  %v4322_v6 = vld [vmem:[%s5368_s14 + $0x58] sm:$0xff]  }
 0xebc   : > { %4035 = vmatpush3.bf16.xpose.msra.mxu1 %v1638_v7  ;;  %4036 = vmatprep.mubr.msk.bf16.mxu1 %vm4485_vm0, %v4484_v1  ;;  %v4323_v7 = vld [vmem:[%s5368_s14 + $0x50] sm:$0xff]  }
 0xebd   : > { %4046 = vmatprep.subr.bf16.mxu1 %v4484_v1 }
 0xec3   : > { %4037 = vmatmul.mubr.msk.bf16.vlgmr.msra.gmra.mxu1 %vm783_vm1, %v1631_v8  ;;  %v4324_v8 = vld [vmem:[%s5368_s14 + $0x48] sm:$0xff]  }
 0xec4   : > { %4050 = vmatprep.mubr.msk.bf16.mxu1 %vm4485_vm0, %v4484_v1  ;;  %4047 = vmatpush3.bf16.msra.mxu1 %v4314_v32 }
 0xec5   : > { %4048 = vmatprep.subr.bf16.mxu1 %v4484_v1 }
 0xec8   : > { %4049 = vmatpush3.bf16.msra.mxu1 %v4315_v33 }
 0xec9   : > { %4062 = vmatprep.subr.bf16.mxu1 %v4484_v1 }
 0xf7b   : > { %v1624_v10 = vpop.f32.mrf.mxu1 }
 0xf7d   : > { %v4032_v11 = vpop.f32.mrf.mxu1 }
 0xf7e   : > { %v3658_v11 = vld [vmem:[%s5367_s13 + $0x1] ss:$0 sm:$0xff] }
 0xf7f   : > { %v1627_v12 = vpop.f32.mrf.mxu1 }
 0xf81   : > { %v4033_v13 = vpop.f32.mrf.mxu1 }
 0xf83   : > { %v1674_v14 = vpop.f32.mrf.mxu1 }
 0xf84   : > { %v1680_v15 = vsel %vm4734_vm3, %v1674_v14, -1e+30 }
 0xf85   : > { %v4038_v16 = vpop.f32.mrf.mxu1  ;;  %v1681_v17 = vsel %vm972_vm4, %v1680_v15, -inf }
 0xf86   : > { %1682 = vmax.xlane.f32.xlu1 %v1681_v17 }
 0xf87   : > { %v1677_v18 = vpop.f32.mrf.mxu1 }
 0xf89   : > { %v4039_v19 = vpop.f32.mrf.mxu1 }
0x100f   : > { %v1683_v20 = vpop.xlane.xlu1 %1682 }
0x1010   : > { %v1684_v21 = vsub.f32 %v1680_v15, %v1683_v20 }
0x1012   : > { %v1685_v23 = vmul.f32 1.442695, %v1684_v21 }
0x1014   : > { %4382 = vpow2.f32 %v1685_v23 }
0x1021   : > { %v4383_v24 = vpop.eup %4382 }
0x1022   : > { %v1687_v25 = vsel %vm972_vm4, %v4383_v24, 0.0 }
0x1023   : > { %1688 = vadd.xlane.f32.xlu0 %v1687_v25 }
0x1039   : > { %1693 = vrot.lane.b32.xlu0 %v1519_v47, %s5455_s30 }
0x10ac   : > { %v1689_v26 = vpop.xlane.xlu0 %1688 }
0x10ad   : > { %4384 = vrcp.f32 %v1689_v26 }
0x10b0   : > { %v1694_v27 = vpop.permute.xlu0 %1693 }
0x10b1   : > { %v1699_v28 = vsel %vm990_vm5, %v1694_v27, 0 }
0x10b2   : > { %4041 = vmatpush3.bf16.msra.mxu0 %v1699_v28 }
0x10b3   : > { %4054 = vmatprep.subr.bf16.mxu0 %v4484_v1 }
0x10ba   : > { %v4385_v29 = vpop.eup %4384 }
0x10bb   : > { %v1691_v30 = vmul.f32 %v4385_v29, %v4383_v24  ;;  %v3686_v29 = vld [vmem:[%s5369_s15 + $0x1] ss:$0 sm:$0xff] }
0x10bd   : > { %v1692_v31 = vpack.c.bf16 %v1691_v30, %v1691_v30 }
0x10bf   : > { %4043 = vmatmul.mubr.msk.bf16.vlgmr.msra.gmra.mxu0 %vm972_vm4, %v1692_v31 }
0x10c0   : > { %4058 = vmatprep.mubr.msk.bf16.mxu0 %vm4485_vm0, %v4484_v1 }
0x117f   : > { %v1735_v34 = vpop.f32.mrf.mxu0 }
0x1180   : > { %1742 = vrot.lane.b32.xlu1 %v1735_v34, %s5456_s7 }
0x1181   : > { %v4044_v35 = vpop.f32.mrf.mxu0 }
0x1183   : > { %v1738_v36 = vpop.f32.mrf.mxu0 }
0x1185   : > { %v4045_v37 = vpop.f32.mrf.mxu0 }
0x11f2   : > { %v1743_v38 = vpop.permute.xlu1 %1742 }
0x11f3   : > { %v1745_v39 = vsel %vm783_vm1, %v1624_v10, %v1743_v38  ;;  %v4325_v10 = vld [vmem:[%s5368_s14 + $0x40] sm:$0xff]  }
0x11f4   : > { %v1751_v40 = vpack.c.bf16 %v1745_v39, %v1745_v39 }
0x11f6   : > { %4051 = vmatmul.mubr.msk.bf16.vlgmr.msra.gmra.mxu1 %vm831_vm2, %v1751_v40 }
0x11f7   : > { %4078 = vmatprep.mubr.msk.bf16.mxu1 %vm4485_vm0, %v4484_v1  ;;  %4063 = vmatpush3.bf16.msra.mxu1 %v4318_v2 }
0x11f8   : > { %4064 = vmatprep.subr.bf16.mxu1 %v4484_v1 }
0x11fb   : > { %4065 = vmatpush3.bf16.msra.mxu1 %v4319_v3 }
0x11fc   : > { %4066 = vmatprep.subr.bf16.mxu1 %v4484_v1 }
0x11ff   : > { %4067 = vmatpush3.bf16.msra.mxu1 %v4320_v4 }
0x1200   : > { %4068 = vmatprep.subr.bf16.mxu1 %v4484_v1 }
0x1203   : > { %4069 = vmatpush3.bf16.msra.mxu1 %v4321_v5 }
0x1204   : > { %4070 = vmatprep.subr.bf16.mxu1 %v4484_v1 }
0x1207   : > { %4071 = vmatpush3.bf16.msra.mxu1 %v4322_v6 }
0x1208   : > { %4072 = vmatprep.subr.bf16.mxu1 %v4484_v1 }
0x120b   : > { %4073 = vmatpush3.bf16.msra.mxu1 %v4323_v7 }
0x120c   : > { %4074 = vmatprep.subr.bf16.mxu1 %v4484_v1 }
0x120f   : > { %4075 = vmatpush3.bf16.msra.mxu1 %v4324_v8 }
0x1210   : > { %4076 = vmatprep.subr.bf16.mxu1 %v4484_v1 }
0x1213   : > { %4077 = vmatpush3.bf16.msra.mxu1 %v4325_v10 }
0x1214   : > { %4108 = vmatprep.subr.bf16.mxu1 %v4484_v1 }
0x12b6   : > { %v1801_v41 = vpop.f32.mrf.mxu1 }
0x12b7   : > { %v1807_v43 = vadd.f32 %v1801_v41, %v4839_v22  ;;  %v4316_v22 = vld [vmem:[%s5366_s12 + $0x18] sm:$0xff]   ;;  %v4326_v41 = vld [vmem:[%s5442_s26 + $0x28] sm:$0xff]  }
0x12b8   : > { %v4052_v9 = vpop.f32.mrf.mxu1  ;;  %4055 = vmatpush3.bf16.msra.mxu0 %v4316_v22 }
0x12b9   : > { %v4915_v44 = vadd.f32 %v3651_v42, %v1807_v43  ;;  %4056 = vmatprep.subr.bf16.mxu0 %v4484_v1  ;;  %v4327_v42 = vld [vmem:[%s5442_s26 + $0x20] sm:$0xff]  }
0x12ba   : > { %v1804_v46 = vpop.f32.mrf.mxu1 }
0x12bb   : > { %v1816_v47 = vsel %vm831_vm2, %v4915_v44, 0.0 }
0x12bc   : > { %1817 = vadd.xlane.f32.xlu1 %v1816_v47  ;;  %v4053_v48 = vpop.f32.mrf.mxu1  ;;  %4057 = vmatpush3.bf16.msra.mxu0 %v4317_v54  ;;  %v3687_v47 = vld [vmem:[%s5443_s9 + $0x2] ss:$0 sm:$0xff] }
0x12bd   : > { %4082 = vmatprep.subr.bf16.mxu0 %v4484_v1 }
0x1345   : > { %v1818_v49 = vpop.xlane.xlu1 %1817 }
0x1346   : > { %v1819_v50 = vmul.f32 0.03125, %v1818_v49  ;;  %v3688_v49 = vld [vmem:[%s5444_s3 + $0x2] ss:$0 sm:$0xff] }
0x1348   : > { %v1820_v51 = vsub.f32 %v4915_v44, %v1819_v50 }
0x134a   : > { %v1821_v52 = vmul.f32 %v1820_v51, %v1820_v51 }
0x134c   : > { %v1822_v53 = vsel %vm831_vm2, %v1821_v52, 0.0 }
0x134d   : > { %1823 = vadd.xlane.f32.xlu0 %v1822_v53  ;;  %v3693_v53 = vld [vmem:[%s5445_s27 + $0x2] ss:$0 sm:$0xff] }
0x13d6   : > { %v1824_v55 = vpop.xlane.xlu0 %1823 }
0x13d7   : > { %v1825_v56 = vmul.f32 0.03125, %v1824_v55 }
0x13d9   : > { %v1826_v57 = vadd.f32 1e-05, %v1825_v56 }
0x13db   : > { %4386 = vrsqrt.f32 %v1826_v57 }
0x13e8   : > { %v4387_v58 = vpop.eup %4386 }
0x13e9   : > { %v1828_v60 = vmul.f32 %v4387_v58, %v1820_v51 }
0x13eb   : > { %v1833_v62 = vmul.f32 %v3652_v59, %v1828_v60 }
0x13ed   : > { %v1838_v63 = vadd.f32 %v3653_v61, %v1833_v62 }
0x13ef   : > { %v1844_v0 = vpack.c.bf16 %v1838_v63, %v1838_v63 }
0x13f1   : > { %4059 = vmatmul.mubr.msk.bf16.vlgmr.msra.gmra.mxu0 %vm831_vm2, %v1844_v0 }
0x13f2   : > { %4086 = vmatprep.mubr.msk.bf16.mxu0 %vm4485_vm0, %v4484_v1  ;;  %4083 = vmatpush3.bf16.msra.mxu0 %v4326_v41 }
0x13f3   : > { %4084 = vmatprep.subr.bf16.mxu0 %v4484_v1 }
0x13f6   : > { %4085 = vmatpush3.bf16.msra.mxu0 %v4327_v42  ;;  %v4328_v42 = vld [vmem:[%s5448_s5 + $0x28] sm:$0xff]  }
0x13f7   : > { %4090 = vmatprep.subr.bf16.mxu0 %v4484_v1 }
0x14b1   : > { %v1899_v12 = vpop.f32.mrf.mxu0 }
0x14b2   : > { %v1900_v13 = vadd.f32 %v3658_v11, %v1899_v12 }
0x14b3   : > { %v4060_v14 = vpop.f32.mrf.mxu0 }
0x14b4   : > { %v1905_v15 = vmul.f32 %v1900_v13, %v1900_v13 }
0x14b5   : > { %v1902_v16 = vpop.f32.mrf.mxu0 }
0x14b6   : > { %v1906_v17 = vmul.f32 %v1905_v15, %v1900_v13 }
0x14b7   : > { %v4061_v18 = vpop.f32.mrf.mxu0 }
0x14b8   : > { %v1907_v19 = vmul.f32 0.044715, %v1906_v17 }
0x14ba   : > { %v1908_v20 = vadd.f32 %v1907_v19, %v1900_v13 }
0x14bc   : > { %v1909_v21 = vmul.f32 0.7978846, %v1908_v20 }
0x14be   : > { %4388 = vtanh.f32 %v1909_v21 }
0x14cb   : > { %v4389_v23 = vpop.eup %4388 }
0x14cc   : > { %v1911_v24 = vadd.f32 1.0, %v4389_v23 }
0x14ce   : > { %v1912_v25 = vmul.f32 0.5, %v1911_v24 }
0x14d0   : > { %v1913_v26 = vmul.f32 %v1912_v25, %v1900_v13 }
0x14d2   : > { %v1931_v27 = vpack.c.bf16 %v1913_v26, %v1913_v26 }
0x14d4   : > { %4079 = vmatmul.mubr.bf16.vlgmr.msra.gmra.mxu1 %v1931_v27 }
0x14d5   : > { %4110 = vmatprep.mubr.msk.bf16.mxu1 %vm4485_vm0, %v4484_v1 }
0x1594   : > { %v2014_v28 = vpop.f32.mrf.mxu1 }
0x1595   : > { %v2020_v30 = vadd.f32 %v2014_v28, %v4915_v44 }
0x1596   : > { %v4080_v31 = vpop.f32.mrf.mxu1 }
0x1597   : > { %v4979_v32 = vadd.f32 %v3686_v29, %v2020_v30 }
0x1598   : > { %v2017_v33 = vpop.f32.mrf.mxu1 }
0x1599   : > { %v2029_v34 = vsel %vm831_vm2, %v4979_v32, 0.0 }
0x159a   : > { %2030 = vadd.xlane.f32.xlu0 %v2029_v34  ;;  %v4081_v35 = vpop.f32.mrf.mxu1 }
0x1623   : > { %v2031_v36 = vpop.xlane.xlu0 %2030 }
0x1624   : > { %v2032_v37 = vmul.f32 0.03125, %v2031_v36 }
0x1626   : > { %v2033_v38 = vsub.f32 %v4979_v32, %v2032_v37 }
0x1628   : > { %v2034_v39 = vmul.f32 %v2033_v38, %v2033_v38 }
0x162a   : > { %v2035_v40 = vsel %vm831_vm2, %v2034_v39, 0.0 }
0x162b   : > { %2036 = vadd.xlane.f32.xlu1 %v2035_v40 }
0x16b4   : > { %v2037_v43 = vpop.xlane.xlu1 %2036 }
0x16b5   : > { %v2038_v9 = vmul.f32 0.03125, %v2037_v43  ;;  %v4329_v43 = vld [vmem:[%s5448_s5 + $0x20] sm:$0xff]  }
0x16b7   : > { %v2039_v44 = vadd.f32 1e-05, %v2038_v9 }
0x16b9   : > { %4390 = vrsqrt.f32 %v2039_v44 }
0x16c6   : > { %v4391_v46 = vpop.eup %4390 }
0x16c7   : > { %v2041_v48 = vmul.f32 %v4391_v46, %v2033_v38 }
0x16c9   : > { %v2046_v50 = vmul.f32 %v3687_v47, %v2041_v48 }
0x16cb   : > { %v2051_v51 = vadd.f32 %v3688_v49, %v2046_v50 }
0x16cd   : > { %v2057_v52 = vpack.c.bf16 %v2051_v51, %v2051_v51 }
0x16cf   : > { %4087 = vmatmul.mubr.msk.bf16.vlgmr.msra.gmra.mxu0 %vm831_vm2, %v2057_v52  ;;  %v3708_v52 = vld [vmem:[%s5450_s1 + $0x2] ss:$0 sm:$0xff] }
0x16d0   : > { %4092 = vmatprep.mubr.msk.bf16.mxu0 %vm4485_vm0, %v4484_v1 }
0x178f   : > { %v2112_v22 = vpop.f32.mrf.mxu0 }
0x1790   : > { %v2113_v54 = vadd.f32 %v3693_v53, %v2112_v22 }
0x1791   : > { %v4088_v55 = vpop.f32.mrf.mxu0 }
0x1792   : > { %v2118_v56 = vpack.c.bf16 %v2113_v54, %v2113_v54 }
0x1793   : > { %v2115_v57 = vpop.f32.mrf.mxu0 }
0x1794   : > { %2120 = vrot.lane.b32.xlu0 %v2118_v56, %s5451_s4 }
0x1795   : > { %v4089_v58 = vpop.f32.mrf.mxu0 }
0x1798   : > { %2231 = vrot.lane.b32.xlu0 %v2118_v56, %s5452_s28 }
0x179c   : > { %2229 = vrot.lane.b32.xlu0 %v2118_v56, %s5453_s0 }
0x1806   : > { %v2121_v59 = vpop.permute.xlu0 %2120 }
0x1807   : > { %v2126_v60 = vsel %vm783_vm1, %v2121_v59, 0 }
0x1808   : > { %4091 = vmatpush3.bf16.xpose.msra.mxu0 %v2126_v60 }
0x1809   : > { %4096 = vmatprep.subr.bf16.mxu0 %v4484_v1 }
0x180a   : > { %v2232_v15 = vpop.permute.xlu0 %2231 }
0x180b   : > { %v2237_v17 = vsel %vm783_vm1, %v2232_v15, 0  ;;  %v4335_v15 = vld [vmem:[%s5368_s14 + $0xa0] sm:$0xff]  }
0x180e   : > { %v2230_v18 = vpop.permute.xlu0 %2229 }
0x180f   : > { %4093 = vmatmul.mubr.msk.bf16.vlgmr.msra.gmra.mxu0 %vm783_vm1, %v2118_v56 }
0x1810   : > { %4098 = vmatprep.mubr.msk.bf16.mxu0 %vm4485_vm0, %v4484_v1 }
0x18cf   : > { %v2162_v61 = vpop.f32.mrf.mxu0 }
0x18d0   : > { %v2168_v62 = vsel %vm4734_vm3, %v2162_v61, -1e+30 }
0x18d1   : > { %v4094_v63 = vpop.f32.mrf.mxu0  ;;  %v2169_v0 = vsel %vm972_vm4, %v2168_v62, -inf }
0x18d2   : > { %2170 = vmax.xlane.f32.xlu1 %v2169_v0  ;;  %v4331_v63 = vld [vmem:[%s5366_s12 + $0x20] sm:$0xff]  }
0x18d3   : > { %v2165_v2 = vpop.f32.mrf.mxu0 }
0x18d5   : > { %v4095_v3 = vpop.f32.mrf.mxu0 }
0x195b   : > { %v2171_v4 = vpop.xlane.xlu1 %2170 }
0x195c   : > { %v2172_v5 = vsub.f32 %v2168_v62, %v2171_v4 }
0x195e   : > { %v2173_v6 = vmul.f32 1.442695, %v2172_v5  ;;  %v3709_v5 = vld [vmem:[%s5364_s10 + $0x2] ss:$0 sm:$0xff] }
0x1960   : > { %4392 = vpow2.f32 %v2173_v6 }
0x196d   : > { %v4393_v7 = vpop.eup %4392 }
0x196e   : > { %v2175_v8 = vsel %vm972_vm4, %v4393_v7, 0.0 }
0x196f   : > { %2176 = vadd.xlane.f32.xlu1 %v2175_v8 }
0x1980   : > { %2181 = vrot.lane.b32.xlu1 %v2118_v56, %s5454_s29 }
0x19f8   : > { %v2177_v10 = vpop.xlane.xlu1 %2176 }
0x19f9   : > { %4394 = vrcp.f32 %v2177_v10 }
0x19fc   : > { %v2182_v11 = vpop.permute.xlu1 %2181 }
0x19fd   : > { %v2187_v12 = vsel %vm990_vm5, %v2182_v11, 0 }
0x19fe   : > { %4097 = vmatpush3.bf16.msra.mxu0 %v2187_v12  ;;  %v4332_v12 = vld [vmem:[%s5368_s14 + $0xb8] sm:$0xff]  }
0x19ff   : > { %4102 = vmatprep.subr.bf16.mxu0 %v4484_v1 }
0x1a06   : > { %v4395_v13 = vpop.eup %4394 }
0x1a07   : > { %v2179_v14 = vmul.f32 %v4395_v13, %v4393_v7  ;;  %v3710_v7 = vld [vmem:[%s5365_s11 + $0x2] ss:$0 sm:$0xff]  ;;  %v4333_v13 = vld [vmem:[%s5368_s14 + $0xb0] sm:$0xff]  }
0x1a09   : > { %v2180_v16 = vpack.c.bf16 %v2179_v14, %v2179_v14  ;;  %v4334_v14 = vld [vmem:[%s5368_s14 + $0xa8] sm:$0xff]  }
0x1a0b   : > { %4099 = vmatmul.mubr.msk.bf16.vlgmr.msra.gmra.mxu0 %vm972_vm4, %v2180_v16  ;;  %v4336_v16 = vld [vmem:[%s5368_s14 + $0x98] sm:$0xff]  }
0x1a0c   : > { %4103 = vmatpush3.bf16.xpose.msra.mxu0 %v2237_v17  ;;  %4104 = vmatprep.mubr.msk.bf16.mxu0 %vm4485_vm0, %v4484_v1  ;;  %v4337_v17 = vld [vmem:[%s5368_s14 + $0x90] sm:$0xff]  }
0x1a0d   : > { %4114 = vmatprep.subr.bf16.mxu0 %v4484_v1 }
0x1a13   : > { %4105 = vmatmul.mubr.msk.bf16.vlgmr.msra.gmra.mxu0 %vm783_vm1, %v2230_v18  ;;  %v4338_v18 = vld [vmem:[%s5368_s14 + $0x88] sm:$0xff]  }
0x1a14   : > { %4118 = vmatprep.mubr.msk.bf16.mxu0 %vm4485_vm0, %v4484_v1  ;;  %4115 = vmatpush3.bf16.msra.mxu0 %v4328_v42 }
0x1a15   : > { %4116 = vmatprep.subr.bf16.mxu0 %v4484_v1 }
0x1a18   : > { %4117 = vmatpush3.bf16.msra.mxu0 %v4329_v43 }
0x1a19   : > { %4130 = vmatprep.subr.bf16.mxu0 %v4484_v1 }
0x1acb   : > { %v2223_v19 = vpop.f32.mrf.mxu0 }
0x1acd   : > { %v4100_v20 = vpop.f32.mrf.mxu0 }
0x1ace   : > { %v3715_v20 = vld [vmem:[%s5367_s13 + $0x2] ss:$0 sm:$0xff] }
0x1acf   : > { %v2226_v21 = vpop.f32.mrf.mxu0 }
0x1ad1   : > { %v4101_v23 = vpop.f32.mrf.mxu0 }
0x1ad3   : > { %v2273_v24 = vpop.f32.mrf.mxu0 }
0x1ad4   : > { %v2279_v25 = vsel %vm4734_vm3, %v2273_v24, -1e+30 }
0x1ad5   : > { %v4106_v26 = vpop.f32.mrf.mxu0  ;;  %v2280_v27 = vsel %vm972_vm4, %v2279_v25, -inf }
0x1ad6   : > { %2281 = vmax.xlane.f32.xlu1 %v2280_v27 }
0x1ad7   : > { %v2276_v28 = vpop.f32.mrf.mxu0 }
0x1ad9   : > { %v4107_v29 = vpop.f32.mrf.mxu0 }
0x1b5f   : > { %v2282_v30 = vpop.xlane.xlu1 %2281 }
0x1b60   : > { %v2283_v31 = vsub.f32 %v2279_v25, %v2282_v30 }
0x1b62   : > { %v2284_v33 = vmul.f32 1.442695, %v2283_v31 }
0x1b64   : > { %4396 = vpow2.f32 %v2284_v33 }
0x1b71   : > { %v4397_v34 = vpop.eup %4396 }
0x1b72   : > { %v2286_v35 = vsel %vm972_vm4, %v4397_v34, 0.0 }
0x1b73   : > { %2287 = vadd.xlane.f32.xlu0 %v2286_v35 }
0x1b89   : > { %2292 = vrot.lane.b32.xlu0 %v2118_v56, %s5455_s30 }
0x1bfc   : > { %v2288_v36 = vpop.xlane.xlu0 %2287 }
0x1bfd   : > { %4398 = vrcp.f32 %v2288_v36 }
0x1c00   : > { %v2293_v37 = vpop.permute.xlu0 %2292 }
0x1c01   : > { %v2298_v38 = vsel %vm990_vm5, %v2293_v37, 0 }
0x1c02   : > { %4109 = vmatpush3.bf16.msra.mxu1 %v2298_v38 }
0x1c03   : > { %4122 = vmatprep.subr.bf16.mxu1 %v4484_v1 }
0x1c0a   : > { %v4399_v39 = vpop.eup %4398 }
0x1c0b   : > { %v2290_v40 = vmul.f32 %v4399_v39, %v4397_v34  ;;  %v3743_v39 = vld [vmem:[%s5369_s15 + $0x2] ss:$0 sm:$0xff] }
0x1c0d   : > { %v2291_v41 = vpack.c.bf16 %v2290_v40, %v2290_v40 }
0x1c0f   : > { %4111 = vmatmul.mubr.msk.bf16.vlgmr.msra.gmra.mxu1 %vm972_vm4, %v2291_v41 }
0x1c10   : > { %4126 = vmatprep.mubr.msk.bf16.mxu1 %vm4485_vm0, %v4484_v1 }
0x1ccf   : > { %v2334_v9 = vpop.f32.mrf.mxu1 }
0x1cd0   : > { %2341 = vrot.lane.b32.xlu1 %v2334_v9, %s5456_s7 }
0x1cd1   : > { %v4112_v44 = vpop.f32.mrf.mxu1 }
0x1cd3   : > { %v2337_v46 = vpop.f32.mrf.mxu1 }
0x1cd5   : > { %v4113_v47 = vpop.f32.mrf.mxu1 }
0x1d42   : > { %v2342_v48 = vpop.permute.xlu1 %2341 }
0x1d43   : > { %v2344_v49 = vsel %vm783_vm1, %v2223_v19, %v2342_v48  ;;  %v4339_v19 = vld [vmem:[%s5368_s14 + $0x80] sm:$0xff]  }
0x1d44   : > { %v2350_v50 = vpack.c.bf16 %v2344_v49, %v2344_v49 }
0x1d46   : > { %4119 = vmatmul.mubr.msk.bf16.vlgmr.msra.gmra.mxu0 %vm831_vm2, %v2350_v50 }
0x1d47   : > { %4146 = vmatprep.mubr.msk.bf16.mxu0 %vm4485_vm0, %v4484_v1  ;;  %4131 = vmatpush3.bf16.msra.mxu0 %v4332_v12 }
0x1d48   : > { %4132 = vmatprep.subr.bf16.mxu0 %v4484_v1 }
0x1d4b   : > { %4133 = vmatpush3.bf16.msra.mxu0 %v4333_v13 }
0x1d4c   : > { %4134 = vmatprep.subr.bf16.mxu0 %v4484_v1 }
0x1d4f   : > { %4135 = vmatpush3.bf16.msra.mxu0 %v4334_v14 }
0x1d50   : > { %4136 = vmatprep.subr.bf16.mxu0 %v4484_v1 }
0x1d53   : > { %4137 = vmatpush3.bf16.msra.mxu0 %v4335_v15 }
0x1d54   : > { %4138 = vmatprep.subr.bf16.mxu0 %v4484_v1 }
0x1d57   : > { %4139 = vmatpush3.bf16.msra.mxu0 %v4336_v16 }
0x1d58   : > { %4140 = vmatprep.subr.bf16.mxu0 %v4484_v1 }
0x1d5b   : > { %4141 = vmatpush3.bf16.msra.mxu0 %v4337_v17 }
0x1d5c   : > { %4142 = vmatprep.subr.bf16.mxu0 %v4484_v1 }
0x1d5f   : > { %4143 = vmatpush3.bf16.msra.mxu0 %v4338_v18 }
0x1d60   : > { %4144 = vmatprep.subr.bf16.mxu0 %v4484_v1 }
0x1d63   : > { %4145 = vmatpush3.bf16.msra.mxu0 %v4339_v19 }
0x1d64   : > { %4176 = vmatprep.subr.bf16.mxu0 %v4484_v1 }
0x1e06   : > { %v2400_v51 = vpop.f32.mrf.mxu0 }
0x1e07   : > { %v2406_v53 = vadd.f32 %v2400_v51, %v4979_v32  ;;  %v4330_v32 = vld [vmem:[%s5366_s12 + $0x28] sm:$0xff]   ;;  %v4340_v51 = vld [vmem:[%s5442_s26 + $0x38] sm:$0xff]  }
0x1e08   : > { %v4120_v22 = vpop.f32.mrf.mxu0  ;;  %4123 = vmatpush3.bf16.msra.mxu1 %v4330_v32 }
0x1e09   : > { %v5055_v54 = vadd.f32 %v3708_v52, %v2406_v53  ;;  %4124 = vmatprep.subr.bf16.mxu1 %v4484_v1  ;;  %v4341_v52 = vld [vmem:[%s5442_s26 + $0x30] sm:$0xff]  }
0x1e0a   : > { %v2403_v55 = vpop.f32.mrf.mxu0 }
0x1e0b   : > { %v2415_v56 = vsel %vm831_vm2, %v5055_v54, 0.0 }
0x1e0c   : > { %2416 = vadd.xlane.f32.xlu1 %v2415_v56  ;;  %v4121_v57 = vpop.f32.mrf.mxu0  ;;  %4125 = vmatpush3.bf16.msra.mxu1 %v4331_v63  ;;  %v3744_v56 = vld [vmem:[%s5443_s9 + $0x3] ss:$0 sm:$0xff] }
0x1e0d   : > { %4150 = vmatprep.subr.bf16.mxu1 %v4484_v1 }
0x1e95   : > { %v2417_v58 = vpop.xlane.xlu1 %2416 }
0x1e96   : > { %v2418_v59 = vmul.f32 0.03125, %v2417_v58  ;;  %v3745_v58 = vld [vmem:[%s5444_s3 + $0x3] ss:$0 sm:$0xff] }
0x1e98   : > { %v2419_v60 = vsub.f32 %v5055_v54, %v2418_v59 }
0x1e9a   : > { %v2420_v61 = vmul.f32 %v2419_v60, %v2419_v60 }
0x1e9c   : > { %v2421_v62 = vsel %vm831_vm2, %v2420_v61, 0.0 }
0x1e9d   : > { %2422 = vadd.xlane.f32.xlu0 %v2421_v62  ;;  %v3750_v62 = vld [vmem:[%s5445_s27 + $0x3] ss:$0 sm:$0xff] }
0x1f26   : > { %v2423_v0 = vpop.xlane.xlu0 %2422 }
0x1f27   : > { %v2424_v2 = vmul.f32 0.03125, %v2423_v0 }
0x1f29   : > { %v2425_v3 = vadd.f32 1e-05, %v2424_v2 }
0x1f2b   : > { %4400 = vrsqrt.f32 %v2425_v3 }
0x1f38   : > { %v4401_v4 = vpop.eup %4400 }
0x1f39   : > { %v2427_v6 = vmul.f32 %v4401_v4, %v2419_v60 }
0x1f3b   : > { %v2432_v8 = vmul.f32 %v3709_v5, %v2427_v6 }
0x1f3d   : > { %v2437_v10 = vadd.f32 %v3710_v7, %v2432_v8 }
0x1f3f   : > { %v2443_v11 = vpack.c.bf16 %v2437_v10, %v2437_v10 }
0x1f41   : > { %4127 = vmatmul.mubr.msk.bf16.vlgmr.msra.gmra.mxu1 %vm831_vm2, %v2443_v11 }
0x1f42   : > { %4154 = vmatprep.mubr.msk.bf16.mxu1 %vm4485_vm0, %v4484_v1  ;;  %4151 = vmatpush3.bf16.msra.mxu1 %v4340_v51  ;;  %v4342_v51 = vld [vmem:[%s5448_s5 + $0x38] sm:$0xff]  }
0x1f43   : > { %4152 = vmatprep.subr.bf16.mxu1 %v4484_v1 }
0x1f46   : > { %4153 = vmatpush3.bf16.msra.mxu1 %v4341_v52  ;;  %v4343_v52 = vld [vmem:[%s5448_s5 + $0x30] sm:$0xff]  }
0x1f47   : > { %4158 = vmatprep.subr.bf16.mxu1 %v4484_v1 }
0x2001   : > { %v2498_v21 = vpop.f32.mrf.mxu1 }
0x2002   : > { %v2499_v23 = vadd.f32 %v3715_v20, %v2498_v21 }
0x2003   : > { %v4128_v24 = vpop.f32.mrf.mxu1 }
0x2004   : > { %v2504_v25 = vmul.f32 %v2499_v23, %v2499_v23 }
0x2005   : > { %v2501_v26 = vpop.f32.mrf.mxu1 }
0x2006   : > { %v2505_v27 = vmul.f32 %v2504_v25, %v2499_v23 }
0x2007   : > { %v4129_v28 = vpop.f32.mrf.mxu1 }
0x2008   : > { %v2506_v29 = vmul.f32 0.044715, %v2505_v27 }
0x200a   : > { %v2507_v30 = vadd.f32 %v2506_v29, %v2499_v23 }
0x200c   : > { %v2508_v31 = vmul.f32 0.7978846, %v2507_v30 }
0x200e   : > { %4402 = vtanh.f32 %v2508_v31 }
0x201b   : > { %v4403_v33 = vpop.eup %4402 }
0x201c   : > { %v2510_v34 = vadd.f32 1.0, %v4403_v33 }
0x201e   : > { %v2511_v35 = vmul.f32 0.5, %v2510_v34 }
0x2020   : > { %v2512_v36 = vmul.f32 %v2511_v35, %v2499_v23 }
0x2022   : > { %v2530_v37 = vpack.c.bf16 %v2512_v36, %v2512_v36 }
0x2024   : > { %4147 = vmatmul.mubr.bf16.vlgmr.msra.gmra.mxu0 %v2530_v37 }
0x2025   : > { %4178 = vmatprep.mubr.msk.bf16.mxu0 %vm4485_vm0, %v4484_v1 }
0x20e4   : > { %v2613_v38 = vpop.f32.mrf.mxu0 }
0x20e5   : > { %v2619_v40 = vadd.f32 %v2613_v38, %v5055_v54 }
0x20e6   : > { %v4148_v41 = vpop.f32.mrf.mxu0 }
0x20e7   : > { %v5119_v42 = vadd.f32 %v3743_v39, %v2619_v40 }
0x20e8   : > { %v2616_v43 = vpop.f32.mrf.mxu0 }
0x20e9   : > { %v2628_v9 = vsel %vm831_vm2, %v5119_v42, 0.0 }
0x20ea   : > { %2629 = vadd.xlane.f32.xlu0 %v2628_v9  ;;  %v4149_v44 = vpop.f32.mrf.mxu0 }
0x2173   : > { %v2630_v46 = vpop.xlane.xlu0 %2629 }
0x2174   : > { %v2631_v47 = vmul.f32 0.03125, %v2630_v46 }
0x2176   : > { %v2632_v48 = vsub.f32 %v5119_v42, %v2631_v47 }
0x2178   : > { %v2633_v49 = vmul.f32 %v2632_v48, %v2632_v48 }
0x217a   : > { %v2634_v50 = vsel %vm831_vm2, %v2633_v49, 0.0 }
0x217b   : > { %2635 = vadd.xlane.f32.xlu1 %v2634_v50 }
0x2204   : > { %v2636_v53 = vpop.xlane.xlu1 %2635 }
0x2205   : > { %v2637_v22 = vmul.f32 0.03125, %v2636_v53 }
0x2207   : > { %v2638_v54 = vadd.f32 1e-05, %v2637_v22 }
0x2209   : > { %4404 = vrsqrt.f32 %v2638_v54 }
0x2216   : > { %v4405_v55 = vpop.eup %4404 }
0x2217   : > { %v2640_v57 = vmul.f32 %v4405_v55, %v2632_v48 }
0x2219   : > { %v2645_v59 = vmul.f32 %v3744_v56, %v2640_v57 }
0x221b   : > { %v2650_v60 = vadd.f32 %v3745_v58, %v2645_v59 }
0x221d   : > { %v2656_v61 = vpack.c.bf16 %v2650_v60, %v2650_v60  ;;  %v3765_v60 = vld [vmem:[%s5450_s1 + $0x3] ss:$0 sm:$0xff]  ;;  %s5464_s1 = sld [smem:[#allocation28_spill]] }
0x221f   : > { %4155 = vmatmul.mubr.msk.bf16.vlgmr.msra.gmra.mxu1 %vm831_vm2, %v2656_v61 }
0x2220   : > { %4160 = vmatprep.mubr.msk.bf16.mxu1 %vm4485_vm0, %v4484_v1 }
0x22df   : > { %v2711_v32 = vpop.f32.mrf.mxu1 }
0x22e0   : > { %v2712_v63 = vadd.f32 %v3750_v62, %v2711_v32 }
0x22e1   : > { %v4156_v0 = vpop.f32.mrf.mxu1 }
0x22e2   : > { %v2717_v2 = vpack.c.bf16 %v2712_v63, %v2712_v63 }
0x22e3   : > { %v2714_v3 = vpop.f32.mrf.mxu1 }
0x22e4   : > { %2719 = vrot.lane.b32.xlu0 %v2717_v2, %s5451_s4 }
0x22e5   : > { %v4157_v4 = vpop.f32.mrf.mxu1 }
0x22e8   : > { %2830 = vrot.lane.b32.xlu0 %v2717_v2, %s5452_s28 }
0x22ec   : > { %2828 = vrot.lane.b32.xlu0 %v2717_v2, %s5453_s0  ;;  %s5459_s0 = sld [smem:[#allocation6_spill]] }
0x22f2   : > { %s753_s25 = sand.u32 1, %s5459_s0   ;;  %s4492_s0 = smov [#allocation2]  }
0x22f3   : > { %s3596_s24 = sshll.u32 %s753_s25, 3  ;;  %s3520_s2 = scalar_lea.sflag [#allocation3], %s753_s25 }
0x22f4   : > { %s755_s28 = scalar_lea.vmem [#allocation2], %s3596_s24 }
0x2356   : > { %v2720_v5 = vpop.permute.xlu0 %2719 }
0x2357   : > { %v2725_v6 = vsel %vm783_vm1, %v2720_v5, 0 }
0x2358   : > { %4159 = vmatpush3.bf16.xpose.msra.mxu1 %v2725_v6 }
0x2359   : > { %4164 = vmatprep.subr.bf16.mxu1 %v4484_v1 }
0x235a   : > { %v2831_v25 = vpop.permute.xlu0 %2830 }
0x235b   : > { %v2836_v27 = vsel %vm783_vm1, %v2831_v25, 0  ;;  %v4350_v25 = vld [vmem:[%s5368_s14 + $0xd8] sm:$0xff]  }
0x235e   : > { %v2829_v28 = vpop.permute.xlu0 %2828 }
0x235f   : > { %4161 = vmatmul.mubr.msk.bf16.vlgmr.msra.gmra.mxu1 %vm783_vm1, %v2717_v2 }
0x2360   : > { %4166 = vmatprep.mubr.msk.bf16.mxu1 %vm4485_vm0, %v4484_v1 }
0x241f   : > { %v2761_v7 = vpop.f32.mrf.mxu1 }
0x2420   : > { %v2767_v8 = vsel %vm4734_vm3, %v2761_v7, -1e+30 }
0x2421   : > { %v4162_v10 = vpop.f32.mrf.mxu1  ;;  %v2768_v11 = vsel %vm972_vm4, %v2767_v8, -inf }
0x2422   : > { %2769 = vmax.xlane.f32.xlu1 %v2768_v11 }
0x2423   : > { %v2764_v12 = vpop.f32.mrf.mxu1 }
0x2425   : > { %v4163_v13 = vpop.f32.mrf.mxu1 }
0x24ab   : > { %v2770_v14 = vpop.xlane.xlu1 %2769 }
0x24ac   : > { %v2771_v15 = vsub.f32 %v2767_v8, %v2770_v14  ;;  %v4345_v8 = vld [vmem:[%s5366_s12 + $0x30] sm:$0xff]   ;;  %v3766_v14 = vld [vmem:[%s5364_s10 + $0x3] ss:$0 sm:$0xff] }
0x24ae   : > { %v2772_v16 = vmul.f32 1.442695, %v2771_v15 }
0x24b0   : > { %4406 = vpow2.f32 %v2772_v16  ;;  %v3767_v16 = vld [vmem:[%s5365_s11 + $0x3] ss:$0 sm:$0xff] }
0x24bd   : > { %v4407_v17 = vpop.eup %4406 }
0x24be   : > { %v2774_v18 = vsel %vm972_vm4, %v4407_v17, 0.0 }
0x24bf   : > { %2775 = vadd.xlane.f32.xlu1 %v2774_v18 }
0x24d0   : > { %2780 = vrot.lane.b32.xlu1 %v2717_v2, %s5454_s29  ;;  %s3533_s29 = sshll.u32 %s755_s28, 4  ;;  %s3534_s29 = int_to_ptr.vmem [resolvable:$true] %s3533_s29 }
0x24d1   : > { %s4422_s6 = scalar_lea.vmem %s3534_s29, 128 }
0x24d2   : > { %p4423_p11 = scmp.ne.s32.totalorder %s3534_s29, %s4422_s6 }
0x24d4   : > { %p4424_p12 = pnand %p4423_p11, %p4661_p5 }
0x24d6   : > { %p4425_p13 = pneg %p4424_p12 }
0x2548   : > { %v2776_v19 = vpop.xlane.xlu1 %2775 }
0x2549   : > { %4408 = vrcp.f32 %v2776_v19 }
0x254c   : > { %v2781_v20 = vpop.permute.xlu1 %2780 }
0x254d   : > { %v2786_v21 = vsel %vm990_vm5, %v2781_v20, 0  ;;  %v4346_v20 = vld [vmem:[%s5368_s14 + $0xf8] sm:$0xff]  }
0x254e   : > { %4165 = vmatpush3.bf16.msra.mxu1 %v2786_v21  ;;  %v4347_v21 = vld [vmem:[%s5368_s14 + $0xf0] sm:$0xff]  }
0x254f   : > { %4170 = vmatprep.subr.bf16.mxu1 %v4484_v1 }
0x2556   : > { %v4409_v23 = vpop.eup %4408 }
0x2557   : > { %v2778_v24 = vmul.f32 %v4409_v23, %v4407_v17  ;;  %v4348_v23 = vld [vmem:[%s5368_s14 + $0xe8] sm:$0xff]  }
0x2559   : > { %v2779_v26 = vpack.c.bf16 %v2778_v24, %v2778_v24  ;;  %v4349_v24 = vld [vmem:[%s5368_s14 + $0xe0] sm:$0xff]  }
0x255b   : > { %4167 = vmatmul.mubr.msk.bf16.vlgmr.msra.gmra.mxu1 %vm972_vm4, %v2779_v26  ;;  %v4351_v26 = vld [vmem:[%s5368_s14 + $0xd0] sm:$0xff]  }
0x255c   : > { %4171 = vmatpush3.bf16.xpose.msra.mxu1 %v2836_v27  ;;  %4172 = vmatprep.mubr.msk.bf16.mxu1 %vm4485_vm0, %v4484_v1  ;;  %v4352_v27 = vld [vmem:[%s5368_s14 + $0xc8] sm:$0xff]  }
0x255d   : > { %4182 = vmatprep.subr.bf16.mxu1 %v4484_v1 }
0x2563   : > { %4173 = vmatmul.mubr.msk.bf16.vlgmr.msra.gmra.mxu1 %vm783_vm1, %v2829_v28  ;;  %v4353_v28 = vld [vmem:[%s5368_s14 + $0xc0] sm:$0xff]  }
0x2564   : > { %4186 = vmatprep.mubr.msk.bf16.mxu1 %vm4485_vm0, %v4484_v1  ;;  %4183 = vmatpush3.bf16.msra.mxu1 %v4342_v51 }
0x2565   : > { %4184 = vmatprep.subr.bf16.mxu1 %v4484_v1 }
0x2568   : > { %4185 = vmatpush3.bf16.msra.mxu1 %v4343_v52 }
0x2569   : > { %4198 = vmatprep.subr.bf16.mxu1 %v4484_v1 }
0x261b   : > { %v2822_v29 = vpop.f32.mrf.mxu1 }
0x261d   : > { %v4168_v30 = vpop.f32.mrf.mxu1 }
0x261f   : > { %v2825_v31 = vpop.f32.mrf.mxu1 }
0x2621   : > { %v4169_v33 = vpop.f32.mrf.mxu1 }
0x2623   : > { %v2872_v34 = vpop.f32.mrf.mxu1 }
0x2624   : > { %v2878_v35 = vsel %vm4734_vm3, %v2872_v34, -1e+30 }
0x2625   : > { %v4174_v36 = vpop.f32.mrf.mxu1  ;;  %v2879_v37 = vsel %vm972_vm4, %v2878_v35, -inf }
0x2626   : > { %2880 = vmax.xlane.f32.xlu1 %v2879_v37 }
0x2627   : > { %v2875_v38 = vpop.f32.mrf.mxu1 }
0x2629   : > { %v4175_v39 = vpop.f32.mrf.mxu1 }
0x26af   : > { %v2881_v40 = vpop.xlane.xlu1 %2880 }
0x26b0   : > { %v2882_v41 = vsub.f32 %v2878_v35, %v2881_v40 }
0x26b2   : > { %v2883_v43 = vmul.f32 1.442695, %v2882_v41 }
0x26b4   : > { %4410 = vpow2.f32 %v2883_v43 }
0x26c1   : > { %v4411_v9 = vpop.eup %4410 }
0x26c2   : > { %v2885_v44 = vsel %vm972_vm4, %v4411_v9, 0.0 }
0x26c3   : > { %2886 = vadd.xlane.f32.xlu0 %v2885_v44 }
0x26d9   : > { %2891 = vrot.lane.b32.xlu0 %v2717_v2, %s5455_s30 }
0x274c   : > { %v2887_v46 = vpop.xlane.xlu0 %2886 }
0x274d   : > { %4412 = vrcp.f32 %v2887_v46 }
0x2750   : > { %v2892_v45 = vpop.permute.xlu0 %2891 }
0x2751   : > { %v2897_v47 = vsel %vm990_vm5, %v2892_v45, 0 }
0x2752   : > { %4177 = vmatpush3.bf16.msra.mxu0 %v2897_v47  ;;  %v3800_v47 = vld [vmem:[%s5369_s15 + $0x3] ss:$0 sm:$0xff] }
0x2753   : > { %4190 = vmatprep.subr.bf16.mxu0 %v4484_v1 }
0x275a   : > { %v4413_v48 = vpop.eup %4412 }
0x275b   : > { %v2889_v49 = vmul.f32 %v4413_v48, %v4411_v9 }
0x275d   : > { %v2890_v50 = vpack.c.bf16 %v2889_v49, %v2889_v49 }
0x275f   : > { %4179 = vmatmul.mubr.msk.bf16.vlgmr.msra.gmra.mxu0 %vm972_vm4, %v2890_v50 }
0x2760   : > { %4194 = vmatprep.mubr.msk.bf16.mxu0 %vm4485_vm0, %v4484_v1 }
0x281f   : > { %v2933_v53 = vpop.f32.mrf.mxu0 }
0x2820   : > { %2940 = vrot.lane.b32.xlu1 %v2933_v53, %s5456_s7  ;;  %s5461_s7 = sld [smem:[#allocation9_spill]] }
0x2821   : > { %v4180_v22 = vpop.f32.mrf.mxu0 }
0x2823   : > { %v2936_v54 = vpop.f32.mrf.mxu0 }
0x2825   : > { %v4181_v55 = vpop.f32.mrf.mxu0 }
0x2826   : > { %s3819_s4 = sshll.u32 %s5461_s7, 7 }
0x2827   : > { %s5319_s3 = scalar_lea.hbm %s5464_s1, %s3819_s4 }
0x2892   : > { %v2941_v56 = vpop.permute.xlu1 %2940 }
0x2893   : > { %v2943_v57 = vsel %vm783_vm1, %v2822_v29, %v2941_v56  ;;  %v3772_v29 = vld [vmem:[%s5367_s13 + $0x3] ss:$0 sm:$0xff] }
0x2894   : > { %v2949_v58 = vpack.c.bf16 %v2943_v57, %v2943_v57 }
0x2896   : > { %4187 = vmatmul.mubr.msk.bf16.vlgmr.msra.gmra.mxu1 %vm831_vm2, %v2949_v58  ;;  %v4354_v58 = vld [vmem:[%s5372_s18 + $0x8] sm:$0xff]  }
0x2897   : > { %4214 = vmatprep.mubr.msk.bf16.mxu1 %vm4485_vm0, %v4484_v1  ;;  %4199 = vmatpush3.bf16.msra.mxu1 %v4346_v20 }
0x2898   : > { %4200 = vmatprep.subr.bf16.mxu1 %v4484_v1 }
0x289b   : > { %4201 = vmatpush3.bf16.msra.mxu1 %v4347_v21 }
0x289c   : > { %4202 = vmatprep.subr.bf16.mxu1 %v4484_v1 }
0x289f   : > { %4203 = vmatpush3.bf16.msra.mxu1 %v4348_v23 }
0x28a0   : > { %4204 = vmatprep.subr.bf16.mxu1 %v4484_v1 }
0x28a3   : > { %4205 = vmatpush3.bf16.msra.mxu1 %v4349_v24  ;;  %v4360_v24 = vld [vmem:[%s5458_s8 + $0x8] sm:$0xff]  }
0x28a4   : > { %4206 = vmatprep.subr.bf16.mxu1 %v4484_v1 }
0x28a7   : > { %4207 = vmatpush3.bf16.msra.mxu1 %v4350_v25  ;;  %v4361_v25 = vld [vmem:[%s5458_s8] sm:$0xff]  }
0x28a8   : > { %4208 = vmatprep.subr.bf16.mxu1 %v4484_v1 }
0x28ab   : > { %4209 = vmatpush3.bf16.msra.mxu1 %v4351_v26  ;;  %v3810_v26 = vld [vmem:[%s5460_s22] ss:$0 sm:$0xff] }
0x28ac   : > { %4210 = vmatprep.subr.bf16.mxu1 %v4484_v1 }
0x28af   : > { %4211 = vmatpush3.bf16.msra.mxu1 %v4352_v27 }
0x28b0   : > { %4212 = vmatprep.subr.bf16.mxu1 %v4484_v1 }
0x28b3   : > { %4213 = vmatpush3.bf16.msra.mxu1 %v4353_v28 }
0x2956   : > { %v2999_v59 = vpop.f32.mrf.mxu1 }
0x2957   : > { %v3005_v61 = vadd.f32 %v2999_v59, %v5119_v42  ;;  %v4344_v42 = vld [vmem:[%s5366_s12 + $0x38] sm:$0xff]   ;;  %v4355_v59 = vld [vmem:[%s5372_s18] sm:$0xff]  }
0x2958   : > { %v4188_v62 = vpop.f32.mrf.mxu1  ;;  %4191 = vmatpush3.bf16.msra.mxu0 %v4344_v42 }
0x2959   : > { %v5195_v32 = vadd.f32 %v3765_v60, %v3005_v61  ;;  %4192 = vmatprep.subr.bf16.mxu0 %v4484_v1 }
0x295a   : > { %v3002_v63 = vpop.f32.mrf.mxu1 }
0x295b   : > { %v3014_v0 = vsel %vm831_vm2, %v5195_v32, 0.0  ;;  %v3801_v63 = vld [vmem:[%s5370_s16] ss:$0 sm:$0xff] }
0x295c   : > { %3015 = vadd.xlane.f32.xlu1 %v3014_v0  ;;  %v4189_v2 = vpop.f32.mrf.mxu1  ;;  %4193 = vmatpush3.bf16.msra.mxu0 %v4345_v8 }
0x295d   : > { %4218 = vmatprep.subr.bf16.mxu0 %v4484_v1  ;;  %v3802_v2 = vld [vmem:[%s5371_s17] ss:$0 sm:$0xff] }
0x29e5   : > { %v3016_v3 = vpop.xlane.xlu1 %3015 }
0x29e6   : > { %v3017_v4 = vmul.f32 0.03125, %v3016_v3 }
0x29e8   : > { %v3018_v5 = vsub.f32 %v5195_v32, %v3017_v4 }
0x29ea   : > { %v3019_v6 = vmul.f32 %v3018_v5, %v3018_v5 }
0x29ec   : > { %v3020_v7 = vsel %vm831_vm2, %v3019_v6, 0.0 }
0x29ed   : > { %3021 = vadd.xlane.f32.xlu0 %v3020_v7  ;;  %v4357_v7 = vld [vmem:[%s5373_s19] sm:$0xff]  }
0x2a76   : > { %v3022_v10 = vpop.xlane.xlu0 %3021 }
0x2a77   : > { %v3023_v11 = vmul.f32 0.03125, %v3022_v10 }
0x2a79   : > { %v3024_v12 = vadd.f32 1e-05, %v3023_v11 }
0x2a7b   : > { %4414 = vrsqrt.f32 %v3024_v12 }
0x2a88   : > { %v4415_v13 = vpop.eup %4414 }
0x2a89   : > { %v3026_v15 = vmul.f32 %v4415_v13, %v3018_v5  ;;  %v4356_v5 = vld [vmem:[%s5373_s19 + $0x8] sm:$0xff]  }
0x2a8a   : > { %v4358_v13 = vld [vmem:[%s5375_s21 + $0x8] sm:$0xff]  }
0x2a8b   : > { %v3031_v17 = vmul.f32 %v3766_v14, %v3026_v15  ;;  %v4359_v14 = vld [vmem:[%s5375_s21] sm:$0xff]  }
0x2a8c   : > { %v3806_v15 = vld [vmem:[%s5457_s23] ss:$0 sm:$0xff] }
0x2a8d   : > { %v3036_v18 = vadd.f32 %v3767_v16, %v3031_v17 }
0x2a8f   : > { %v3042_v19 = vpack.c.bf16 %v3036_v18, %v3036_v18 }
0x2a91   : > { %4195 = vmatmul.mubr.msk.bf16.vlgmr.msra.gmra.mxu0 %vm831_vm2, %v3042_v19 }
0x2a92   : > { %4222 = vmatprep.mubr.msk.bf16.mxu0 %vm4485_vm0, %v4484_v1  ;;  %4219 = vmatpush3.bf16.msra.mxu0 %v4354_v58 }
0x2a93   : > { %4220 = vmatprep.subr.bf16.mxu0 %v4484_v1 }
0x2a96   : > { %4221 = vmatpush3.bf16.msra.mxu0 %v4355_v59 }
0x2a97   : > { %4226 = vmatprep.subr.bf16.mxu0 %v4484_v1 }
0x2b51   : > { %v3097_v30 = vpop.f32.mrf.mxu0 }
0x2b52   : > { %v3098_v31 = vadd.f32 %v3772_v29, %v3097_v30 }
0x2b53   : > { %v4196_v33 = vpop.f32.mrf.mxu0 }
0x2b54   : > { %v3103_v34 = vmul.f32 %v3098_v31, %v3098_v31 }
0x2b55   : > { %v3100_v35 = vpop.f32.mrf.mxu0 }
0x2b56   : > { %v3104_v36 = vmul.f32 %v3103_v34, %v3098_v31 }
0x2b57   : > { %v4197_v37 = vpop.f32.mrf.mxu0 }
0x2b58   : > { %v3105_v38 = vmul.f32 0.044715, %v3104_v36 }
0x2b5a   : > { %v3106_v39 = vadd.f32 %v3105_v38, %v3098_v31 }
0x2b5c   : > { %v3107_v40 = vmul.f32 0.7978846, %v3106_v39 }
0x2b5e   : > { %4416 = vtanh.f32 %v3107_v40 }
0x2b6b   : > { %v4417_v41 = vpop.eup %4416 }
0x2b6c   : > { %v3109_v43 = vadd.f32 1.0, %v4417_v41 }
0x2b6e   : > { %v3110_v9 = vmul.f32 0.5, %v3109_v43 }
0x2b70   : > { %v3111_v44 = vmul.f32 %v3110_v9, %v3098_v31 }
0x2b72   : > { %v3129_v46 = vpack.c.bf16 %v3111_v44, %v3111_v44 }
0x2b74   : > { %4215 = vmatmul.mubr.bf16.vlgmr.msra.gmra.mxu1 %v3129_v46 }
0x2c34   : > { %v3212_v45 = vpop.f32.mrf.mxu1 }
0x2c35   : > { %v3218_v48 = vadd.f32 %v3212_v45, %v5195_v32 }
0x2c36   : > { %v4216_v49 = vpop.f32.mrf.mxu1 }
0x2c37   : > { %v3224_v50 = vadd.f32 %v3800_v47, %v3218_v48 }
0x2c38   : > { %v3215_v51 = vpop.f32.mrf.mxu1 }
0x2c39   : > { %v3227_v52 = vsel %vm831_vm2, %v3224_v50, 0.0 }
0x2c3a   : > { %3228 = vadd.xlane.f32.xlu0 %v3227_v52  ;;  %v4217_v53 = vpop.f32.mrf.mxu1 }
0x2cc3   : > { %v3229_v22 = vpop.xlane.xlu0 %3228 }
0x2cc4   : > { %v3230_v54 = vmul.f32 0.03125, %v3229_v22 }
0x2cc6   : > { %v3231_v55 = vsub.f32 %v3224_v50, %v3230_v54 }
0x2cc8   : > { %v3232_v56 = vmul.f32 %v3231_v55, %v3231_v55 }
0x2cca   : > { %v3233_v57 = vsel %vm831_vm2, %v3232_v56, 0.0 }
0x2ccb   : > { %3234 = vadd.xlane.f32.xlu1 %v3233_v57 }
0x2d54   : > { %v3235_v60 = vpop.xlane.xlu1 %3234 }
0x2d55   : > { %v3236_v61 = vmul.f32 0.03125, %v3235_v60 }
0x2d57   : > { %v3237_v62 = vadd.f32 1e-05, %v3236_v61 }
0x2d59   : > { %4418 = vrsqrt.f32 %v3237_v62 }
0x2d66   : > { %v4419_v32 = vpop.eup %4418 }
0x2d67   : > { %v3239_v0 = vmul.f32 %v4419_v32, %v3231_v55 }
0x2d69   : > { %v3246_v3 = vmul.f32 %v3801_v63, %v3239_v0 }
0x2d6b   : > { %v3253_v4 = vadd.f32 %v3802_v2, %v3246_v3 }
0x2d6d   : > { %v3258_v6 = vpack.c.bf16 %v3253_v4, %v3253_v4 }
0x2d6f   : > { %4223 = vmatmul.mubr.msk.bf16.vlgmr.msra.gmra.mxu0 %vm831_vm2, %v3258_v6 }
0x2d70   : > { %4227 = vmatpush3.bf16.msra.mxu0 %v4356_v5  ;;  %4230 = vmatprep.mubr.msk.bf16.mxu0 %vm4485_vm0, %v4484_v1 }
0x2d71   : > { %4228 = vmatprep.subr.bf16.mxu0 %v4484_v1 }
0x2d74   : > { %4229 = vmatpush3.bf16.msra.mxu0 %v4357_v7 }
0x2d75   : > { %4234 = vmatprep.subr.bf16.mxu0 %v4484_v1 }
0x2e2f   : > { %v3308_v42 = vpop.f32.mrf.mxu0 }
0x2e30   : > { %v3318_v8 = vpack.c.bf16 %v3308_v42, %v3308_v42 }
0x2e31   : > { %v4224_v10 = vpop.f32.mrf.mxu0 }
0x2e32   : > { %4231 = vmatmul.mubr.msk.bf16.vlgmr.msra.gmra.mxu0 %vm831_vm2, %v3318_v8 }
0x2e33   : > { %v3311_v11 = vpop.f32.mrf.mxu0  ;;  %4238 = vmatprep.mubr.msk.bf16.mxu0 %vm4485_vm0, %v4484_v1  ;;  %4235 = vmatpush3.bf16.msra.mxu0 %v4358_v13 }
0x2e34   : > { %4236 = vmatprep.subr.bf16.mxu0 %v4484_v1 }
0x2e35   : > { %v4225_v12 = vpop.f32.mrf.mxu0 }
0x2e37   : > { %4237 = vmatpush3.bf16.msra.mxu0 %v4359_v14 }
0x2e38   : > { %4242 = vmatprep.subr.bf16.mxu0 %v4484_v1 }
0x2ef2   : > { %v3375_v16 = vpop.f32.mrf.mxu0 }
0x2ef3   : > { %v3376_v17 = vadd.f32 %v3806_v15, %v3375_v16 }
0x2ef4   : > { %v4232_v18 = vpop.f32.mrf.mxu0 }
0x2ef5   : > { %v3381_v19 = vmax.f32 %v3376_v17, 0.0 }
0x2ef6   : > { %v3378_v20 = vpop.f32.mrf.mxu0 }
0x2ef7   : > { %v3386_v21 = vpack.c.bf16 %v3381_v19, %v3381_v19 }
0x2ef8   : > { %v4233_v23 = vpop.f32.mrf.mxu0 }
0x2ef9   : > { %4239 = vmatmul.mubr.msk.bf16.vlgmr.msra.gmra.mxu0 %vm831_vm2, %v3386_v21 }
0x2efa   : > { %4246 = vmatprep.mubr.msk.bf16.mxu0 %vm4485_vm0, %v4484_v1  ;;  %4243 = vmatpush3.bf16.msra.mxu0 %v4360_v24 }
0x2efb   : > { %4244 = vmatprep.subr.bf16.mxu0 %v4484_v1  ;;  %v3814_v1 = vld [vmem:[%s5462_s20] ss:$0 sm:$0xff]  ;;  %s4426_s20 = sshll.u32 %s4492_s0, 4  ;;  %s4427_s20 = int_to_ptr.vmem [resolvable:$false] %s4426_s20 }
0x2efc   : > { %s4428_s7 = scalar_lea.vmem %s4427_s20, 256  ;;  %p4429_p0 = scmp.lt.s32.totalorder %s3534_s29, %s4427_s20 }
0x2efd   : > { %p4430_p1 = scmp.lt.s32.totalorder %s4428_s7, %s4422_s6 }
0x2efe   : > { %4245 = vmatpush3.bf16.msra.mxu0 %v4361_v25 }
0x2eff   : > { %p4431_p2 = por %p4430_p1, %p4429_p0 }
0x2f01   : > { %p4432_p3 = pnand %p4431_p2, %p4425_p13 }
0x2fb9   : > { %v3443_v27 = vpop.f32.mrf.mxu0 }
0x2fba   : > { %v3444_v28 = vadd.f32 %v3810_v26, %v3443_v27 }
0x2fbb   : > { %v4240_v29 = vpop.f32.mrf.mxu0 }
0x2fbc   : > { %v3449_v30 = vmax.f32 %v3444_v28, 0.0 }
0x2fbd   : > { %v3446_v31 = vpop.f32.mrf.mxu0 }
0x2fbe   : > { %v3454_v33 = vpack.c.bf16 %v3449_v30, %v3449_v30 }
0x2fbf   : > { %v4241_v34 = vpop.f32.mrf.mxu0 }
0x2fc0   : > { %4247 = vmatmul.mubr.msk.bf16.vlgmr.msra.gmra.mxu0 %vm831_vm2, %v3454_v33 }
0x3080   : > { %v3511_v35 = vpop.f32.mrf.mxu0 }
0x3081   : > { %v3512_v36 = vadd.f32 %v3814_v1, %v3511_v35 }
0x3082   : > { %v4248_v37 = vpop.f32.mrf.mxu0 }
0x3083   : > { %4420 = vtanh.f32 %v3512_v36 }
0x3084   : > { %v3514_v38 = vpop.f32.mrf.mxu0 }
0x3086   : > { %v4249_v39 = vpop.f32.mrf.mxu0 }
0x3090   : > { %v4421_v40 = vpop.eup %4420 }
0x3091   : > { %3518 = vst [vmem:[%s755_s28] sm:$0xff] %v4421_v40 }
0x3092   : > { %4435 = shalt.err (!%p4432_p3)
}
0x3093   : > { %s4436_s24 = scalar_lea.hbm %s5319_s3, 128  ;;  %s4440_s28 = scalar_lea.hbm %s5464_s1, 256 }
0x3094   : > { %p4437_p4 = scmp.ne.s32.totalorder %s5319_s3, %s4436_s24  ;;  %p4441_p9 = scmp.lt.s32.totalorder %s5319_s3, %s5464_s1 }
0x3095   : > { %p4442_p10 = scmp.lt.s32.totalorder %s4440_s28, %s4436_s24 }
0x3096   : > { %p4438_p7 = pnand %p4437_p4, %p4661_p5 }
0x3097   : > { %p4443_p11 = por %p4442_p10, %p4441_p9 }
0x3098   : > { %p4439_p8 = pneg %p4438_p7 }
0x309a   : > { %p4444_p12 = pnand %p4443_p11, %p4439_p8 }
0x309c   : > { %4447 = shalt.err (!%p4444_p12)
}
0x309d   : > { %4250 = dma.vmem_to_hbm [thread:$0]  (%p4661_p5), %s3534_s29, 128, %s5319_s3, %s3520_s2  }
0x309e PF: > { %s5465_s6 = sld [smem:[#allocation8_spill]] }
0x309f   : > { %s5466_s0 = sld [smem:[#allocation5_spill]] }
0x30a4   : > { %p4256_p13 = scmp.ge.s32.totalorder %s5465_s6, 2 }
0x30a5   : > { %s3545_s7 = sand.u32 1, %s5466_s0  }
0x30a6   : > { %p4253_p0 = pnand %p4256_p13, %p4665_p6  ;;  %s3546_s25 = scalar_lea.sflag [#allocation3], %s3545_s7 }
0x30a8   : > { %p4254_p1 = pneg %p4253_p0 }
0x30aa   : > { %4465 = dma.done.wait (%p4254_p1), %s3546_s25, 128  }
0x30ab   : > { %4467 = vsyncadd (%p4254_p1), %s3546_s25, 4294967168  ;;  %s5468_s30 = sld [smem:[#allocation10_spill]] }
0x30ac   : > { %s5469_s29 = sld [smem:[#allocation6_spill]] }
0x30ad   : > { %s5470_s2 = sld [smem:[#allocation7_spill]] }
0x30ae   : > { %s5471_s6 = sld [smem:[#allocation11_spill]] }
0x30b1   : > { %p35_p2 = scmp.ge.s32.totalorder %s5468_s30, 4  }
0x30b3   :  { %37 = sbr.rel (!%p35_p2) target bundleno = 19 (0x13), region = 167 }
0x30b8   :  { %3551 = vsyncpa [#allocation3], 1 }
0x30b9   :  { %3553 = vsyncpa [#allocation3 + $0x1], 1 }

</bundles_post_ra>
